<compile_context>
chip_gen: v7x
topology: tpu7x:2x2x1
jax: 0.10.0
libtpu: 0.0.40
codegen_flags: <defaults>
</compile_context>

<pallas_src>
import functools
import math

import numpy as np
import jax
import jax.numpy as jnp
from jax.experimental import pallas as pl
from jax.experimental.pallas import tpu as pltpu


# --------------------------------------------------------------------------------------
# Kernel
# --------------------------------------------------------------------------------------
def _layer_kernel(x_ref, g1_ref, be1_ref, wqkv_ref, bqkv_ref, bias_ref,
                  wp_ref, bp_ref, g2_ref, be2_ref, w1_ref, b1_ref, w2_ref, b2_ref,
                  out_ref, *, nhead, eps):
    nW, L, C = x_ref.shape            # windows per step, tokens per window, d_model
    hd = C // nhead
    T = nW * L                        # stacked tokens processed this step
    dt = wqkv_ref.dtype               # MXU input dtype (f32 or bf16); accumulation is f32

    # leading-dim merge only (L % 8 == 0 -> layout preserving, no relayout)
    x = x_ref[...].reshape(T, C)

    def layer_norm(v, g, b):
        mu = jnp.mean(v, axis=-1, keepdims=True)
        d = v - mu
        var = jnp.mean(d * d, axis=-1, keepdims=True)
        return d * jax.lax.rsqrt(var + eps) * g + b

    # --- attention branch: x + proj(attn(norm1(x))) ---
    xn = layer_norm(x, g1_ref[...], be1_ref[...])

    # fused QKV projection: one wide MXU matmul (T, C) @ (C, 3C); f32 accumulation.
    qkv = jnp.dot(xn.astype(dt), wqkv_ref[...],
                  preferred_element_type=jnp.float32) + bqkv_ref[...]
    qkv = qkv.reshape(nW, L, 3 * C)   # leading split only (L % 8 == 0)

    attn = None
    for h in range(nhead):            # small static unroll; wide matmuls already hoisted out
        # per-head lane slices of the fused QKV output (softmax scale pre-folded into Wq/bq)
        q_h = qkv[:, :, h * hd:(h + 1) * hd]
        k_h = qkv[:, :, C + h * hd:C + (h + 1) * hd]
        v_h = qkv[:, :, 2 * C + h * hd:2 * C + (h + 1) * hd]

        # scores over the window batch: (nW, L, L)
        s = jnp.einsum('wld,wmd->wlm', q_h.astype(dt), k_h.astype(dt),
                       preferred_element_type=jnp.float32)
        s = s + bias_ref[h]                               # relative position bias (f32)

        # online-stable softmax; normalization deferred (dropout == identity in eval mode)
        s = s - jnp.max(s, axis=-1, keepdims=True)
        p = jnp.exp(s)
        denom = jnp.sum(p, axis=-1, keepdims=True)

        o = jnp.einsum('wlm,wmd->wld', p.astype(dt), v_h.astype(dt),
                       preferred_element_type=jnp.float32)
        o = o * pl.reciprocal(denom, approx=True)         # deferred normalization on EUP

        # fold this head's slice of the output projection directly (no concat / relayout)
        c = jnp.dot(o.reshape(T, hd).astype(dt), wp_ref[h],
                    preferred_element_type=jnp.float32)
        attn = c if attn is None else attn + c

    x1 = x + attn + bp_ref[...]       # proj bias added once, fused with the residual

    # --- MLP branch: x1 + W2 @ relu(W1 @ norm2(x1)) ---
    xn2 = layer_norm(x1, g2_ref[...], be2_ref[...])
    hid = jnp.dot(xn2.astype(dt), w1_ref[...],
                  preferred_element_type=jnp.float32) + b1_ref[...]
    hid = jnp.maximum(hid, 0.0)
    mlp = jnp.dot(hid.astype(dt), w2_ref[...],
                  preferred_element_type=jnp.float32) + b2_ref[...]

    out_ref[...] = (x1 + mlp).reshape(nW, L, C)


# --------------------------------------------------------------------------------------
# Host-side parameter preparation (done ONCE, outside the per-call path)
# --------------------------------------------------------------------------------------
def prepare_params(p, rel_index, *, nhead, mxu_dtype=jnp.float32):
    """Pure layout transforms: fold softmax scale into Wq/bq, split proj per head,
    gather the dense relative-position bias, and cast matmul weights to mxu_dtype."""
    C = p["wqkv"].shape[0]
    hd = C // nhead
    L = rel_index.shape[0]
    scale = float(hd) ** -0.5

    # fold 1/sqrt(hd) into the Q columns of the fused qkv weight & bias
    col_scale = jnp.concatenate([jnp.full((C,), scale, jnp.float32),
                                 jnp.ones((2 * C,), jnp.float32)])
    wqkv = (p["wqkv"] * col_scale[None, :]).astype(mxu_dtype)
    bqkv = p["bqkv"] * col_scale[None, :]                      # stays f32 (post-accum add)

    # proj input ordering is [head, hd] -> per-head (nhead, hd, C)
    wproj = p["wproj"].reshape(nhead, hd, C).astype(mxu_dtype)

    # relative position bias gather (parameter-only) -> dense (nhead, L, L), f32
    bias = p["bias_table"][rel_index.reshape(-1)].reshape(L, L, nhead).transpose(2, 0, 1)

    return dict(ln1_g=p["ln1_g"], ln1_b=p["ln1_b"],
                wqkv=wqkv, bqkv=bqkv, bias=bias, wproj=wproj, bproj=p["bproj"],
                ln2_g=p["ln2_g"], ln2_b=p["ln2_b"],
                w1=p["w1"].astype(mxu_dtype), b1=p["b1"],
                w2=p["w2"].astype(mxu_dtype), b2=p["b2"])


_PARAM_ORDER = ("ln1_g", "ln1_b", "wqkv", "bqkv", "bias", "wproj", "bproj",
                "ln2_g", "ln2_b", "w1", "b1", "w2", "b2")


# --------------------------------------------------------------------------------------
# Wrapper
# --------------------------------------------------------------------------------------
@functools.partial(jax.jit, static_argnames=("nhead", "tile_b"))
def relative_transformer_layer_pallas(x, prep, *, nhead, tile_b=None):
    """x: (B, L, C) f32 windows.  prep: output of prepare_params()."""
    B, L, C = x.shape
    assert C % nhead == 0

    if tile_b is None:
        cands = [c for c in (16, 8, 4, 2, 1) if B % c == 0 and B // c >= 2]
        tile_b = cands[0] if cands else B
    assert B % tile_b == 0

    kernel = functools.partial(_layer_kernel, nhead=nhead, eps=1e-5)

    def const_spec(a):
        # constant index_map -> block stays resident, never re-DMA'd per grid step.
        # (On v7x at large d_model, add pipeline_mode=pl.Buffered(1) to single-buffer.)
        return pl.BlockSpec(a.shape, lambda i, n=a.ndim: (0,) * n)

    in_specs = [pl.BlockSpec((tile_b, L, C), lambda i: (i, 0, 0))] + \
               [const_spec(prep[k]) for k in _PARAM_ORDER]
    out_spec = pl.BlockSpec((tile_b, L, C), lambda i: (i, 0, 0))

    return pl.pallas_call(
        kernel,
        out_shape=jax.ShapeDtypeStruct((B, L, C), jnp.float32),
        grid=(B // tile_b,),
        in_specs=in_specs,
        out_specs=out_spec,
        compiler_params=pltpu.CompilerParams(
            dimension_semantics=("parallel",),
            vmem_limit_bytes=32 * 1024 * 1024,
        ),
    )(x, *(prep[k] for k in _PARAM_ORDER))


# --------------------------------------------------------------------------------------
# Parameters / reference
# --------------------------------------------------------------------------------------
def compute_relative_position_index(window):
    H, W = window
    coords = np.stack(np.meshgrid(np.arange(H), np.arange(W), indexing="ij"))   # (2,H,W)
    cf = coords.reshape(2, -1)                                                   # (2, L)
    rel = cf[:, :, None] - cf[:, None, :]                                        # (2, L, L)
    rel = rel.transpose(1, 2, 0).astype(np.int64)                                # (L, L, 2)
    rel[:, :, 0] += H - 1
    rel[:, :, 1] += W - 1
    rel[:, :, 0] *= 2 * W - 1
    return jnp.asarray(rel.sum(-1), dtype=jnp.int32)                             # (L, L)


def init_params(key, d_model, nhead, window, mlp_ratio=4.0):
    H, W = window
    Hm = int(d_model * mlp_ratio)
    ks = jax.random.split(key, 13)

    def linear(kw, kb, fi, fo):
        bound = 1.0 / math.sqrt(fi)
        w = jax.random.uniform(kw, (fi, fo), jnp.float32, -bound, bound)
        b = jax.random.uniform(kb, (1, fo), jnp.float32, -bound, bound)
        return w, b

    wqkv, bqkv = linear(ks[0], ks[1], d_model, 3 * d_model)
    wproj, bproj = linear(ks[2], ks[3], d_model, d_model)
    w1, b1 = linear(ks[4], ks[5], d_model, Hm)
    w2, b2 = linear(ks[6], ks[7], Hm, d_model)

    ln1_g = 1.0 + 0.1 * jax.random.normal(ks[8], (1, d_model), jnp.float32)
    ln1_b = 0.1 * jax.random.normal(ks[9], (1, d_model), jnp.float32)
    ln2_g = 1.0 + 0.1 * jax.random.normal(ks[10], (1, d_model), jnp.float32)
    ln2_b = 0.1 * jax.random.normal(ks[11], (1, d_model), jnp.float32)

    table = 0.02 * jax.random.normal(ks[12], ((2 * H - 1) * (2 * W - 1), nhead), jnp.float32)

    return dict(wqkv=wqkv, bqkv=bqkv, wproj=wproj, bproj=bproj,
                w1=w1, b1=b1, w2=w2, b2=b2,
                ln1_g=ln1_g, ln1_b=ln1_b, ln2_g=ln2_g, ln2_b=ln2_b,
                bias_table=table)


def reference_forward(x, p, rel_index, nhead):
    """Pure-JAX mirror of RelativeTransformerEncoderLayer.forward (eval mode)."""
    B, L, C = x.shape
    hd = C // nhead
    scale = float(hd) ** -0.5

    def ln(v, g, b):
        mu = jnp.mean(v, axis=-1, keepdims=True)
        var = jnp.mean((v - mu) ** 2, axis=-1, keepdims=True)
        return (v - mu) / jnp.sqrt(var + 1e-5) * g + b

    xn = ln(x, p["ln1_g"], p["ln1_b"])
    qkv = xn @ p["wqkv"] + p["bqkv"]                                     # (B, L, 3C)
    qkv = qkv.reshape(B, L, 3, nhead, hd).transpose(2, 0, 3, 1, 4)       # (3, B, nh, L, hd)
    q, k, v = qkv[0] * scale, qkv[1], qkv[2]
    attn = q @ jnp.swapaxes(k, -1, -2)                                   # (B, nh, L, L)
    bias = p["bias_table"][rel_index.reshape(-1)].reshape(L, L, nhead)
    bias = bias.transpose(2, 0, 1)[None]                                 # (1, nh, L, L)
    attn = jax.nn.softmax(attn + bias, axis=-1)
    out = (attn @ v).transpose(0, 2, 1, 3).reshape(B, L, C)
    out = out @ p["wproj"] + p["bproj"]
    x1 = x + out

    xn2 = ln(x1, p["ln2_g"], p["ln2_b"])
    hid = jnp.maximum(xn2 @ p["w1"] + p["b1"], 0.0)
    mlp = hid @ p["w2"] + p["b2"]
    return x1 + mlp


# --------------------------------------------------------------------------------------
if __name__ == "__main__":
    key = jax.random.PRNGKey(0)
    k_p, k_x = jax.random.split(key)

    B = 16                   # windows: tile_b=8 -> 128 stacked tokens/step, grid of 2 steps
    D_MODEL = 32
    NHEAD = 4
    WINDOW = (4, 4)          # L = 16 tokens per window
    MLP_RATIO = 4.0
    TILE_B = 8
    L = WINDOW[0] * WINDOW[1]

    params = init_params(k_p, D_MODEL, NHEAD, WINDOW, MLP_RATIO)
    rel_index = compute_relative_position_index(WINDOW)
    x = jax.random.normal(k_x, (B, L, D_MODEL), jnp.float32)

    ref = reference_forward(x, params, rel_index, NHEAD)

    # f32 MXU path (v5e-friendly). Only approximation vs the reference is the
    # approx EUP reciprocal in the softmax normalization -> slightly loosened tolerance.
    prep_f32 = prepare_params(params, rel_index, nhead=NHEAD, mxu_dtype=jnp.float32)
    out_f32 = jax.block_until_ready(
        relative_transformer_layer_pallas(x, prep_f32, nhead=NHEAD, tile_b=TILE_B))
    assert out_f32.shape == (B, L, D_MODEL)
    assert jnp.allclose(out_f32, ref, atol=1e-2, rtol=1e-2), "f32 mismatch vs JAX reference"

    # bf16 MXU path (v6e/v7x): weights shipped bf16, matmul inputs bf16, f32 accumulation,
    # elementwise stays f32. Looser tolerance per bf16 rounding.
    prep_bf16 = prepare_params(params, rel_index, nhead=NHEAD, mxu_dtype=jnp.bfloat16)
    out_bf16 = jax.block_until_ready(
        relative_transformer_layer_pallas(x, prep_bf16, nhead=NHEAD, tile_b=TILE_B))
    assert out_bf16.shape == (B, L, D_MODEL)
    assert jnp.allclose(out_bf16, ref, atol=1e-1, rtol=1e-1), "bf16 mismatch vs JAX reference"

    print("KERNEL_OK")
</pallas_src>

<mosaic_0001>
module attributes {stable_mosaic.version = 11 : i64} {
  func.func @_layer_kernel(%arg0: i32, %arg1: memref<8x16x32xf32, #tpu.memory_space<vmem>>, %arg2: memref<1x32xf32, #tpu.memory_space<vmem>>, %arg3: memref<1x32xf32, #tpu.memory_space<vmem>>, %arg4: memref<32x96xf32, #tpu.memory_space<vmem>>, %arg5: memref<1x96xf32, #tpu.memory_space<vmem>>, %arg6: memref<4x16x16xf32, #tpu.memory_space<vmem>>, %arg7: memref<4x8x32xf32, #tpu.memory_space<vmem>>, %arg8: memref<1x32xf32, #tpu.memory_space<vmem>>, %arg9: memref<1x32xf32, #tpu.memory_space<vmem>>, %arg10: memref<1x32xf32, #tpu.memory_space<vmem>>, %arg11: memref<32x128xf32, #tpu.memory_space<vmem>>, %arg12: memref<1x128xf32, #tpu.memory_space<vmem>>, %arg13: memref<128x32xf32, #tpu.memory_space<vmem>>, %arg14: memref<1x32xf32, #tpu.memory_space<vmem>>, %arg15: memref<8x16x32xf32, #tpu.memory_space<vmem>>) attributes {dimension_semantics = [#tpu.dimension_semantics<parallel>], iteration_bounds = array<i64: 2>, scalar_prefetch = 0 : i64, scratch_operands = 0 : i64, tpu.core_type = #tpu.core_type<tc>, window_params = [{transform_indices = @transform_0, window_bounds = array<i64: 8, 16, 32>}, {pipeline_mode = #tpu.pipeline_mode<synchronous>, transform_indices = @transform_1, window_bounds = array<i64: 1, 32>}, {pipeline_mode = #tpu.pipeline_mode<synchronous>, transform_indices = @transform_2, window_bounds = array<i64: 1, 32>}, {pipeline_mode = #tpu.pipeline_mode<synchronous>, transform_indices = @transform_3, window_bounds = array<i64: 32, 96>}, {pipeline_mode = #tpu.pipeline_mode<synchronous>, transform_indices = @transform_4, window_bounds = array<i64: 1, 96>}, {pipeline_mode = #tpu.pipeline_mode<synchronous>, transform_indices = @transform_5, window_bounds = array<i64: 4, 16, 16>}, {pipeline_mode = #tpu.pipeline_mode<synchronous>, transform_indices = @transform_6, window_bounds = array<i64: 4, 8, 32>}, {pipeline_mode = #tpu.pipeline_mode<synchronous>, transform_indices = @transform_7, window_bounds = array<i64: 1, 32>}, {pipeline_mode = #tpu.pipeline_mode<synchronous>, transform_indices = @transform_8, window_bounds = array<i64: 1, 32>}, {pipeline_mode = #tpu.pipeline_mode<synchronous>, transform_indices = @transform_9, window_bounds = array<i64: 1, 32>}, {pipeline_mode = #tpu.pipeline_mode<synchronous>, transform_indices = @transform_10, window_bounds = array<i64: 32, 128>}, {pipeline_mode = #tpu.pipeline_mode<synchronous>, transform_indices = @transform_11, window_bounds = array<i64: 1, 128>}, {pipeline_mode = #tpu.pipeline_mode<synchronous>, transform_indices = @transform_12, window_bounds = array<i64: 128, 32>}, {pipeline_mode = #tpu.pipeline_mode<synchronous>, transform_indices = @transform_13, window_bounds = array<i64: 1, 32>}, {transform_indices = @transform_14, window_bounds = array<i64: 8, 16, 32>}]} {
    %c0 = arith.constant 0 : index
    %c0_0 = arith.constant 0 : index
    %c0_1 = arith.constant 0 : index
    %0 = vector.load %arg1[%c0, %c0_0, %c0_1] : memref<8x16x32xf32, #tpu.memory_space<vmem>>, vector<8x16x32xf32>
    %1 = vector.shape_cast %0 : vector<8x16x32xf32> to vector<128x32xf32>
    %c0_2 = arith.constant 0 : index
    %c0_3 = arith.constant 0 : index
    %2 = vector.load %arg2[%c0_2, %c0_3] : memref<1x32xf32, #tpu.memory_space<vmem>>, vector<1x32xf32>
    %c0_4 = arith.constant 0 : index
    %c0_5 = arith.constant 0 : index
    %3 = vector.load %arg3[%c0_4, %c0_5] : memref<1x32xf32, #tpu.memory_space<vmem>>, vector<1x32xf32>
    %cst = arith.constant dense<0.000000e+00> : vector<128xf32>
    %4 = vector.multi_reduction <add>, %1, %cst [1] : vector<128x32xf32> to vector<128xf32>
    %5 = vector.shape_cast %4 : vector<128xf32> to vector<128x1xf32>
    %cst_6 = arith.constant 3.200000e+01 : f32
    %6 = vector.broadcast %cst_6 : f32 to vector<128x1xf32>
    %7 = arith.divf %5, %6 : vector<128x1xf32>
    %8 = vector.broadcast %7 : vector<128x1xf32> to vector<128x32xf32>
    %9 = arith.subf %1, %8 : vector<128x32xf32>
    %10 = arith.mulf %9, %9 : vector<128x32xf32>
    %cst_7 = arith.constant dense<0.000000e+00> : vector<128xf32>
    %11 = vector.multi_reduction <add>, %10, %cst_7 [1] : vector<128x32xf32> to vector<128xf32>
    %12 = vector.shape_cast %11 : vector<128xf32> to vector<128x1xf32>
    %cst_8 = arith.constant 3.200000e+01 : f32
    %13 = vector.broadcast %cst_8 : f32 to vector<128x1xf32>
    %14 = arith.divf %12, %13 : vector<128x1xf32>
    %cst_9 = arith.constant 9.99999974E-6 : f32
    %15 = vector.broadcast %cst_9 : f32 to vector<128x1xf32>
    %16 = arith.addf %14, %15 : vector<128x1xf32>
    %17 = math.rsqrt %16 : vector<128x1xf32>
    %18 = vector.broadcast %17 : vector<128x1xf32> to vector<128x32xf32>
    %19 = arith.mulf %9, %18 : vector<128x32xf32>
    %20 = vector.broadcast %2 : vector<1x32xf32> to vector<128x32xf32>
    %21 = arith.mulf %19, %20 : vector<128x32xf32>
    %22 = vector.broadcast %3 : vector<1x32xf32> to vector<128x32xf32>
    %23 = arith.addf %21, %22 : vector<128x32xf32>
    %c0_10 = arith.constant 0 : index
    %c0_11 = arith.constant 0 : index
    %24 = vector.load %arg4[%c0_10, %c0_11] : memref<32x96xf32, #tpu.memory_space<vmem>>, vector<32x96xf32>
    %cst_12 = arith.constant dense<0.000000e+00> : vector<128x96xf32>
    %25 = tpu.matmul %23, %24, %cst_12 {dimension_numbers = #tpu.dot_dimension_numbers<[1], [0], [0], [1], [0, 0, 1, 1], [], []>} : vector<128x32xf32>, vector<32x96xf32>, vector<128x96xf32> -> vector<128x96xf32>
    %c0_13 = arith.constant 0 : index
    %c0_14 = arith.constant 0 : index
    %26 = vector.load %arg5[%c0_13, %c0_14] : memref<1x96xf32, #tpu.memory_space<vmem>>, vector<1x96xf32>
    %27 = vector.broadcast %26 : vector<1x96xf32> to vector<128x96xf32>
    %28 = arith.addf %25, %27 : vector<128x96xf32>
    %29 = vector.shape_cast %28 : vector<128x96xf32> to vector<8x16x96xf32>
    %30 = vector.extract_strided_slice %29 {offsets = [0, 0, 0], sizes = [8, 16, 8], strides = [1, 1, 1]} : vector<8x16x96xf32> to vector<8x16x8xf32>
    %31 = vector.extract_strided_slice %29 {offsets = [0, 0, 32], sizes = [8, 16, 8], strides = [1, 1, 1]} : vector<8x16x96xf32> to vector<8x16x8xf32>
    %32 = vector.extract_strided_slice %29 {offsets = [0, 0, 64], sizes = [8, 16, 8], strides = [1, 1, 1]} : vector<8x16x96xf32> to vector<8x16x8xf32>
    "tpu.trace_start"() <{level = 10 : i32, message = "wld,wmd->wlm"}> : () -> ()
    %cst_15 = arith.constant dense<0.000000e+00> : vector<8x16x16xf32>
    %33 = tpu.matmul %30, %31, %cst_15 {dimension_numbers = #tpu.dot_dimension_numbers<[2], [2], [1], [1], [0, 0, 0, 1, 1, 1], [0], [0]>} : vector<8x16x8xf32>, vector<8x16x8xf32>, vector<8x16x16xf32> -> vector<8x16x16xf32>
    "tpu.trace_stop"() : () -> ()
    %c0_16 = arith.constant 0 : index
    %c0_17 = arith.constant 0 : index
    %c0_18 = arith.constant 0 : index
    %34 = vector.load %arg6[%c0_16, %c0_17, %c0_18] : memref<4x16x16xf32, #tpu.memory_space<vmem>>, vector<1x16x16xf32>
    %35 = vector.shape_cast %34 : vector<1x16x16xf32> to vector<16x16xf32>
    %36 = vector.shape_cast %35 : vector<16x16xf32> to vector<1x16x16xf32>
    %37 = vector.broadcast %36 : vector<1x16x16xf32> to vector<8x16x16xf32>
    %38 = arith.addf %33, %37 : vector<8x16x16xf32>
    %cst_19 = arith.constant dense<0xFF800000> : vector<8x16xf32>
    %39 = vector.multi_reduction <maximumf>, %38, %cst_19 [2] : vector<8x16x16xf32> to vector<8x16xf32>
    %40 = vector.shape_cast %39 : vector<8x16xf32> to vector<8x16x1xf32>
    %41 = vector.broadcast %40 : vector<8x16x1xf32> to vector<8x16x16xf32>
    %42 = arith.subf %38, %41 : vector<8x16x16xf32>
    %43 = math.exp %42 : vector<8x16x16xf32>
    %cst_20 = arith.constant dense<0.000000e+00> : vector<8x16xf32>
    %44 = vector.multi_reduction <add>, %43, %cst_20 [2] : vector<8x16x16xf32> to vector<8x16xf32>
    %45 = vector.shape_cast %44 : vector<8x16xf32> to vector<8x16x1xf32>
    "tpu.trace_start"() <{level = 10 : i32, message = "wlm,wmd->wld"}> : () -> ()
    %cst_21 = arith.constant dense<0.000000e+00> : vector<8x16x8xf32>
    %46 = tpu.matmul %43, %32, %cst_21 {dimension_numbers = #tpu.dot_dimension_numbers<[2], [1], [1], [2], [0, 0, 0, 1, 1, 2], [0], [0]>} : vector<8x16x16xf32>, vector<8x16x8xf32>, vector<8x16x8xf32> -> vector<8x16x8xf32>
    "tpu.trace_stop"() : () -> ()
    %47 = tpu.reciprocal %45 {approx = true} : vector<8x16x1xf32> -> vector<8x16x1xf32>
    %48 = vector.broadcast %47 : vector<8x16x1xf32> to vector<8x16x8xf32>
    %49 = arith.mulf %46, %48 : vector<8x16x8xf32>
    %50 = vector.shape_cast %49 : vector<8x16x8xf32> to vector<128x8xf32>
    %c0_22 = arith.constant 0 : index
    %c0_23 = arith.constant 0 : index
    %c0_24 = arith.constant 0 : index
    %51 = vector.load %arg7[%c0_22, %c0_23, %c0_24] : memref<4x8x32xf32, #tpu.memory_space<vmem>>, vector<1x8x32xf32>
    %52 = vector.shape_cast %51 : vector<1x8x32xf32> to vector<8x32xf32>
    %cst_25 = arith.constant dense<0.000000e+00> : vector<128x32xf32>
    %53 = tpu.matmul %50, %52, %cst_25 {dimension_numbers = #tpu.dot_dimension_numbers<[1], [0], [0], [1], [0, 0, 1, 1], [], []>} : vector<128x8xf32>, vector<8x32xf32>, vector<128x32xf32> -> vector<128x32xf32>
    %54 = vector.extract_strided_slice %29 {offsets = [0, 0, 8], sizes = [8, 16, 8], strides = [1, 1, 1]} : vector<8x16x96xf32> to vector<8x16x8xf32>
    %55 = vector.extract_strided_slice %29 {offsets = [0, 0, 40], sizes = [8, 16, 8], strides = [1, 1, 1]} : vector<8x16x96xf32> to vector<8x16x8xf32>
    %56 = vector.extract_strided_slice %29 {offsets = [0, 0, 72], sizes = [8, 16, 8], strides = [1, 1, 1]} : vector<8x16x96xf32> to vector<8x16x8xf32>
    "tpu.trace_start"() <{level = 10 : i32, message = "wld,wmd->wlm"}> : () -> ()
    %cst_26 = arith.constant dense<0.000000e+00> : vector<8x16x16xf32>
    %57 = tpu.matmul %54, %55, %cst_26 {dimension_numbers = #tpu.dot_dimension_numbers<[2], [2], [1], [1], [0, 0, 0, 1, 1, 1], [0], [0]>} : vector<8x16x8xf32>, vector<8x16x8xf32>, vector<8x16x16xf32> -> vector<8x16x16xf32>
    "tpu.trace_stop"() : () -> ()
    %c1 = arith.constant 1 : index
    %c0_27 = arith.constant 0 : index
    %c0_28 = arith.constant 0 : index
    %58 = vector.load %arg6[%c1, %c0_27, %c0_28] : memref<4x16x16xf32, #tpu.memory_space<vmem>>, vector<1x16x16xf32>
    %59 = vector.shape_cast %58 : vector<1x16x16xf32> to vector<16x16xf32>
    %60 = vector.shape_cast %59 : vector<16x16xf32> to vector<1x16x16xf32>
    %61 = vector.broadcast %60 : vector<1x16x16xf32> to vector<8x16x16xf32>
    %62 = arith.addf %57, %61 : vector<8x16x16xf32>
    %cst_29 = arith.constant dense<0xFF800000> : vector<8x16xf32>
    %63 = vector.multi_reduction <maximumf>, %62, %cst_29 [2] : vector<8x16x16xf32> to vector<8x16xf32>
    %64 = vector.shape_cast %63 : vector<8x16xf32> to vector<8x16x1xf32>
    %65 = vector.broadcast %64 : vector<8x16x1xf32> to vector<8x16x16xf32>
    %66 = arith.subf %62, %65 : vector<8x16x16xf32>
    %67 = math.exp %66 : vector<8x16x16xf32>
    %cst_30 = arith.constant dense<0.000000e+00> : vector<8x16xf32>
    %68 = vector.multi_reduction <add>, %67, %cst_30 [2] : vector<8x16x16xf32> to vector<8x16xf32>
    %69 = vector.shape_cast %68 : vector<8x16xf32> to vector<8x16x1xf32>
    "tpu.trace_start"() <{level = 10 : i32, message = "wlm,wmd->wld"}> : () -> ()
    %cst_31 = arith.constant dense<0.000000e+00> : vector<8x16x8xf32>
    %70 = tpu.matmul %67, %56, %cst_31 {dimension_numbers = #tpu.dot_dimension_numbers<[2], [1], [1], [2], [0, 0, 0, 1, 1, 2], [0], [0]>} : vector<8x16x16xf32>, vector<8x16x8xf32>, vector<8x16x8xf32> -> vector<8x16x8xf32>
    "tpu.trace_stop"() : () -> ()
    %71 = tpu.reciprocal %69 {approx = true} : vector<8x16x1xf32> -> vector<8x16x1xf32>
    %72 = vector.broadcast %71 : vector<8x16x1xf32> to vector<8x16x8xf32>
    %73 = arith.mulf %70, %72 : vector<8x16x8xf32>
    %74 = vector.shape_cast %73 : vector<8x16x8xf32> to vector<128x8xf32>
    %c1_32 = arith.constant 1 : index
    %c0_33 = arith.constant 0 : index
    %c0_34 = arith.constant 0 : index
    %75 = vector.load %arg7[%c1_32, %c0_33, %c0_34] : memref<4x8x32xf32, #tpu.memory_space<vmem>>, vector<1x8x32xf32>
    %76 = vector.shape_cast %75 : vector<1x8x32xf32> to vector<8x32xf32>
    %cst_35 = arith.constant dense<0.000000e+00> : vector<128x32xf32>
    %77 = tpu.matmul %74, %76, %cst_35 {dimension_numbers = #tpu.dot_dimension_numbers<[1], [0], [0], [1], [0, 0, 1, 1], [], []>} : vector<128x8xf32>, vector<8x32xf32>, vector<128x32xf32> -> vector<128x32xf32>
    %78 = arith.addf %53, %77 : vector<128x32xf32>
    %79 = vector.extract_strided_slice %29 {offsets = [0, 0, 16], sizes = [8, 16, 8], strides = [1, 1, 1]} : vector<8x16x96xf32> to vector<8x16x8xf32>
    %80 = vector.extract_strided_slice %29 {offsets = [0, 0, 48], sizes = [8, 16, 8], strides = [1, 1, 1]} : vector<8x16x96xf32> to vector<8x16x8xf32>
    %81 = vector.extract_strided_slice %29 {offsets = [0, 0, 80], sizes = [8, 16, 8], strides = [1, 1, 1]} : vector<8x16x96xf32> to vector<8x16x8xf32>
    "tpu.trace_start"() <{level = 10 : i32, message = "wld,wmd->wlm"}> : () -> ()
    %cst_36 = arith.constant dense<0.000000e+00> : vector<8x16x16xf32>
    %82 = tpu.matmul %79, %80, %cst_36 {dimension_numbers = #tpu.dot_dimension_numbers<[2], [2], [1], [1], [0, 0, 0, 1, 1, 1], [0], [0]>} : vector<8x16x8xf32>, vector<8x16x8xf32>, vector<8x16x16xf32> -> vector<8x16x16xf32>
    "tpu.trace_stop"() : () -> ()
    %c2 = arith.constant 2 : index
    %c0_37 = arith.constant 0 : index
    %c0_38 = arith.constant 0 : index
    %83 = vector.load %arg6[%c2, %c0_37, %c0_38] : memref<4x16x16xf32, #tpu.memory_space<vmem>>, vector<1x16x16xf32>
    %84 = vector.shape_cast %83 : vector<1x16x16xf32> to vector<16x16xf32>
    %85 = vector.shape_cast %84 : vector<16x16xf32> to vector<1x16x16xf32>
    %86 = vector.broadcast %85 : vector<1x16x16xf32> to vector<8x16x16xf32>
    %87 = arith.addf %82, %86 : vector<8x16x16xf32>
    %cst_39 = arith.constant dense<0xFF800000> : vector<8x16xf32>
    %88 = vector.multi_reduction <maximumf>, %87, %cst_39 [2] : vector<8x16x16xf32> to vector<8x16xf32>
    %89 = vector.shape_cast %88 : vector<8x16xf32> to vector<8x16x1xf32>
    %90 = vector.broadcast %89 : vector<8x16x1xf32> to vector<8x16x16xf32>
    %91 = arith.subf %87, %90 : vector<8x16x16xf32>
    %92 = math.exp %91 : vector<8x16x16xf32>
    %cst_40 = arith.constant dense<0.000000e+00> : vector<8x16xf32>
    %93 = vector.multi_reduction <add>, %92, %cst_40 [2] : vector<8x16x16xf32> to vector<8x16xf32>
    %94 = vector.shape_cast %93 : vector<8x16xf32> to vector<8x16x1xf32>
    "tpu.trace_start"() <{level = 10 : i32, message = "wlm,wmd->wld"}> : () -> ()
    %cst_41 = arith.constant dense<0.000000e+00> : vector<8x16x8xf32>
    %95 = tpu.matmul %92, %81, %cst_41 {dimension_numbers = #tpu.dot_dimension_numbers<[2], [1], [1], [2], [0, 0, 0, 1, 1, 2], [0], [0]>} : vector<8x16x16xf32>, vector<8x16x8xf32>, vector<8x16x8xf32> -> vector<8x16x8xf32>
    "tpu.trace_stop"() : () -> ()
    %96 = tpu.reciprocal %94 {approx = true} : vector<8x16x1xf32> -> vector<8x16x1xf32>
    %97 = vector.broadcast %96 : vector<8x16x1xf32> to vector<8x16x8xf32>
    %98 = arith.mulf %95, %97 : vector<8x16x8xf32>
    %99 = vector.shape_cast %98 : vector<8x16x8xf32> to vector<128x8xf32>
    %c2_42 = arith.constant 2 : index
    %c0_43 = arith.constant 0 : index
    %c0_44 = arith.constant 0 : index
    %100 = vector.load %arg7[%c2_42, %c0_43, %c0_44] : memref<4x8x32xf32, #tpu.memory_space<vmem>>, vector<1x8x32xf32>
    %101 = vector.shape_cast %100 : vector<1x8x32xf32> to vector<8x32xf32>
    %cst_45 = arith.constant dense<0.000000e+00> : vector<128x32xf32>
    %102 = tpu.matmul %99, %101, %cst_45 {dimension_numbers = #tpu.dot_dimension_numbers<[1], [0], [0], [1], [0, 0, 1, 1], [], []>} : vector<128x8xf32>, vector<8x32xf32>, vector<128x32xf32> -> vector<128x32xf32>
    %103 = arith.addf %78, %102 : vector<128x32xf32>
    %104 = vector.extract_strided_slice %29 {offsets = [0, 0, 24], sizes = [8, 16, 8], strides = [1, 1, 1]} : vector<8x16x96xf32> to vector<8x16x8xf32>
    %105 = vector.extract_strided_slice %29 {offsets = [0, 0, 56], sizes = [8, 16, 8], strides = [1, 1, 1]} : vector<8x16x96xf32> to vector<8x16x8xf32>
    %106 = vector.extract_strided_slice %29 {offsets = [0, 0, 88], sizes = [8, 16, 8], strides = [1, 1, 1]} : vector<8x16x96xf32> to vector<8x16x8xf32>
    "tpu.trace_start"() <{level = 10 : i32, message = "wld,wmd->wlm"}> : () -> ()
    %cst_46 = arith.constant dense<0.000000e+00> : vector<8x16x16xf32>
    %107 = tpu.matmul %104, %105, %cst_46 {dimension_numbers = #tpu.dot_dimension_numbers<[2], [2], [1], [1], [0, 0, 0, 1, 1, 1], [0], [0]>} : vector<8x16x8xf32>, vector<8x16x8xf32>, vector<8x16x16xf32> -> vector<8x16x16xf32>
    "tpu.trace_stop"() : () -> ()
    %c3 = arith.constant 3 : index
    %c0_47 = arith.constant 0 : index
    %c0_48 = arith.constant 0 : index
    %108 = vector.load %arg6[%c3, %c0_47, %c0_48] : memref<4x16x16xf32, #tpu.memory_space<vmem>>, vector<1x16x16xf32>
    %109 = vector.shape_cast %108 : vector<1x16x16xf32> to vector<16x16xf32>
    %110 = vector.shape_cast %109 : vector<16x16xf32> to vector<1x16x16xf32>
    %111 = vector.broadcast %110 : vector<1x16x16xf32> to vector<8x16x16xf32>
    %112 = arith.addf %107, %111 : vector<8x16x16xf32>
    %cst_49 = arith.constant dense<0xFF800000> : vector<8x16xf32>
    %113 = vector.multi_reduction <maximumf>, %112, %cst_49 [2] : vector<8x16x16xf32> to vector<8x16xf32>
    %114 = vector.shape_cast %113 : vector<8x16xf32> to vector<8x16x1xf32>
    %115 = vector.broadcast %114 : vector<8x16x1xf32> to vector<8x16x16xf32>
    %116 = arith.subf %112, %115 : vector<8x16x16xf32>
    %117 = math.exp %116 : vector<8x16x16xf32>
    %cst_50 = arith.constant dense<0.000000e+00> : vector<8x16xf32>
    %118 = vector.multi_reduction <add>, %117, %cst_50 [2] : vector<8x16x16xf32> to vector<8x16xf32>
    %119 = vector.shape_cast %118 : vector<8x16xf32> to vector<8x16x1xf32>
    "tpu.trace_start"() <{level = 10 : i32, message = "wlm,wmd->wld"}> : () -> ()
    %cst_51 = arith.constant dense<0.000000e+00> : vector<8x16x8xf32>
    %120 = tpu.matmul %117, %106, %cst_51 {dimension_numbers = #tpu.dot_dimension_numbers<[2], [1], [1], [2], [0, 0, 0, 1, 1, 2], [0], [0]>} : vector<8x16x16xf32>, vector<8x16x8xf32>, vector<8x16x8xf32> -> vector<8x16x8xf32>
    "tpu.trace_stop"() : () -> ()
    %121 = tpu.reciprocal %119 {approx = true} : vector<8x16x1xf32> -> vector<8x16x1xf32>
    %122 = vector.broadcast %121 : vector<8x16x1xf32> to vector<8x16x8xf32>
    %123 = arith.mulf %120, %122 : vector<8x16x8xf32>
    %124 = vector.shape_cast %123 : vector<8x16x8xf32> to vector<128x8xf32>
    %c3_52 = arith.constant 3 : index
    %c0_53 = arith.constant 0 : index
    %c0_54 = arith.constant 0 : index
    %125 = vector.load %arg7[%c3_52, %c0_53, %c0_54] : memref<4x8x32xf32, #tpu.memory_space<vmem>>, vector<1x8x32xf32>
    %126 = vector.shape_cast %125 : vector<1x8x32xf32> to vector<8x32xf32>
    %cst_55 = arith.constant dense<0.000000e+00> : vector<128x32xf32>
    %127 = tpu.matmul %124, %126, %cst_55 {dimension_numbers = #tpu.dot_dimension_numbers<[1], [0], [0], [1], [0, 0, 1, 1], [], []>} : vector<128x8xf32>, vector<8x32xf32>, vector<128x32xf32> -> vector<128x32xf32>
    %128 = arith.addf %103, %127 : vector<128x32xf32>
    %129 = arith.addf %1, %128 : vector<128x32xf32>
    %c0_56 = arith.constant 0 : index
    %c0_57 = arith.constant 0 : index
    %130 = vector.load %arg8[%c0_56, %c0_57] : memref<1x32xf32, #tpu.memory_space<vmem>>, vector<1x32xf32>
    %131 = vector.broadcast %130 : vector<1x32xf32> to vector<128x32xf32>
    %132 = arith.addf %129, %131 : vector<128x32xf32>
    %c0_58 = arith.constant 0 : index
    %c0_59 = arith.constant 0 : index
    %133 = vector.load %arg9[%c0_58, %c0_59] : memref<1x32xf32, #tpu.memory_space<vmem>>, vector<1x32xf32>
    %c0_60 = arith.constant 0 : index
    %c0_61 = arith.constant 0 : index
    %134 = vector.load %arg10[%c0_60, %c0_61] : memref<1x32xf32, #tpu.memory_space<vmem>>, vector<1x32xf32>
    %cst_62 = arith.constant dense<0.000000e+00> : vector<128xf32>
    %135 = vector.multi_reduction <add>, %132, %cst_62 [1] : vector<128x32xf32> to vector<128xf32>
    %136 = vector.shape_cast %135 : vector<128xf32> to vector<128x1xf32>
    %cst_63 = arith.constant 3.200000e+01 : f32
    %137 = vector.broadcast %cst_63 : f32 to vector<128x1xf32>
    %138 = arith.divf %136, %137 : vector<128x1xf32>
    %139 = vector.broadcast %138 : vector<128x1xf32> to vector<128x32xf32>
    %140 = arith.subf %132, %139 : vector<128x32xf32>
    %141 = arith.mulf %140, %140 : vector<128x32xf32>
    %cst_64 = arith.constant dense<0.000000e+00> : vector<128xf32>
    %142 = vector.multi_reduction <add>, %141, %cst_64 [1] : vector<128x32xf32> to vector<128xf32>
    %143 = vector.shape_cast %142 : vector<128xf32> to vector<128x1xf32>
    %cst_65 = arith.constant 3.200000e+01 : f32
    %144 = vector.broadcast %cst_65 : f32 to vector<128x1xf32>
    %145 = arith.divf %143, %144 : vector<128x1xf32>
    %cst_66 = arith.constant 9.99999974E-6 : f32
    %146 = vector.broadcast %cst_66 : f32 to vector<128x1xf32>
    %147 = arith.addf %145, %146 : vector<128x1xf32>
    %148 = math.rsqrt %147 : vector<128x1xf32>
    %149 = vector.broadcast %148 : vector<128x1xf32> to vector<128x32xf32>
    %150 = arith.mulf %140, %149 : vector<128x32xf32>
    %151 = vector.broadcast %133 : vector<1x32xf32> to vector<128x32xf32>
    %152 = arith.mulf %150, %151 : vector<128x32xf32>
    %153 = vector.broadcast %134 : vector<1x32xf32> to vector<128x32xf32>
    %154 = arith.addf %152, %153 : vector<128x32xf32>
    %c0_67 = arith.constant 0 : index
    %c0_68 = arith.constant 0 : index
    %155 = vector.load %arg11[%c0_67, %c0_68] : memref<32x128xf32, #tpu.memory_space<vmem>>, vector<32x128xf32>
    %cst_69 = arith.constant dense<0.000000e+00> : vector<128x128xf32>
    %156 = tpu.matmul %154, %155, %cst_69 {dimension_numbers = #tpu.dot_dimension_numbers<[1], [0], [0], [1], [0, 0, 1, 1], [], []>} : vector<128x32xf32>, vector<32x128xf32>, vector<128x128xf32> -> vector<128x128xf32>
    %c0_70 = arith.constant 0 : index
    %c0_71 = arith.constant 0 : index
    %157 = vector.load %arg12[%c0_70, %c0_71] : memref<1x128xf32, #tpu.memory_space<vmem>>, vector<1x128xf32>
    %158 = vector.broadcast %157 : vector<1x128xf32> to vector<128x128xf32>
    %159 = arith.addf %156, %158 : vector<128x128xf32>
    %cst_72 = arith.constant 0.000000e+00 : f32
    %160 = vector.broadcast %cst_72 : f32 to vector<128x128xf32>
    %161 = arith.maximumf %159, %160 : vector<128x128xf32>
    %c0_73 = arith.constant 0 : index
    %c0_74 = arith.constant 0 : index
    %162 = vector.load %arg13[%c0_73, %c0_74] : memref<128x32xf32, #tpu.memory_space<vmem>>, vector<128x32xf32>
    %cst_75 = arith.constant dense<0.000000e+00> : vector<128x32xf32>
    %163 = tpu.matmul %161, %162, %cst_75 {dimension_numbers = #tpu.dot_dimension_numbers<[1], [0], [0], [1], [0, 0, 1, 1], [], []>} : vector<128x128xf32>, vector<128x32xf32>, vector<128x32xf32> -> vector<128x32xf32>
    %c0_76 = arith.constant 0 : index
    %c0_77 = arith.constant 0 : index
    %164 = vector.load %arg14[%c0_76, %c0_77] : memref<1x32xf32, #tpu.memory_space<vmem>>, vector<1x32xf32>
    %165 = vector.broadcast %164 : vector<1x32xf32> to vector<128x32xf32>
    %166 = arith.addf %163, %165 : vector<128x32xf32>
    %167 = arith.addf %132, %166 : vector<128x32xf32>
    %168 = vector.shape_cast %167 : vector<128x32xf32> to vector<8x16x32xf32>
    %c0_78 = arith.constant 0 : index
    %c0_79 = arith.constant 0 : index
    %c0_80 = arith.constant 0 : index
    %169 = vector.load %arg15[%c0_78, %c0_79, %c0_80] : memref<8x16x32xf32, #tpu.memory_space<vmem>>, vector<8x16x32xf32>
    tpu.vector_store %arg15[%c0_78, %c0_79, %c0_80], %168 {strides = array<i32>} : memref<8x16x32xf32, #tpu.memory_space<vmem>>, vector<8x16x32xf32>,
    return
  }
  func.func @transform_0(%arg0: i32) -> (i32, i32, i32) {
    %c0_i32 = arith.constant 0 : i32
    %c0_i32_0 = arith.constant 0 : i32
    %c0_i32_1 = arith.constant 0 : i32
    return %arg0, %c0_i32, %c0_i32_0 : i32, i32, i32
  }
  func.func @transform_1(%arg0: i32) -> (i32, i32) {
    %c0_i32 = arith.constant 0 : i32
    %c0_i32_0 = arith.constant 0 : i32
    %c0_i32_1 = arith.constant 0 : i32
    return %c0_i32, %c0_i32_0 : i32, i32
  }
  func.func @transform_2(%arg0: i32) -> (i32, i32) {
    %c0_i32 = arith.constant 0 : i32
    %c0_i32_0 = arith.constant 0 : i32
    %c0_i32_1 = arith.constant 0 : i32
    return %c0_i32, %c0_i32_0 : i32, i32
  }
  func.func @transform_3(%arg0: i32) -> (i32, i32) {
    %c0_i32 = arith.constant 0 : i32
    %c0_i32_0 = arith.constant 0 : i32
    %c0_i32_1 = arith.constant 0 : i32
    return %c0_i32, %c0_i32_0 : i32, i32
  }
  func.func @transform_4(%arg0: i32) -> (i32, i32) {
    %c0_i32 = arith.constant 0 : i32
    %c0_i32_0 = arith.constant 0 : i32
    %c0_i32_1 = arith.constant 0 : i32
    return %c0_i32, %c0_i32_0 : i32, i32
  }
  func.func @transform_5(%arg0: i32) -> (i32, i32, i32) {
    %c0_i32 = arith.constant 0 : i32
    %c0_i32_0 = arith.constant 0 : i32
    %c0_i32_1 = arith.constant 0 : i32
    %c0_i32_2 = arith.constant 0 : i32
    return %c0_i32, %c0_i32_0, %c0_i32_1 : i32, i32, i32
  }
  func.func @transform_6(%arg0: i32) -> (i32, i32, i32) {
    %c0_i32 = arith.constant 0 : i32
    %c0_i32_0 = arith.constant 0 : i32
    %c0_i32_1 = arith.constant 0 : i32
    %c0_i32_2 = arith.constant 0 : i32
    return %c0_i32, %c0_i32_0, %c0_i32_1 : i32, i32, i32
  }
  func.func @transform_7(%arg0: i32) -> (i32, i32) {
    %c0_i32 = arith.constant 0 : i32
    %c0_i32_0 = arith.constant 0 : i32
    %c0_i32_1 = arith.constant 0 : i32
    return %c0_i32, %c0_i32_0 : i32, i32
  }
  func.func @transform_8(%arg0: i32) -> (i32, i32) {
    %c0_i32 = arith.constant 0 : i32
    %c0_i32_0 = arith.constant 0 : i32
    %c0_i32_1 = arith.constant 0 : i32
    return %c0_i32, %c0_i32_0 : i32, i32
  }
  func.func @transform_9(%arg0: i32) -> (i32, i32) {
    %c0_i32 = arith.constant 0 : i32
    %c0_i32_0 = arith.constant 0 : i32
    %c0_i32_1 = arith.constant 0 : i32
    return %c0_i32, %c0_i32_0 : i32, i32
  }
  func.func @transform_10(%arg0: i32) -> (i32, i32) {
    %c0_i32 = arith.constant 0 : i32
    %c0_i32_0 = arith.constant 0 : i32
    %c0_i32_1 = arith.constant 0 : i32
    return %c0_i32, %c0_i32_0 : i32, i32
  }
  func.func @transform_11(%arg0: i32) -> (i32, i32) {
    %c0_i32 = arith.constant 0 : i32
    %c0_i32_0 = arith.constant 0 : i32
    %c0_i32_1 = arith.constant 0 : i32
    return %c0_i32, %c0_i32_0 : i32, i32
  }
  func.func @transform_12(%arg0: i32) -> (i32, i32) {
    %c0_i32 = arith.constant 0 : i32
    %c0_i32_0 = arith.constant 0 : i32
    %c0_i32_1 = arith.constant 0 : i32
    return %c0_i32, %c0_i32_0 : i32, i32
  }
  func.func @transform_13(%arg0: i32) -> (i32, i32) {
    %c0_i32 = arith.constant 0 : i32
    %c0_i32_0 = arith.constant 0 : i32
    %c0_i32_1 = arith.constant 0 : i32
    return %c0_i32, %c0_i32_0 : i32, i32
  }
  func.func @transform_14(%arg0: i32) -> (i32, i32, i32) {
    %c0_i32 = arith.constant 0 : i32
    %c0_i32_0 = arith.constant 0 : i32
    %c0_i32_1 = arith.constant 0 : i32
    return %arg0, %c0_i32, %c0_i32_0 : i32, i32, i32
  }
}

</mosaic_0001>

<bundles_post_ra>
// kernel: relative_transformer_layer_pallas.1
= control target key start
LH: loop header
LB: loop body
LE: loop exit
PB: predicated region body
PF: predicated region fallthrough
CT: control target
= control target key end

     0   :  { %s14201_s0 = inlined_call_operand.hbm [shape: f32[16,16,32], index: 0, kind: input, shape index: {}]   ;;  %s14202_s1 = inlined_call_operand.vmem [shape: f32[1,32], index: 1, kind: input, shape index: {}]   ;;  %s14203_s2 = inlined_call_operand.vmem [shape: f32[1,32], index: 2, kind: input, shape index: {}]   ;;  %s14204_s3 = inlined_call_operand.vmem [shape: f32[32,96], index: 3, kind: input, shape index: {}]   ;;  %s14205_s4 = inlined_call_operand.vmem [shape: f32[1,96], index: 4, kind: input, shape index: {}]   ;;  %s14206_s5 = inlined_call_operand.vmem [shape: f32[4,16,16], index: 5, kind: input, shape index: {}]   ;;  %s14207_s6 = inlined_call_operand.vmem [shape: f32[4,8,32], index: 6, kind: input, shape index: {}]   ;;  %s14208_s7 = inlined_call_operand.vmem [shape: f32[1,32], index: 7, kind: input, shape index: {}]   ;;  %s14209_s8 = inlined_call_operand.vmem [shape: f32[1,32], index: 8, kind: input, shape index: {}]   ;;  %s14210_s9 = inlined_call_operand.vmem [shape: f32[1,32], index: 9, kind: input, shape index: {}]   ;;  %s14211_s10 = inlined_call_operand.vmem [shape: f32[32,128], index: 10, kind: input, shape index: {}]   ;;  %s14212_s11 = inlined_call_operand.hbm [shape: f32[1,128], index: 11, kind: input, shape index: {}]   ;;  %s14213_s12 = inlined_call_operand.vmem [shape: f32[128,32], index: 12, kind: input, shape index: {}]   ;;  %s14214_s13 = inlined_call_operand.vmem [shape: f32[1,32], index: 13, kind: input, shape index: {}]   ;;  %s14215_s14 = inlined_call_operand.hbm [shape: f32[16,16,32], index: 14, kind: output, shape index: {}]  }
   0x1   :  { %14262 = sst [smem:[#allocation59_spill]] %s14209_s8 }
   0x2   :  { %14263 = sst [smem:[#allocation60_spill]] %s14210_s9 }
   0x3   :  { %14264 = sst [smem:[#allocation61_spill]] %s14214_s13 }
   0x4   :  { %14265 = sst [smem:[#allocation62_spill]] %s14215_s14 }
   0x5   :  { %19 = vsyncpa [#allocation3], 0 }
   0x6   :  { %21 = vsyncpa [#allocation3 + $0x1], 0 }
   0x7   :  { %22 = vsyncpa [#allocation6], 0 }
   0x8   :  { %23 = vsyncpa [#allocation4], 0 }
   0x9   :  { %25 = vsyncpa [#allocation4 + $0x1], 0  ;;  %s11763_s29 = smov 0   ;;  %s11765_s30 = smov 0  }
   0xa   :  { %s11767_s15 = smov 0   ;;  %s11769_s16 = smov 0  }
   0xb LB: > { %14266 = sst [smem:[#allocation11_spill]] %s11656_s29  ;;  %s11784_s17 = sadd.s32 4294967295, %s11668_s16   ;;  %s11668_s16 = sphi %s11769_s16, %s14381_s16   ;;  %s11664_s15 = sphi %s11767_s15, %s14383_s15   ;;  %s11660_s30 = sphi %s11765_s30, %s14385_s30   ;;  %s11656_s29 = sphi %s11763_s29, %s14384_s29  }
   0xc   : > { %14267 = sst [smem:[#allocation12_spill]] %s11664_s15  ;;  %s8997_s18 = sadd.s32 4294967294, %s11668_s16  }
   0xd   : > { %s11788_s19 = sadd.s32 1, %s11668_s16   ;;  %s38_s20 = sadd.s32 1, %s11664_s15 }
   0xe   : > { %14268 = sst [smem:[#allocation13_spill]] %s11788_s19  ;;  %s35_s21 = ssub.s32 %s11668_s16, %s11788_s19 }
   0xf   : > { %p45_p0 = scmp.ne.s32.totalorder %s11664_s15, %s11660_s30  ;;  %p36_p1 = scmp.eq.s32.totalorder %s35_s21, 0 }
  0x10   : > { %p46_p2 = scmp.eq.s32.totalorder %s11668_s16, 0  ;;  %p51_p3 = scmp.ne.s32.totalorder %s11660_s30, %s11656_s29 }
  0x11   : > { %p14216_p4 = scmp.eq.s32.totalorder %s11784_s17, 0  ;;  %p348_p7 = scmp.eq.s32.totalorder %s11784_s17, 1 }
  0x12   : > { %s11800_s22 = scalar_select %p36_p1, %s11664_s15, %s38_s20  }
  0x13   : > { %p11802_p5 = por %p46_p2, %p45_p0  ;;  %p11808_p6 = por %p14216_p4, %p51_p3 }
  0x14   : > { %14269 = sst [smem:[#allocation14_spill]] %s11800_s22  ;;  %p354_p8 = scmp.eq.s32.totalorder %s8997_s18, 1 }
  0x15   : > { %s14271_s24 = scalar_select %p11808_p6, 1, 0 }
  0x16   : > { %p8998_p9 = scmp.ge.s32.totalorder %s11668_s16, 1  ;;  %p361_p10 = scmp.lt.s32.totalorder %s11668_s16, 3 }
  0x17   : > { %p11815_p11 = por %p348_p7, %p45_p0  ;;  %p11819_p12 = por %p354_p8, %p51_p3 }
  0x18   : > { %p11823_p13 = pnand %p8998_p9, %p361_p10  ;;  %s11670_s28 = smov [#allocation5]  }
  0x19   : > { %s14272_s25 = scalar_select %p11815_p11, 1, 0 }
  0x1a   : > { %s14274_s26 = scalar_select %p11819_p12, 1, 0 }
  0x1b   : > { %14273 = sst [smem:[#allocation15_spill]] %s14272_s25  ;;  %p10820_p2 = pneg %p11823_p13 }
  0x1c   : > { %14275 = sst [smem:[#allocation16_spill]] %s14274_s26  ;;  %s404_s18 = sshll.u32 %s11670_s28, 4  ;;  %s405_s18 = int_to_ptr.vmem [resolvable:$true] %s404_s18 }
  0x1d   : > { %s14276_s27 = scalar_select %p11823_p13, 1, 0 }
  0x1e   : > { %p10833_p4 = scmp.lt.s32.totalorder %s11668_s16, 2  ;;  %p14277_p0 = scmp.eq.s32.totalorder %s11784_s17, 0 }
  0x1f   : > { %s421_s21 = sand.u32 1, %s11664_s15   ;;  %s11540_s14 = scalar_lea.hbm %s14212_s11, 16 }
  0x20   : > { %p11833_p7 = pnand %p10820_p2, %p14277_p0  ;;  %p11840_p3 = pnand %p10833_p4, %p11802_p5 }
  0x21   : > { %s9001_s19 = sshll.u32 %s421_s21, 7  ;;  %p11541_p8 = scmp.ne.s32.totalorder %s14212_s11, %s11540_s14 }
  0x22   : > { %s14279_s22 = scalar_select %p11840_p3, 1, 0 }
  0x23   : > { %p11542_p9 = pneg %p11833_p7  ;;  %p11547_p4 = scmp.lt.u32.totalorder %s11540_s14, %s14212_s11 }
  0x25   : > { %p11543_p10 = pnand %p11542_p9, %p11541_p8 }
  0x27   : > { %p11544_p2 = pneg %p11543_p10 }
  0x29   : > { %p11549_p5 = pnand %p11547_p4, %p11544_p2 }
  0x2b   : > { %11552 = shalt.err (!%p11549_p5)
}
  0x2c   : > { %s11553_s23 = scalar_lea.vmem %s405_s18, 16  ;;  %s11560_s29 = scalar_lea.vmem %s405_s18, 32 }
  0x2d   : > { %p11554_p0 = scmp.ne.s32.totalorder %s405_s18, %s11553_s23  ;;  %p11561_p11 = scmp.lt.s32.totalorder %s405_s18, %s405_s18 }
  0x2e   : > { %p11562_p6 = scmp.lt.s32.totalorder %s11560_s29, %s11553_s23 }
  0x2f   : > { %p11556_p1 = pnand %p11554_p0, %p11542_p9 }
  0x30   : > { %p11563_p13 = por %p11562_p6, %p11561_p11 }
  0x31   : > { %p11557_p12 = pneg %p11556_p1 }
  0x33   : > { %p11564_p3 = pnand %p11563_p13, %p11557_p12 }
  0x35   : > { %11567 = shalt.err (!%p11564_p3)
}
  0x36   : > { %10823 = dma.hbm_to_vmem [thread:$0]  (!%p11833_p7), %s14212_s11, 16, %s405_s18, [#allocation6]  }
  0x37   : > { %s9321_s13 = sshll.u32 %s11668_s16, 11  ;;  %s425_s14 = scalar_lea.vmem [#allocation2], %s9001_s19 }
  0x38   : > { %s433_s15 = sshll.u32 %s425_s14, 4  ;;  %s11864_s8 = scalar_lea.hbm %s14201_s0, %s9321_s13  ;;  %s11866_s15 = int_to_ptr.vmem [resolvable:$true] %s433_s15 }
  0x39   : > { %s11868_s20 = scalar_lea.sflag [#allocation3], %s421_s21  ;;  %s11568_s23 = scalar_lea.hbm %s11864_s8, 2048 }
  0x3a   : > { %p11569_p6 = scmp.ne.s32.totalorder %s11864_s8, %s11568_s23  ;;  %p14280_p11 = scmp.ne.s32.totalorder %s14279_s22, 0 }
  0x3b   : > { %s11573_s18 = scalar_lea.hbm %s14201_s0, 4096  ;;  %p11574_p7 = scmp.lt.u32.totalorder %s11864_s8, %s14201_s0 }
  0x3c   : > { %p11570_p12 = pneg %p14280_p11  ;;  %p11575_p3 = scmp.lt.u32.totalorder %s11573_s18, %s11568_s23 }
  0x3d   : > { %p11577_p9 = scmp.lt.u32.totalorder %s11568_s23, %s11864_s8 }
  0x3e   : > { %p11571_p13 = pnand %p11570_p12, %p11569_p6  ;;  %p11576_p8 = por %p11575_p3, %p11574_p7 }
  0x40   : > { %p11572_p1 = pneg %p11571_p13  ;;  %p11578_p10 = por %p11577_p9, %p11576_p8 }
  0x42   : > { %p11579_p2 = pnand %p11578_p10, %p11572_p1 }
  0x44   : > { %11582 = shalt.err (!%p11579_p2)
}
  0x45   : > { %s11583_s21 = scalar_lea.vmem %s11866_s15, 2048  ;;  %s11671_s26 = smov [#allocation2]  }
  0x46   : > { %p11584_p4 = scmp.ne.s32.totalorder %s11866_s15, %s11583_s21  ;;  %s11588_s13 = sshll.u32 %s11671_s26, 4  ;;  %s11589_s13 = int_to_ptr.vmem [resolvable:$false] %s11588_s13 }
  0x47   : > { %s11590_s14 = scalar_lea.vmem %s11589_s13, 4096  ;;  %p11591_p6 = scmp.lt.s32.totalorder %s11866_s15, %s11589_s13 }
  0x48   : > { %p11586_p5 = pnand %p11584_p4, %p11570_p12  ;;  %p11592_p13 = scmp.lt.s32.totalorder %s11590_s14, %s11583_s21 }
  0x4a   : > { %p11587_p0 = pneg %p11586_p5  ;;  %p11593_p7 = por %p11592_p13, %p11591_p6 }
  0x4c   : > { %p11594_p3 = pnand %p11593_p7, %p11587_p0 }
  0x4e   : > { %11597 = shalt.err (!%p11594_p3)
}
  0x4f   : > { %s11672_s28 = smov 128   ;;  %s11673_s23 = smov 8  }
  0x50   : > { %10827 = dma.hbm_to_vmem [thread:$0]  (!%p14280_p11), %s11864_s8, 2048, %s11866_s15, %s11868_s20, %s11672_s28, %s11672_s28, %s11673_s23  }
  0x51   : > { %p14281_p12 = scmp.ne.s32.totalorder %s14276_s27, 0 }
  0x53   : > { %445 = sbr.rel (%p14281_p12) target bundleno = 4020 (0xfb4), region = 76 }
  0x5a   : > { %s11899_s19 = sand.u32 1, %s11660_s30   ;;  %p14282_p1 = scmp.ne.s32.totalorder %s14271_s24, 0 }
  0x5b   : > { %s9006_s9 = sshll.u32 %s11899_s19, 7  ;;  %s448_s18 = scalar_lea.sflag [#allocation3], %s11899_s19 }
  0x5c   : > { %s11905_s29 = scalar_lea.vmem [#allocation2], %s9006_s9 }
  0x5d   : > { %11643 = dma.done.wait (%p14282_p1), %s448_s18, 2048  }
  0x5e   : > { %11645 = vsyncadd (%p14282_p1), %s448_s18, 4294965248  ;;  %p14283_p11 = scmp.eq.s32.totalorder %s11784_s17, 0 }
  0x60   : > { %11647 = dma.done.wait (%p14283_p11), [#allocation6], 16   ;;  %p14284_p8 = pmov %p14283_p11 }
  0x61   : > { %vm520_vm0 = vcmask 261120   ;;  %v502_v0 = vld [vmem:[%s11905_s29] sm:$0xff]  ;;  %v504_v1 = vld [vmem:[%s11905_s29 + $0x10] sm:$0xff]  ;;  %v503_v2 = vld [vmem:[%s11905_s29 + $0x8] sm:$0xff]  ;;  %vm986_vm1 = vcmask 64512   ;;  %s11674_s8 = smov 96  }
  0x62   : > { %11649 = vsyncadd (%p14284_p8), [#allocation6], 4294967280  ;;  %v521_v3 = vsel %vm520_vm0, %v502_v0, 0.0  ;;  %v527_v4 = vsel %vm520_vm0, %v504_v1, 0.0  ;;  %v505_v5 = vld [vmem:[%s11905_s29 + $0x18] sm:$0xff]  ;;  %v524_v6 = vsel %vm520_vm0, %v503_v2, 0.0 }
  0x63   : > { %522 = vadd.xlane.f32.xlu0 %v521_v3  ;;  %528 = vadd.xlane.f32.xlu1 %v527_v4  ;;  %v530_v7 = vsel %vm520_vm0, %v505_v5, 0.0  ;;  %v506_v8 = vld [vmem:[%s11905_s29 + $0x20] sm:$0xff]  ;;  %v507_v9 = vld [vmem:[%s11905_s29 + $0x28] sm:$0xff]  ;;  %v11928_v12 = vld [vmem:[%s11905_s29 + $0x30] sm:$0xff]  ;;  %s11675_s22 = smov 64   ;;  %s11676_s24 = smov 88  }
  0x64   : > { %v533_v10 = vsel %vm520_vm0, %v506_v8, 0.0  ;;  %v536_v11 = vsel %vm520_vm0, %v507_v9, 0.0  ;;  %v11931_v13 = vld [vmem:[%s11905_s29 + $0x38] sm:$0xff]  ;;  %v539_v14 = vsel %vm520_vm0, %v11928_v12, 0.0  ;;  %v11938_v16 = vld [vmem:[%s11905_s29 + $0x40] sm:$0xff]  ;;  %v11941_v17 = vld [vmem:[%s11905_s29 + $0x48] sm:$0xff] }
  0x65   : > { %v542_v15 = vsel %vm520_vm0, %v11931_v13, 0.0  ;;  %v545_v18 = vsel %vm520_vm0, %v11938_v16, 0.0  ;;  %v548_v19 = vsel %vm520_vm0, %v11941_v17, 0.0  ;;  %v11948_v20 = vld [vmem:[%s11905_s29 + $0x50] sm:$0xff]  ;;  %v11951_v21 = vld [vmem:[%s11905_s29 + $0x58] sm:$0xff]  ;;  %v11958_v24 = vld [vmem:[%s11905_s29 + $0x60] sm:$0xff] }
  0x66   : > { %v551_v22 = vsel %vm520_vm0, %v11948_v20, 0.0  ;;  %v554_v23 = vsel %vm520_vm0, %v11951_v21, 0.0  ;;  %v11961_v25 = vld [vmem:[%s11905_s29 + $0x68] sm:$0xff]  ;;  %v557_v26 = vsel %vm520_vm0, %v11958_v24, 0.0  ;;  %v11968_v28 = vld [vmem:[%s11905_s29 + $0x70] sm:$0xff]  ;;  %v11971_v29 = vld [vmem:[%s11905_s29 + $0x78] sm:$0xff] }
  0x67   : > { %525 = vadd.xlane.f32.xlu0 %v524_v6  ;;  %531 = vadd.xlane.f32.xlu1 %v530_v7  ;;  %v560_v27 = vsel %vm520_vm0, %v11961_v25, 0.0  ;;  %v563_v30 = vsel %vm520_vm0, %v11968_v28, 0.0  ;;  %v566_v31 = vsel %vm520_vm0, %v11971_v29, 0.0  ;;  %s11677_s27 = smov 120   ;;  %vm12268_vm2 = vmpackc.low %vm986_vm1, %vm986_vm1  ;;  %vm1693_vm3 = vcmask 130048   ;;  %s11678_s26 = smov 56  }
  0x68   : > { %s11679_s13 = smov 80   ;;  %s11680_s14 = smov 112  }
  0x69   : > { %s11683_s28 = smov 104   ;;  %s11684_s15 = smov 40  }
  0x6a   : > { %s14372_s20 = sld [smem:[#allocation60_spill]]  ;;  %s14088_s23 = scalar_lea.vmem [#allocation7], %s9006_s9 }
  0x6b   : > { %534 = vadd.xlane.f32.xlu0 %v533_v10  ;;  %537 = vadd.xlane.f32.xlu1 %v536_v11  ;;  %s14374_s9 = sld [smem:[#allocation15_spill]]  ;;  %s9323_s18 = sshll.u32 %s11784_s17, 11 }
  0x6c   : > { %s8900_s17 = scalar_lea.sflag [#allocation4], %s11899_s19  ;;  %s11685_s25 = smov [#allocation7]  }
  0x6d   : > { %s11602_s21 = sshll.u32 %s11685_s25, 4  ;;  %s11603_s21 = int_to_ptr.vmem [resolvable:$false] %s11602_s21 }
  0x6f   : > { %540 = vadd.xlane.f32.xlu0 %v539_v14  ;;  %543 = vadd.xlane.f32.xlu1 %v542_v15 }
  0x71   : > { %p14376_p10 = scmp.ne.s32.totalorder %s14374_s9, 0 }
  0x73   : > { %546 = vadd.xlane.f32.xlu0 %v545_v18  ;;  %549 = vadd.xlane.f32.xlu1 %v548_v19 }
  0x77   : > { %552 = vadd.xlane.f32.xlu0 %v551_v22  ;;  %555 = vadd.xlane.f32.xlu1 %v554_v23 }
  0x7b   : > { %558 = vadd.xlane.f32.xlu0 %v557_v26  ;;  %561 = vadd.xlane.f32.xlu1 %v560_v27 }
  0x7f   : > { %564 = vadd.xlane.f32.xlu0 %v563_v30  ;;  %567 = vadd.xlane.f32.xlu1 %v566_v31 }
  0xf0   : > { %v523_v32 = vpop.xlane.xlu0 %522  ;;  %v529_v33 = vpop.xlane.xlu1 %528 }
  0xf1   : > { %v570_v34 = vmul.f32 0.03125, %v523_v32  ;;  %v572_v35 = vmul.f32 0.03125, %v529_v33 }
  0xf3   : > { %v11977_v36 = vsub.f32 %v502_v0, %v570_v34  ;;  %v11979_v37 = vsub.f32 %v504_v1, %v572_v35 }
  0xf4   : > { %v526_v38 = vpop.xlane.xlu0 %525  ;;  %v532_v39 = vpop.xlane.xlu1 %531 }
  0xf5   : > { %v571_v40 = vmul.f32 0.03125, %v526_v38  ;;  %v573_v41 = vmul.f32 0.03125, %v532_v39  ;;  %v602_v42 = vmul.f32 %v11977_v36, %v11977_v36  ;;  %v604_v43 = vmul.f32 %v11979_v37, %v11979_v37 }
  0xf7   : > { %v11985_v44 = vsub.f32 %v503_v2, %v571_v40  ;;  %v11987_v45 = vsub.f32 %v505_v5, %v573_v41  ;;  %v618_v46 = vsel %vm520_vm0, %v602_v42, 0.0  ;;  %v624_v49 = vsel %vm520_vm0, %v604_v43, 0.0 }
  0xf8   : > { %619 = vadd.xlane.f32.xlu0 %v618_v46  ;;  %v535_v47 = vpop.xlane.xlu0 %534  ;;  %v538_v48 = vpop.xlane.xlu1 %537 }
  0xf9   : > { %v574_v50 = vmul.f32 0.03125, %v535_v47  ;;  %v575_v51 = vmul.f32 0.03125, %v538_v48  ;;  %v603_v52 = vmul.f32 %v11985_v44, %v11985_v44  ;;  %v605_v53 = vmul.f32 %v11987_v45, %v11987_v45 }
  0xfb   : > { %v11995_v54 = vsub.f32 %v506_v8, %v574_v50  ;;  %v11997_v55 = vsub.f32 %v507_v9, %v575_v51  ;;  %v621_v56 = vsel %vm520_vm0, %v603_v52, 0.0  ;;  %v627_v59 = vsel %vm520_vm0, %v605_v53, 0.0  ;;  %v775_v53 = vld [vmem:[%s14204_s3 + $0x8] sm:$0xff] }
  0xfc   : > { %625 = vadd.xlane.f32.xlu0 %v624_v49  ;;  %622 = vadd.xlane.f32.xlu1 %v621_v56  ;;  %v541_v57 = vpop.xlane.xlu0 %540  ;;  %v544_v58 = vpop.xlane.xlu1 %543 }
  0xfd   : > { %v576_v60 = vmul.f32 0.03125, %v541_v57  ;;  %v577_v61 = vmul.f32 0.03125, %v544_v58  ;;  %v606_v62 = vmul.f32 %v11995_v54, %v11995_v54  ;;  %v607_v63 = vmul.f32 %v11997_v55, %v11997_v55  ;;  %v776_v57 = vld [vmem:[%s14204_s3 + $0x10] sm:$0xff]  ;;  %v777_v58 = vld [vmem:[%s14204_s3 + $0x18] sm:$0xff] }
  0xff   : > { %v12006_v0 = vsub.f32 %v11928_v12, %v576_v60  ;;  %v12009_v1 = vsub.f32 %v11931_v13, %v577_v61  ;;  %v630_v2 = vsel %vm520_vm0, %v606_v62, 0.0  ;;  %v633_v5 = vsel %vm520_vm0, %v607_v63, 0.0 }
 0x100   : > { %628 = vadd.xlane.f32.xlu1 %v627_v59  ;;  %631 = vadd.xlane.f32.xlu0 %v630_v2  ;;  %v547_v3 = vpop.xlane.xlu0 %546  ;;  %v550_v4 = vpop.xlane.xlu1 %549  ;;  %v10396_v59 = vpack.c.bf16 %v777_v58, %v776_v57 }
 0x101   : > { %v578_v6 = vmul.f32 0.03125, %v547_v3  ;;  %v579_v7 = vmul.f32 0.03125, %v550_v4  ;;  %v608_v8 = vmul.f32 %v12006_v0, %v12006_v0  ;;  %v609_v9 = vmul.f32 %v12009_v1, %v12009_v1 }
 0x103   : > { %v12018_v10 = vsub.f32 %v11938_v16, %v578_v6  ;;  %v12021_v11 = vsub.f32 %v11941_v17, %v579_v7  ;;  %v636_v12 = vsel %vm520_vm0, %v608_v8, 0.0  ;;  %v639_v15 = vsel %vm520_vm0, %v609_v9, 0.0 }
 0x104   : > { %634 = vadd.xlane.f32.xlu1 %v633_v5  ;;  %637 = vadd.xlane.f32.xlu0 %v636_v12  ;;  %v553_v13 = vpop.xlane.xlu0 %552  ;;  %v556_v14 = vpop.xlane.xlu1 %555 }
 0x105   : > { %v580_v18 = vmul.f32 0.03125, %v553_v13  ;;  %v581_v19 = vmul.f32 0.03125, %v556_v14  ;;  %v610_v22 = vmul.f32 %v12018_v10, %v12018_v10  ;;  %v611_v16 = vmul.f32 %v12021_v11, %v12021_v11 }
 0x107   : > { %v12030_v23 = vsub.f32 %v11948_v20, %v580_v18  ;;  %v12033_v17 = vsub.f32 %v11951_v21, %v581_v19  ;;  %v642_v26 = vsel %vm520_vm0, %v610_v22, 0.0  ;;  %v645_v31 = vsel %vm520_vm0, %v611_v16, 0.0 }
 0x108   : > { %640 = vadd.xlane.f32.xlu1 %v639_v15  ;;  %643 = vadd.xlane.f32.xlu0 %v642_v26  ;;  %v559_v27 = vpop.xlane.xlu0 %558  ;;  %v562_v30 = vpop.xlane.xlu1 %561 }
 0x109   : > { %v582_v32 = vmul.f32 0.03125, %v559_v27  ;;  %v583_v33 = vmul.f32 0.03125, %v562_v30  ;;  %v612_v34 = vmul.f32 %v12030_v23, %v12030_v23  ;;  %v613_v20 = vmul.f32 %v12033_v17, %v12033_v17  ;;  %v12082_v30 = vld [vmem:[%s14202_s1] ss:$0 sm:$0xff] }
 0x10b   : > { %v12042_v35 = vsub.f32 %v11958_v24, %v582_v32  ;;  %v12045_v21 = vsub.f32 %v11961_v25, %v583_v33  ;;  %v648_v38 = vsel %vm520_vm0, %v612_v34, 0.0  ;;  %v651_v41 = vsel %vm520_vm0, %v613_v20, 0.0 }
 0x10c   : > { %646 = vadd.xlane.f32.xlu1 %v645_v31  ;;  %649 = vadd.xlane.f32.xlu0 %v648_v38  ;;  %v565_v39 = vpop.xlane.xlu0 %564  ;;  %v568_v40 = vpop.xlane.xlu1 %567  ;;  %v12088_v38 = vld [vmem:[%s14203_s2] ss:$0 sm:$0xff] }
 0x10d   : > { %v584_v42 = vmul.f32 0.03125, %v565_v39  ;;  %v585_v43 = vmul.f32 0.03125, %v568_v40  ;;  %v614_v46 = vmul.f32 %v12042_v35, %v12042_v35  ;;  %v615_v24 = vmul.f32 %v12045_v21, %v12045_v21 }
 0x10f   : > { %v12054_v47 = vsub.f32 %v11968_v28, %v584_v42  ;;  %v12057_v25 = vsub.f32 %v11971_v29, %v585_v43  ;;  %v654_v48 = vsel %vm520_vm0, %v614_v46, 0.0  ;;  %v657_v49 = vsel %vm520_vm0, %v615_v24, 0.0  ;;  %v774_v29 = vld [vmem:[%s14204_s3] sm:$0xff] }
 0x110   : > { %652 = vadd.xlane.f32.xlu1 %v651_v41  ;;  %655 = vadd.xlane.f32.xlu0 %v654_v48  ;;  %v10392_v56 = vpack.c.bf16 %v775_v53, %v774_v29 }
 0x111   : > { %v616_v50 = vmul.f32 %v12054_v47, %v12054_v47  ;;  %v617_v51 = vmul.f32 %v12057_v25, %v12057_v25 }
 0x112   : > { %10393 = vmatprep.subr.bf16.mxu0 %v10392_v56  ;;  %10760 = vmatprep.subr.bf16.mxu1 %v10392_v56 }
 0x113   : > { %v660_v52 = vsel %vm520_vm0, %v616_v50, 0.0  ;;  %v663_v28 = vsel %vm520_vm0, %v617_v51, 0.0  ;;  %10395 = vmatpush3.bf16.msra.mxu0 %v10392_v56  ;;  %10762 = vmatpush3.bf16.msra.mxu1 %v10392_v56 }
 0x114   : > { %658 = vadd.xlane.f32.xlu1 %v657_v49  ;;  %661 = vadd.xlane.f32.xlu0 %v660_v52 }
 0x115   : > { %10397 = vmatprep.subr.bf16.mxu0 %v10396_v59  ;;  %10761 = vmatprep.subr.bf16.mxu1 %v10396_v59 }
 0x117   : > { %10399 = vmatpush3.bf16.msra.mxu0 %v10396_v59  ;;  %10763 = vmatpush3.bf16.msra.mxu1 %v10396_v59 }
 0x118   : > { %664 = vadd.xlane.f32.xlu1 %v663_v28 }
 0x185   : > { %v620_v60 = vpop.xlane.xlu0 %619 }
 0x186   : > { %v666_v61 = vmul.f32 0.03125, %v620_v60 }
 0x188   : > { %v682_v62 = vadd.f32 1e-05, %v666_v61 }
 0x189   : > { %v623_v63 = vpop.xlane.xlu1 %622  ;;  %v626_v2 = vpop.xlane.xlu0 %625 }
 0x18a   : > { %11204 = vrsqrt.f32 %v682_v62  ;;  %v667_v3 = vmul.f32 0.03125, %v623_v63  ;;  %v668_v4 = vmul.f32 0.03125, %v626_v2 }
 0x18c   : > { %v683_v5 = vadd.f32 1e-05, %v667_v3  ;;  %v684_v6 = vadd.f32 1e-05, %v668_v4 }
 0x18d   : > { %v629_v7 = vpop.xlane.xlu1 %628  ;;  %v632_v8 = vpop.xlane.xlu0 %631 }
 0x18e   : > { %11206 = vrsqrt.f32 %v683_v5  ;;  %v669_v9 = vmul.f32 0.03125, %v629_v7  ;;  %v670_v12 = vmul.f32 0.03125, %v632_v8 }
 0x18f   : > { %11208 = vrsqrt.f32 %v684_v6 }
 0x190   : > { %v685_v13 = vadd.f32 1e-05, %v669_v9  ;;  %v686_v14 = vadd.f32 1e-05, %v670_v12 }
 0x191   : > { %v635_v15 = vpop.xlane.xlu1 %634  ;;  %v638_v18 = vpop.xlane.xlu0 %637 }
 0x192   : > { %11210 = vrsqrt.f32 %v685_v13  ;;  %v671_v19 = vmul.f32 0.03125, %v635_v15  ;;  %v672_v22 = vmul.f32 0.03125, %v638_v18 }
 0x193   : > { %11212 = vrsqrt.f32 %v686_v14 }
 0x194   : > { %v11205_v16 = vpop.eup %11204  ;;  %v687_v26 = vadd.f32 1e-05, %v671_v19  ;;  %v688_v27 = vadd.f32 1e-05, %v672_v22 }
 0x195   : > { %v641_v31 = vpop.xlane.xlu1 %640  ;;  %v644_v32 = vpop.xlane.xlu0 %643  ;;  %v714_v33 = vmul.f32 %v11205_v16, %v11977_v36 }
 0x196   : > { %11214 = vrsqrt.f32 %v687_v26  ;;  %v673_v34 = vmul.f32 0.03125, %v641_v31  ;;  %v674_v20 = vmul.f32 0.03125, %v644_v32 }
 0x197   : > { %11216 = vrsqrt.f32 %v688_v27  ;;  %v736_v39 = vmul.f32 %v12082_v30, %v714_v33 }
 0x198   : > { %v11207_v40 = vpop.eup %11206  ;;  %v689_v41 = vadd.f32 1e-05, %v673_v34  ;;  %v690_v42 = vadd.f32 1e-05, %v674_v20 }
 0x199   : > { %v11209_v43 = vpop.eup %11208  ;;  %v647_v46 = vpop.xlane.xlu1 %646  ;;  %v758_v48 = vadd.f32 %v12088_v38, %v736_v39  ;;  %v715_v36 = vmul.f32 %v11207_v40, %v11985_v44 }
 0x19a   : > { %v650_v24 = vpop.xlane.xlu0 %649  ;;  %11218 = vrsqrt.f32 %v689_v41  ;;  %v675_v49 = vmul.f32 0.03125, %v647_v46  ;;  %v716_v51 = vmul.f32 %v11209_v43, %v11979_v37 }
 0x19b   : > { %v676_v50 = vmul.f32 0.03125, %v650_v24  ;;  %11220 = vrsqrt.f32 %v690_v42  ;;  %9728 = vmatprep.mubr.msk.f32.mxu0 %vm520_vm0, %v758_v48  ;;  %v737_v52 = vmul.f32 %v12082_v30, %v715_v36 }
 0x19c   : > { %v11211_v28 = vpop.eup %11210  ;;  %v691_v29 = vadd.f32 1e-05, %v675_v49  ;;  %v738_v56 = vmul.f32 %v12082_v30, %v716_v51 }
 0x19d   : > { %v692_v53 = vadd.f32 1e-05, %v676_v50  ;;  %v11213_v57 = vpop.eup %11212  ;;  %v653_v58 = vpop.xlane.xlu1 %652  ;;  %v759_v44 = vadd.f32 %v12088_v38, %v737_v52  ;;  %v717_v60 = vmul.f32 %v11211_v28, %v11987_v45 }
 0x19e   : > { %v656_v59 = vpop.xlane.xlu0 %655  ;;  %11222 = vrsqrt.f32 %v691_v29  ;;  %v677_v61 = vmul.f32 0.03125, %v653_v58  ;;  %v760_v62 = vadd.f32 %v12088_v38, %v738_v56  ;;  %v718_v2 = vmul.f32 %v11213_v57, %v11995_v54 }
 0x19f   : > { %v678_v37 = vmul.f32 0.03125, %v656_v59  ;;  %11224 = vrsqrt.f32 %v692_v53  ;;  %9729 = vmatmul.mubr.msk.f32.vlgmr.msra.gmra.mrb[0].mxu0 %vm520_vm0, %v759_v44  ;;  %v739_v63 = vmul.f32 %v12082_v30, %v717_v60 }
 0x1a0   : > { %v11215_v3 = vpop.eup %11214  ;;  %v693_v4 = vadd.f32 1e-05, %v677_v61  ;;  %9731 = vmatprep.mubr.msk.f32.mxu0 %vm520_vm0, %v760_v62  ;;  %v740_v9 = vmul.f32 %v12082_v30, %v718_v2  ;;  %v9011_v62 = vld [vmem:[%s14205_s4] ss:$0 sm:$0xff] }
 0x1a1   : > { %v694_v5 = vadd.f32 1e-05, %v678_v37  ;;  %v11217_v6 = vpop.eup %11216  ;;  %v659_v7 = vpop.xlane.xlu1 %658  ;;  %v761_v8 = vadd.f32 %v12088_v38, %v739_v63  ;;  %v719_v12 = vmul.f32 %v11215_v3, %v11997_v55 }
 0x1a2   : > { %v662_v45 = vpop.xlane.xlu0 %661  ;;  %11226 = vrsqrt.f32 %v693_v4  ;;  %v679_v13 = vmul.f32 0.03125, %v659_v7  ;;  %v720_v15 = vmul.f32 %v11217_v6, %v12006_v0  ;;  %v762_v54 = vadd.f32 %v12088_v38, %v740_v9 }
 0x1a3   : > { %v680_v14 = vmul.f32 0.03125, %v662_v45  ;;  %11228 = vrsqrt.f32 %v694_v5  ;;  %9732 = vmatmul.mubr.msk.f32.gmra.mrb[2].mxu0 %vm520_vm0, %v761_v8  ;;  %v741_v18 = vmul.f32 %v12082_v30, %v719_v12 }
 0x1a4   : > { %v11219_v19 = vpop.eup %11218  ;;  %v695_v22 = vadd.f32 1e-05, %v679_v13  ;;  %v742_v26 = vmul.f32 %v12082_v30, %v720_v15  ;;  %9734 = vmatprep.mubr.msk.f32.mxu0 %vm520_vm0, %v762_v54 }
 0x1a5   : > { %v696_v16 = vadd.f32 1e-05, %v680_v14  ;;  %v11221_v27 = vpop.eup %11220  ;;  %v665_v55 = vpop.xlane.xlu1 %664  ;;  %v763_v31 = vadd.f32 %v12088_v38, %v741_v18  ;;  %v721_v0 = vmul.f32 %v11219_v19, %v12009_v1 }
 0x1a6   : > { %11230 = vrsqrt.f32 %v695_v22  ;;  %v681_v32 = vmul.f32 0.03125, %v665_v55  ;;  %v764_v33 = vadd.f32 %v12088_v38, %v742_v26  ;;  %v722_v34 = vmul.f32 %v11221_v27, %v12018_v10 }
 0x1a7   : > { %11232 = vrsqrt.f32 %v696_v16  ;;  %9735 = vmatmul.mubr.msk.f32.gmra.mrb[4].mxu0 %vm520_vm0, %v763_v31  ;;  %v743_v20 = vmul.f32 %v12082_v30, %v721_v0 }
 0x1a8   : > { %v11223_v39 = vpop.eup %11222  ;;  %v697_v40 = vadd.f32 1e-05, %v681_v32  ;;  %9737 = vmatprep.mubr.msk.f32.mxu0 %vm520_vm0, %v764_v33  ;;  %v744_v41 = vmul.f32 %v12082_v30, %v722_v34 }
 0x1a9   : > { %v11225_v42 = vpop.eup %11224  ;;  %v765_v1 = vadd.f32 %v12088_v38, %v743_v20  ;;  %v723_v43 = vmul.f32 %v11223_v39, %v12021_v11 }
 0x1aa   : > { %11234 = vrsqrt.f32 %v697_v40  ;;  %v766_v46 = vadd.f32 %v12088_v38, %v744_v41  ;;  %v724_v10 = vmul.f32 %v11225_v42, %v12030_v23 }
 0x1ab   : > { %9738 = vmatmul.mubr.msk.f32.gmra.mrb[6].mxu0 %vm520_vm0, %v765_v1  ;;  %v745_v24 = vmul.f32 %v12082_v30, %v723_v43 }
 0x1ac   : > { %v11227_v48 = vpop.eup %11226  ;;  %9740 = vmatprep.mubr.msk.f32.mxu1 %vm520_vm0, %v766_v46  ;;  %v746_v36 = vmul.f32 %v12082_v30, %v724_v10 }
 0x1ad   : > { %v11229_v49 = vpop.eup %11228  ;;  %v767_v50 = vadd.f32 %v12088_v38, %v745_v24  ;;  %v725_v51 = vmul.f32 %v11227_v48, %v12033_v17 }
 0x1ae   : > { %v768_v11 = vadd.f32 %v12088_v38, %v746_v36  ;;  %v726_v52 = vmul.f32 %v11229_v49, %v12042_v35 }
 0x1af   : > { %9741 = vmatmul.mubr.msk.f32.vlgmr.msra.gmra.mrb[0].mxu1 %vm520_vm0, %v767_v50  ;;  %v747_v23 = vmul.f32 %v12082_v30, %v725_v51 }
 0x1b0   : > { %v11231_v28 = vpop.eup %11230  ;;  %9743 = vmatprep.mubr.msk.f32.mxu1 %vm520_vm0, %v768_v11  ;;  %v748_v29 = vmul.f32 %v12082_v30, %v726_v52 }
 0x1b1   : > { %v11233_v53 = vpop.eup %11232  ;;  %v769_v56 = vadd.f32 %v12088_v38, %v747_v23  ;;  %v727_v57 = vmul.f32 %v11231_v28, %v12045_v21 }
 0x1b2   : > { %v770_v17 = vadd.f32 %v12088_v38, %v748_v29  ;;  %v728_v58 = vmul.f32 %v11233_v53, %v12054_v47 }
 0x1b3   : > { %9744 = vmatmul.mubr.msk.f32.gmra.mrb[2].mxu1 %vm520_vm0, %v769_v56  ;;  %v749_v35 = vmul.f32 %v12082_v30, %v727_v57 }
 0x1b4   : > { %v11235_v59 = vpop.eup %11234  ;;  %9746 = vmatprep.mubr.msk.f32.mxu1 %vm520_vm0, %v770_v17  ;;  %v750_v44 = vmul.f32 %v12082_v30, %v728_v58 }
 0x1b5   : > { %v771_v60 = vadd.f32 %v12088_v38, %v749_v35  ;;  %v729_v61 = vmul.f32 %v11235_v59, %v12057_v25 }
 0x1b6   : > { %v772_v37 = vadd.f32 %v12088_v38, %v750_v44 }
 0x1b7   : > { %9747 = vmatmul.mubr.msk.f32.gmra.mrb[4].mxu1 %vm520_vm0, %v771_v60  ;;  %v751_v21 = vmul.f32 %v12082_v30, %v729_v61 }
 0x1b8   : > { %9749 = vmatprep.mubr.msk.f32.mxu1 %vm520_vm0, %v772_v37 }
 0x1b9   : > { %v773_v47 = vadd.f32 %v12088_v38, %v751_v21 }
 0x1bb   : > { %9750 = vmatmul.mubr.msk.f32.gmra.mrb[6].mxu1 %vm520_vm0, %v773_v47 }
 0x272   : > { %v9730_v63 = vpop.f32.mrb[0].mxu0 }
 0x273   : > { %v12156_v2 = vadd.f32 %v9730_v63, %v9011_v62  ;;  %v899_v25 = vpop.f32.mrb[1].mxu0 }
 0x274   : > { %v12158_v3 = vadd.f32 %v9011_v62, %v899_v25 }
 0x275   : > { %14285 = vst [vmem:[#allocation17_spill] sm:$0xff] %v12156_v2 }
 0x276   : > { %14286 = vst [vmem:[#allocation18_spill] sm:$0xff] %v12158_v3  ;;  %v9733_v4 = vpop.f32.mrb[2].mxu0  ;;  %9756 = vmatprep.mubr.msk.f32.mxu1 %vm986_vm1, %v12158_v3  ;;  %v12164_v30 = vpack.i.bf16 %v12156_v2, %v12158_v3 }
 0x277   : > { %v12166_v38 = vadd.f32 %v9733_v4, %v9011_v62  ;;  %v909_v5 = vpop.f32.mrb[3].mxu0 }
 0x278   : > { %14287 = vst [vmem:[#allocation19_spill] sm:$0xff] %v12164_v30  ;;  %v12168_v6 = vadd.f32 %v9011_v62, %v909_v5  ;;  %10885 = vrot.lane.b32.xlu0 %v12164_v30, %s11674_s8 }
 0x279   : > { %14288 = vst [vmem:[#allocation20_spill] sm:$0xff] %v12166_v38 }
 0x27a   : > { %14289 = vst [vmem:[#allocation21_spill] sm:$0xff] %v12168_v6  ;;  %v9736_v7 = vpop.f32.mrb[4].mxu0  ;;  %v12174_v45 = vpack.i.bf16 %v12166_v38, %v12168_v6 }
 0x27b   : > { %v12176_v8 = vadd.f32 %v9736_v7, %v9011_v62  ;;  %v919_v9 = vpop.f32.mrb[5].mxu0 }
 0x27c   : > { %14290 = vst [vmem:[#allocation22_spill] sm:$0xff] %v12174_v45  ;;  %v12178_v12 = vadd.f32 %v9011_v62, %v919_v9  ;;  %10890 = vrot.lane.b32.xlu1 %v12174_v45, %s11674_s8 }
 0x27d   : > { %14291 = vst [vmem:[#allocation23_spill] sm:$0xff] %v12176_v8 }
 0x27e   : > { %14292 = vst [vmem:[#allocation24_spill] sm:$0xff] %v12178_v12  ;;  %v9739_v13 = vpop.f32.mrb[6].mxu0  ;;  %v12184_v14 = vpack.i.bf16 %v12176_v8, %v12178_v12 }
 0x27f   : > { %v12186_v15 = vadd.f32 %v9739_v13, %v9011_v62  ;;  %v929_v54 = vpop.f32.mrb[7].mxu0 }
 0x280   : > { %14293 = vst [vmem:[#allocation25_spill] sm:$0xff] %v12184_v14  ;;  %v12188_v18 = vadd.f32 %v9011_v62, %v929_v54  ;;  %10895 = vrot.lane.b32.xlu1 %v12184_v14, %s11674_s8 }
 0x281   : > { %14294 = vst [vmem:[#allocation26_spill] sm:$0xff] %v12186_v15 }
 0x282   : > { %14295 = vst [vmem:[#allocation27_spill] sm:$0xff] %v12188_v18  ;;  %v9742_v19 = vpop.f32.mrb[0].mxu1  ;;  %v12194_v22 = vpack.i.bf16 %v12186_v15, %v12188_v18 }
 0x283   : > { %v939_v16 = vpop.f32.mrb[1].mxu1  ;;  %v12206_v32 = vadd.f32 %v9742_v19, %v9011_v62 }
 0x284   : > { %14296 = vst [vmem:[#allocation28_spill] sm:$0xff] %v12194_v22  ;;  %v12196_v26 = vadd.f32 %v9011_v62, %v939_v16  ;;  %10900 = vrot.lane.b32.xlu1 %v12194_v22, %s11674_s8 }
 0x285   : > { %14300 = vst [vmem:[#allocation32_spill] sm:$0xff] %v12206_v32 }
 0x286   : > { %14297 = vst [vmem:[#allocation29_spill] sm:$0xff] %v12196_v26  ;;  %v9745_v27 = vpop.f32.mrb[2].mxu1  ;;  %9784 = vmatprep.mubr.msk.f32.mxu0 %vm986_vm1, %v12196_v26  ;;  %v12216_v40 = vpack.i.bf16 %v12206_v32, %v12196_v26 }
 0x287   : > { %v12202_v55 = vadd.f32 %v9745_v27, %v9011_v62  ;;  %v949_v31 = vpop.f32.mrb[3].mxu1 }
 0x288   : > { %v12204_v0 = vadd.f32 %v9011_v62, %v949_v31  ;;  %14302 = vst [vmem:[#allocation34_spill] sm:$0xff] %v12216_v40 }
 0x289   : > { %14298 = vst [vmem:[#allocation30_spill] sm:$0xff] %v12202_v55 }
 0x28a   : > { %14299 = vst [vmem:[#allocation31_spill] sm:$0xff] %v12204_v0  ;;  %v9748_v33 = vpop.f32.mrb[4].mxu1  ;;  %v12210_v34 = vpack.i.bf16 %v12202_v55, %v12204_v0 }
 0x28b   : > { %v959_v20 = vpop.f32.mrb[5].mxu1  ;;  %v12224_v43 = vadd.f32 %v9748_v33, %v9011_v62 }
 0x28c   : > { %14301 = vst [vmem:[#allocation33_spill] sm:$0xff] %v12210_v34  ;;  %10905 = vrot.lane.b32.xlu0 %v12210_v34, %s11674_s8  ;;  %v12226_v46 = vadd.f32 %v9011_v62, %v959_v20 }
 0x28d   : > { %14305 = vst [vmem:[#allocation37_spill] sm:$0xff] %v12224_v43 }
 0x28e   : > { %v9751_v39 = vpop.f32.mrb[6].mxu1  ;;  %14306 = vst [vmem:[#allocation38_spill] sm:$0xff] %v12226_v46  ;;  %v12238_v24 = vpack.i.bf16 %v12224_v43, %v12226_v46 }
 0x28f   : > { %v12218_v41 = vadd.f32 %v9751_v39, %v9011_v62  ;;  %v969_v42 = vpop.f32.mrb[7].mxu1 }
 0x290   : > { %v12220_v1 = vadd.f32 %v9011_v62, %v969_v42  ;;  %10915 = vrot.lane.b32.xlu0 %v12216_v40, %s11674_s8  ;;  %14308 = vst [vmem:[#allocation40_spill] sm:$0xff] %v12238_v24 }
 0x291   : > { %14303 = vst [vmem:[#allocation35_spill] sm:$0xff] %v12218_v41 }
 0x292   : > { %14304 = vst [vmem:[#allocation36_spill] sm:$0xff] %v12220_v1  ;;  %v12230_v10 = vpack.i.bf16 %v12218_v41, %v12220_v1 }
 0x294   : > { %14307 = vst [vmem:[#allocation39_spill] sm:$0xff] %v12230_v10  ;;  %10925 = vrot.lane.b32.xlu0 %v12174_v45, %s11675_s22  ;;  %10910 = vrot.lane.b32.xlu1 %v12230_v10, %s11674_s8 }
 0x298   : > { %10935 = vrot.lane.b32.xlu0 %v12174_v45, %s11676_s24  ;;  %10920 = vrot.lane.b32.xlu1 %v12238_v24, %s11674_s8  ;;  %s8914_s8 = sshll.u32 %s14088_s23, 4  ;;  %s14152_s8 = int_to_ptr.vmem [resolvable:$true] %s8914_s8 }
 0x299   : > { %p11605_p5 = scmp.lt.s32.totalorder %s14152_s8, %s11603_s21 }
 0x29c   : > { %2661 = vrot.lane.b32.xlu0 %v12168_v6, %s11677_s27  ;;  %10930 = vrot.lane.b32.xlu1 %v12210_v34, %s11675_s22 }
 0x2a0   : > { %10940 = vrot.lane.b32.xlu0 %v12210_v34, %s11676_s24  ;;  %2663 = vrot.lane.b32.xlu1 %v12166_v38, %s11677_s27 }
 0x2a4   : > { %2845 = vrot.lane.b32.xlu0 %v12186_v15, %s11677_s27  ;;  %3025 = vrot.lane.b32.xlu1 %v12204_v0, %s11677_s27 }
 0x2a8   : > { %10960 = vrot.lane.b32.xlu0 %v12230_v10, %s11676_s24  ;;  %10945 = vrot.lane.b32.xlu1 %v12194_v22, %s11675_s22 }
 0x2ac   : > { %10950 = vrot.lane.b32.xlu1 %v12230_v10, %s11675_s22 }
 0x2b0   : > { %10955 = vrot.lane.b32.xlu1 %v12194_v22, %s11676_s24 }
 0x2b4   : > { %2843 = vrot.lane.b32.xlu1 %v12188_v18, %s11677_s27 }
 0x2ea   : > { %v10886_v48 = vpop.permute.xlu0 %10885 }
 0x2eb   : > { %v10888_v36 = vunpack.i.h.bf16 %v10886_v48  ;;  %v10887_v49 = vunpack.i.l.bf16 %v10886_v48 }
 0x2ed   : > { %v10400_v51 = vpack.c.bf16 %v10888_v36, %v10887_v49 }
 0x2ee   : > { %v10891_v11 = vpop.permute.xlu1 %10890 }
 0x2ef   : > { %v10893_v52 = vunpack.i.h.bf16 %v10891_v11  ;;  %v10892_v23 = vunpack.i.l.bf16 %v10891_v11  ;;  %10402 = vmatprep.subr.msk.bf16.mxu1 %vm12268_vm2, %v10400_v51  ;;  %v979_v11 = vld [vmem:[%s14206_s5 + $0x8] sm:$0xff] }
 0x2f0   : > { %10405 = vmatpush3.bf16.xpose.msk.msra.mxu1 %vm12268_vm2, %v10400_v51 }
 0x2f1   : > { %v10406_v28 = vpack.c.bf16 %v10893_v52, %v10892_v23  ;;  %v978_v52 = vld [vmem:[%s14206_s5] sm:$0xff] }
 0x2f2   : > { %v10896_v29 = vpop.permute.xlu1 %10895 }
 0x2f3   : > { %v10898_v53 = vunpack.i.h.bf16 %v10896_v29  ;;  %v10897_v56 = vunpack.i.l.bf16 %v10896_v29  ;;  %10408 = vmatprep.subr.msk.bf16.mxu1 %vm12268_vm2, %v10406_v28 }
 0x2f5   : > { %v10412_v57 = vpack.c.bf16 %v10898_v53, %v10897_v56 }
 0x2f6   : > { %v10901_v17 = vpop.permute.xlu1 %10900 }
 0x2f7   : > { %9757 = vmatmul.mubr.msk.f32.vlgmr.msra.gmra.mrb[8].mxu1 %vm986_vm1, %v12156_v2  ;;  %v10903_v58 = vunpack.i.h.bf16 %v10901_v17  ;;  %v10902_v35 = vunpack.i.l.bf16 %v10901_v17 }
 0x2f8   : > { %10411 = vmatpush3.bf16.xpose.msk.msra.mxu1 %vm12268_vm2, %v10406_v28  ;;  %9763 = vmatprep.mubr.msk.f32.mxu1 %vm986_vm1, %v12168_v6 }
 0x2f9   : > { %10414 = vmatprep.subr.msk.bf16.mxu1 %vm12268_vm2, %v10412_v57  ;;  %v10418_v44 = vpack.c.bf16 %v10903_v58, %v10902_v35 }
 0x2fe   : > { %v10906_v59 = vpop.permute.xlu0 %10905 }
 0x2ff   : > { %9764 = vmatmul.mubr.msk.f32.vlgmr.msra.gmra.mrb[10].mxu1 %vm986_vm1, %v12166_v38  ;;  %v10908_v61 = vunpack.i.h.bf16 %v10906_v59  ;;  %v10907_v37 = vunpack.i.l.bf16 %v10906_v59 }
 0x300   : > { %10417 = vmatpush3.bf16.xpose.msk.msra.mxu1 %vm12268_vm2, %v10412_v57  ;;  %9770 = vmatprep.mubr.msk.f32.mxu1 %vm986_vm1, %v12178_v12 }
 0x301   : > { %10420 = vmatprep.subr.msk.bf16.mxu1 %vm12268_vm2, %v10418_v44  ;;  %v10430_v25 = vpack.c.bf16 %v10908_v61, %v10907_v37 }
 0x302   : > { %v10916_v60 = vpop.permute.xlu0 %10915 }
 0x303   : > { %v10918_v21 = vunpack.i.h.bf16 %v10916_v60  ;;  %v10917_v47 = vunpack.i.l.bf16 %v10916_v60 }
 0x305   : > { %v10424_v62 = vpack.c.bf16 %v10918_v21, %v10917_v47 }
 0x306   : > { %v10911_v63 = vpop.permute.xlu1 %10910  ;;  %v10926_v27 = vpop.permute.xlu0 %10925 }
 0x307   : > { %9771 = vmatmul.mubr.msk.f32.vlgmr.msra.gmra.mrb[12].mxu1 %vm986_vm1, %v12176_v8  ;;  %10426 = vmatprep.subr.msk.bf16.mxu0 %vm12268_vm2, %v10424_v62  ;;  %v10913_v9 = vunpack.i.h.bf16 %v10911_v63  ;;  %v10912_v13 = vunpack.i.l.bf16 %v10911_v63  ;;  %v10928_v33 = vunpack.i.h.bf16 %v10926_v27  ;;  %v10927_v20 = vunpack.i.l.bf16 %v10926_v27 }
 0x308   : > { %10423 = vmatpush3.bf16.xpose.msk.msra.mxu1 %vm12268_vm2, %v10418_v44  ;;  %9777 = vmatprep.mubr.msk.f32.mxu1 %vm986_vm1, %v12188_v18 }
 0x309   : > { %10429 = vmatpush3.bf16.xpose.msk.msra.mxu0 %vm12268_vm2, %v10424_v62  ;;  %10432 = vmatprep.subr.msk.bf16.mxu1 %vm12268_vm2, %v10430_v25  ;;  %v10442_v16 = vpack.c.bf16 %v10913_v9, %v10912_v13  ;;  %v10452_v42 = vpack.c.bf16 %v10928_v33, %v10927_v20 }
 0x30a   : > { %v10921_v4 = vpop.permute.xlu1 %10920 }
 0x30b   : > { %v10923_v5 = vunpack.i.h.bf16 %v10921_v4  ;;  %v10922_v7 = vunpack.i.l.bf16 %v10921_v4 }
 0x30d   : > { %v10436_v54 = vpack.c.bf16 %v10923_v5, %v10922_v7 }
 0x30e   : > { %v12306_v19 = vpop.permute.xlu1 %10930 }
 0x30f   : > { %9778 = vmatmul.mubr.msk.f32.vlgmr.msra.gmra.mrb[14].mxu1 %vm986_vm1, %v12186_v15  ;;  %10438 = vmatprep.subr.msk.bf16.mxu0 %vm12268_vm2, %v10436_v54 }
 0x310   : > { %9785 = vmatmul.mubr.msk.f32.vlgmr.msra.gmra.mrb[8].mxu0 %vm986_vm1, %v12206_v32  ;;  %10435 = vmatpush3.bf16.xpose.msk.msra.mxu1 %vm12268_vm2, %v10430_v25 }
 0x311   : > { %9791 = vmatprep.mubr.msk.f32.mxu1 %vm986_vm1, %v12204_v0  ;;  %10441 = vmatpush3.bf16.xpose.msk.msra.mxu0 %vm12268_vm2, %v10436_v54 }
 0x312   : > { %9798 = vmatprep.mubr.msk.f32.mxu0 %vm986_vm1, %v12226_v46  ;;  %10444 = vmatprep.subr.msk.bf16.mxu1 %vm12268_vm2, %v10442_v16  ;;  %v12324_v31 = vpop.permute.xlu1 %2663 }
 0x316   : > { %v12326_v39 = vpop.permute.xlu1 %3025 }
 0x317   : > { %9792 = vmatmul.mubr.msk.f32.vlgmr.msra.gmra.mrb[16].mxu1 %vm986_vm1, %v12202_v55 }
 0x318   : > { %9799 = vmatmul.mubr.msk.f32.vlgmr.msra.gmra.mrb[10].mxu0 %vm986_vm1, %v12224_v43  ;;  %10447 = vmatpush3.bf16.xpose.msk.msra.mxu1 %vm12268_vm2, %v10442_v16 }
 0x319   : > { %9805 = vmatprep.mubr.msk.f32.mxu1 %vm986_vm1, %v12220_v1  ;;  %10453 = vmatprep.subr.bf16.mxu1 %v10452_v42 }
 0x31a   : > { %v10946_v48 = vpop.permute.xlu1 %10945 }
 0x31b   : > { %v10948_v36 = vunpack.i.h.bf16 %v10946_v48  ;;  %v10947_v49 = vunpack.i.l.bf16 %v10946_v48 }
 0x31d   : > { %v12338_v51 = vpack.c.bf16 %v10948_v36, %v10947_v49 }
 0x31f   : > { %9806 = vmatmul.mubr.msk.f32.vlgmr.msra.gmra.mrb[18].mxu1 %vm986_vm1, %v12218_v41 }
 0x320   : > { %10455 = vmatpush3.bf16.msra.mxu1 %v10452_v42 }
 0x321   : > { %10461 = vmatprep.subr.bf16.mxu1 %v12338_v51 }
 0x3ca   : > { %v9758_v23 = vpop.f32.mrb[8].mxu1 }
 0x3cb   : > { %v12347_v28 = vadd.f32 %v9758_v23, %v979_v11  ;;  %v1061_v29 = vpop.f32.mrb[9].mxu1 }
 0x3cc   : > { %v12349_v53 = vadd.f32 %v1061_v29, %v978_v52 }
 0x3d2   : > { %v9765_v56 = vpop.f32.mrb[10].mxu1 }
 0x3d3   : > { %v12351_v57 = vadd.f32 %v9765_v56, %v979_v11  ;;  %v1150_v17 = vpop.f32.mrb[11].mxu1 }
 0x3d4   : > { %v12353_v58 = vadd.f32 %v1150_v17, %v978_v52 }
 0x3d5   : > { %v1703_v35 = vsel %vm1693_vm3, %v12351_v57, -inf }
 0x3d6   : > { %1704 = vmax.xlane.f32.xlu1 %v1703_v35  ;;  %v1700_v59 = vsel %vm1693_vm3, %v12353_v58, -inf }
 0x3d7   : > { %1701 = vmax.xlane.f32.xlu0 %v1700_v59 }
 0x3da   : > { %v9772_v44 = vpop.f32.mrb[12].mxu1 }
 0x3db   : > { %v12359_v60 = vadd.f32 %v9772_v44, %v979_v11  ;;  %v1239_v61 = vpop.f32.mrb[13].mxu1 }
 0x3dc   : > { %v12361_v37 = vadd.f32 %v1239_v61, %v978_v52 }
 0x3dd   : > { %v1709_v61 = vsel %vm1693_vm3, %v12359_v60, -inf }
 0x3e2   : > { %v9779_v21 = vpop.f32.mrb[14].mxu1 }
 0x3e3   : > { %v12363_v47 = vadd.f32 %v9779_v21, %v979_v11  ;;  %v9786_v62 = vpop.f32.mrb[8].mxu0  ;;  %v1328_v63 = vpop.f32.mrb[15].mxu1 }
 0x3e4   : > { %v12365_v25 = vadd.f32 %v9786_v62, %v979_v11  ;;  %v1417_v4 = vpop.f32.mrb[9].mxu0  ;;  %v12367_v5 = vadd.f32 %v1328_v63, %v978_v52  ;;  %v12411_v63 = vpop.permute.xlu0 %10935 }
 0x3e5   : > { %v12369_v7 = vadd.f32 %v1417_v4, %v978_v52  ;;  %v1715_v9 = vsel %vm1693_vm3, %v12363_v47, -inf }
 0x3e6   : > { %1716 = vmax.xlane.f32.xlu0 %v1715_v9  ;;  %v1712_v13 = vsel %vm1693_vm3, %v12367_v5, -inf  ;;  %v12417_v9 = vpop.permute.xlu1 %10950 }
 0x3e7   : > { %v1718_v21 = vsel %vm1693_vm3, %v12369_v7, -inf }
 0x3e8   : > { %v12413_v4 = vpop.permute.xlu0 %2661 }
 0x3ea   : > { %v9793_v54 = vpop.f32.mrb[16].mxu1  ;;  %1713 = vmax.xlane.f32.xlu0 %v1712_v13 }
 0x3eb   : > { %v12375_v16 = vadd.f32 %v9793_v54, %v979_v11  ;;  %v9800_v27 = vpop.f32.mrb[10].mxu0  ;;  %v1506_v33 = vpop.f32.mrb[17].mxu1  ;;  %v1697_v54 = vsel %vm1693_vm3, %v12347_v28, -inf }
 0x3ec   : > { %v12377_v20 = vadd.f32 %v9800_v27, %v979_v11  ;;  %v12379_v42 = vadd.f32 %v1506_v33, %v978_v52  ;;  %v1595_v48 = vpop.f32.mrb[11].mxu0  ;;  %v12419_v13 = vpop.permute.xlu0 %10940 }
 0x3ed   : > { %v12381_v36 = vadd.f32 %v1595_v48, %v978_v52  ;;  %v1727_v49 = vsel %vm1693_vm3, %v12375_v16, -inf  ;;  %v12425_v27 = vpop.permute.xlu1 %10955  ;;  %v1721_v48 = vsel %vm1693_vm3, %v12365_v25, -inf }
 0x3ee   : > { %1728 = vmax.xlane.f32.xlu1 %v1727_v49  ;;  %v1724_v23 = vsel %vm1693_vm3, %v12379_v42, -inf }
 0x3ef   : > { %1725 = vmax.xlane.f32.xlu0 %v1724_v23  ;;  %v1730_v62 = vsel %vm1693_vm3, %v12381_v36, -inf  ;;  %v1733_v23 = vsel %vm1693_vm3, %v12377_v20, -inf }
 0x3f0   : > { %v12427_v33 = vpop.permute.xlu0 %2845 }
 0x3f1   : > { %v12435_v49 = vpop.permute.xlu1 %2843 }
 0x3f2   : > { %v9807_v29 = vpop.f32.mrb[18].mxu1 }
 0x3f3   : > { %v12387_v56 = vadd.f32 %v9807_v29, %v979_v11  ;;  %v1684_v17 = vpop.f32.mrb[19].mxu1  ;;  %v1694_v11 = vsel %vm1693_vm3, %v12349_v53, -inf }
 0x3f4   : > { %v12389_v35 = vadd.f32 %v1684_v17, %v978_v52  ;;  %v1706_v52 = vsel %vm1693_vm3, %v12361_v37, -inf  ;;  %v12439_v29 = vpop.permute.xlu0 %10960 }
 0x3f5   : > { %v1739_v44 = vsel %vm1693_vm3, %v12387_v56, -inf }
 0x3f6   : > { %v1736_v59 = vsel %vm1693_vm3, %v12389_v35, -inf }
 0x3f7   : > { %1737 = vmax.xlane.f32.xlu0 %v1736_v59 }
 0x3ff   : > { %3027 = vrot.lane.b32.xlu1 %v12202_v55, %s11677_s27 }
 0x40d   : > { %3207 = vrot.lane.b32.xlu0 %v12220_v1, %s11677_s27 }
 0x423   : > { %1740 = vmax.xlane.f32.xlu1 %v1739_v44 }
 0x42c   : > { %1695 = vmax.xlane.f32.xlu0 %v1694_v11 }
 0x430   : > { %1707 = vmax.xlane.f32.xlu0 %v1706_v52 }
 0x434   : > { %3209 = vrot.lane.b32.xlu1 %v12218_v41, %s11677_s27  ;;  %1710 = vmax.xlane.f32.xlu0 %v1709_v61 }
 0x438   : > { %1719 = vmax.xlane.f32.xlu0 %v1718_v21  ;;  %v10933_v21 = vunpack.i.h.bf16 %v12306_v19 }
 0x43c   : > { %1731 = vmax.xlane.f32.xlu0 %v1730_v62 }
 0x452   : > { %10965 = vrot.lane.b32.xlu0 %v12164_v30, %s11675_s22 }
 0x456   : > { %10985 = vrot.lane.b32.xlu0 %v12164_v30, %s11676_s24 }
 0x458   : > { %1698 = vmax.xlane.f32.xlu1 %v1697_v54 }
 0x45a   : > { %2570 = vrot.lane.b32.xlu0 %v12158_v3, %s11677_s27 }
 0x45c   : > { %1722 = vmax.xlane.f32.xlu1 %v1721_v48 }
 0x45e   : > { %10995 = vrot.lane.b32.xlu0 %v12216_v40, %s11676_s24 }
 0x460   : > { %1734 = vmax.xlane.f32.xlu1 %v1733_v23 }
 0x462   : > { %2754 = vrot.lane.b32.xlu0 %v12176_v8, %s11677_s27 }
 0x463   : > { %v1705_v17 = vpop.xlane.xlu1 %1704 }
 0x464   : > { %v1745_v59 = vsub.f32 %v12351_v57, %v1705_v17  ;;  %v1702_v44 = vpop.xlane.xlu0 %1701  ;;  %v10932_v57 = vunpack.i.l.bf16 %v12306_v19 }
 0x465   : > { %v1744_v11 = vsub.f32 %v12353_v58, %v1702_v44 }
 0x466   : > { %v1764_v52 = vmul.f32 1.442695, %v1745_v59  ;;  %2934 = vrot.lane.b32.xlu0 %v12196_v26, %s11677_s27  ;;  %v10468_v19 = vpack.c.bf16 %v10933_v21, %v10932_v57 }
 0x467   : > { %v1762_v61 = vmul.f32 1.442695, %v1744_v11 }
 0x469   : > { %11236 = vpow2.f32 %v1762_v61 }
 0x46a   : > { %11238 = vpow2.f32 %v1764_v52  ;;  %3116 = vrot.lane.b32.xlu0 %v12226_v46, %s11677_s27 }
 0x46e   : > { %11005 = vrot.lane.b32.xlu0 %v12174_v45, %s11678_s26 }
 0x471   : > { %10970 = vrot.lane.b32.xlu1 %v12184_v14, %s11675_s22 }
 0x472   : > { %11025 = vrot.lane.b32.xlu0 %v12164_v30, %s11679_s13 }
 0x473   : > { %v12457_v58 = vpop.eup %11236  ;;  %v1717_v62 = vpop.xlane.xlu0 %1716 }
 0x474   : > { %v12459_v54 = vpop.eup %11238  ;;  %9819 = vmatprep.mubr.msk.f32.mxu1 %vm1693_vm3, %v12457_v58  ;;  %v1749_v48 = vsub.f32 %v12363_v47, %v1717_v62 }
 0x475   : > { %10975 = vrot.lane.b32.xlu1 %v12216_v40, %s11675_s22  ;;  %9820 = vmatmul.mubr.msk.f32.vlgmr.msra.gmra.mrb[20].mxu1 %vm1693_vm3, %v12459_v54 }
 0x476   : > { %10463 = vmatpush3.bf16.msra.mxu1 %v12338_v51  ;;  %4561 = vrot.lane.b32.xlu0 %v12158_v3, %s11680_s14  ;;  %v1772_v59 = vmul.f32 1.442695, %v1749_v48 }
 0x477   : > { %10469 = vmatprep.subr.bf16.mxu1 %v10468_v19  ;;  %v1714_v23 = vpop.xlane.xlu0 %1713 }
 0x478   : > { %v1748_v17 = vsub.f32 %v12367_v5, %v1714_v23 }
 0x479   : > { %10980 = vrot.lane.b32.xlu1 %v12238_v24, %s11675_s22  ;;  %s11681_s22 = smov 48  }
 0x47a   : > { %v1770_v47 = vmul.f32 1.442695, %v1748_v17  ;;  %11035 = vrot.lane.b32.xlu0 %v12184_v14, %s11679_s13  ;;  %v10937_v17 = vunpack.i.l.bf16 %v12411_v63 }
 0x47b   : > { %v1729_v44 = vpop.xlane.xlu1 %1728 }
 0x47c   : > { %11240 = vpow2.f32 %v1770_v47  ;;  %v1753_v51 = vsub.f32 %v12375_v16, %v1729_v44  ;;  %v1726_v11 = vpop.xlane.xlu0 %1725  ;;  %v10953_v16 = vunpack.i.h.bf16 %v12417_v9 }
 0x47d   : > { %11242 = vpow2.f32 %v1772_v59  ;;  %v1752_v52 = vsub.f32 %v12379_v42, %v1726_v11  ;;  %10990 = vrot.lane.b32.xlu1 %v12184_v14, %s11676_s24  ;;  %v10952_v42 = vunpack.i.l.bf16 %v12417_v9 }
 0x47e   : > { %v1780_v5 = vmul.f32 1.442695, %v1753_v51  ;;  %4654 = vrot.lane.b32.xlu0 %v12166_v38, %s11680_s14  ;;  %v9076_v38 = vld [vmem:[%s14206_s5 + $0x10] sm:$0xff] }
 0x47f   : > { %v1778_v61 = vmul.f32 1.442695, %v1752_v52  ;;  %v10476_v9 = vpack.c.bf16 %v10953_v16, %v10952_v42  ;;  %v10958_v42 = vunpack.i.h.bf16 %v12425_v27 }
 0x481   : > { %11244 = vpow2.f32 %v1778_v61  ;;  %2572 = vrot.lane.b32.xlu1 %v12156_v2, %s11677_s27 }
 0x482   : > { %11246 = vpow2.f32 %v1780_v5  ;;  %4743 = vrot.lane.b32.xlu0 %v12178_v12, %s11680_s14 }
 0x484   : > { %v1738_v21 = vpop.xlane.xlu0 %1737 }
 0x485   : > { %v1756_v57 = vsub.f32 %v12389_v35, %v1738_v21  ;;  %2752 = vrot.lane.b32.xlu1 %v12178_v12, %s11677_s27  ;;  %v10938_v35 = vunpack.i.h.bf16 %v12411_v63  ;;  %v10957_v21 = vunpack.i.l.bf16 %v12425_v27  ;;  %v10943_v27 = vunpack.i.h.bf16 %v12419_v13 }
 0x486   : > { %v12491_v62 = vpop.eup %11240  ;;  %4834 = vrot.lane.b32.xlu0 %v12188_v18, %s11680_s14 }
 0x487   : > { %v12495_v48 = vpop.eup %11242  ;;  %v1786_v23 = vmul.f32 1.442695, %v1756_v57  ;;  %9833 = vmatprep.mubr.msk.f32.mxu1 %vm1693_vm3, %v12491_v62  ;;  %v10486_v44 = vpack.c.bf16 %v10938_v35, %v10937_v17  ;;  %v10942_v35 = vunpack.i.l.bf16 %v12419_v13  ;;  %v10963_v13 = vunpack.i.h.bf16 %v12439_v29 }
 0x488   : > { %9834 = vmatmul.mubr.msk.f32.vlgmr.msra.gmra.mrb[22].mxu1 %vm1693_vm3, %v12495_v48  ;;  %v3208_v5 = vpop.permute.xlu0 %3207 }
 0x489   : > { %11248 = vpow2.f32 %v1786_v23  ;;  %10471 = vmatpush3.bf16.msra.mxu1 %v10468_v19  ;;  %11000 = vrot.lane.b32.xlu1 %v12238_v24, %s11676_s24  ;;  %v3028_v19 = vpop.permute.xlu1 %3027  ;;  %s14371_s24 = sld [smem:[#allocation59_spill]] }
 0x48a   : > { %10477 = vmatprep.subr.bf16.mxu1 %v10476_v9  ;;  %4925 = vrot.lane.b32.xlu0 %v12196_v26, %s11680_s14 }
 0x48b   : > { %v12507_v59 = vpop.eup %11244 }
 0x48c   : > { %v12509_v47 = vpop.eup %11246  ;;  %9847 = vmatprep.mubr.msk.f32.mxu1 %vm1693_vm3, %v12507_v59 }
 0x48d   : > { %2936 = vrot.lane.b32.xlu1 %v12206_v32, %s11677_s27  ;;  %9848 = vmatmul.mubr.msk.f32.vlgmr.msra.gmra.mrb[24].mxu1 %vm1693_vm3, %v12509_v47 }
 0x48e   : > { %10479 = vmatpush3.bf16.msra.mxu1 %v10476_v9  ;;  %v10498_v9 = vpack.c.bf16 %v10958_v42, %v10957_v21 }
 0x48f   : > { %10488 = vmatprep.subr.msk.bf16.mxu1 %vm12268_vm2, %v10486_v44 }
 0x491   : > { %3118 = vrot.lane.b32.xlu1 %v12224_v43, %s11677_s27  ;;  %s14375_s27 = sld [smem:[#allocation62_spill]] }
 0x493   : > { %v12521_v63 = vpop.eup %11248 }
 0x494   : > { %9861 = vmatprep.mubr.msk.f32.mxu1 %vm1693_vm3, %v12521_v63 }
 0x495   : > { %11010 = vrot.lane.b32.xlu1 %v12194_v22, %s11678_s26 }
 0x499   : > { %11015 = vrot.lane.b32.xlu1 %v12210_v34, %s11678_s26 }
 0x49d   : > { %11020 = vrot.lane.b32.xlu1 %v12230_v10, %s11678_s26 }
 0x4a1   : > { %11030 = vrot.lane.b32.xlu1 %v12174_v45, %s11679_s13 }
 0x4a5   : > { %4563 = vrot.lane.b32.xlu1 %v12156_v2, %s11680_s14 }
 0x4a9   : > { %4652 = vrot.lane.b32.xlu1 %v12168_v6, %s11680_s14 }
 0x4ad   : > { %11040 = vrot.lane.b32.xlu1 %v12194_v22, %s11679_s13 }
 0x4b0   : > { %v1741_v51 = vpop.xlane.xlu1 %1740 }
 0x4b1   : > { %v1757_v11 = vsub.f32 %v12387_v56, %v1741_v51  ;;  %4745 = vrot.lane.b32.xlu1 %v12176_v8, %s11680_s14 }
 0x4b3   : > { %v1788_v52 = vmul.f32 1.442695, %v1757_v11  ;;  %v10510_v11 = vpack.c.bf16 %v10943_v27, %v10942_v35 }
 0x4b5   : > { %11250 = vpow2.f32 %v1788_v52  ;;  %11045 = vrot.lane.b32.xlu1 %v12216_v40, %s11679_s13 }
 0x4b9   : > { %4836 = vrot.lane.b32.xlu1 %v12186_v15, %s11680_s14  ;;  %v1696_v61 = vpop.xlane.xlu0 %1695  ;;  %v12709_v15 = vld [vmem:[%s14206_s5 + $0x18] sm:$0xff] }
 0x4ba   : > { %v1742_v16 = vsub.f32 %v12349_v53, %v1696_v61 }
 0x4bc   : > { %v1758_v56 = vmul.f32 1.442695, %v1742_v16 }
 0x4bd   : > { %11050 = vrot.lane.b32.xlu1 %v12210_v34, %s11679_s13  ;;  %v1708_v57 = vpop.xlane.xlu0 %1707 }
 0x4be   : > { %11252 = vpow2.f32 %v1758_v56 }
 0x4bf   : > { %v12551_v23 = vpop.eup %11250 }
 0x4c0   : > { %9862 = vmatmul.mubr.msk.f32.vlgmr.msra.gmra.mrb[26].mxu1 %vm1693_vm3, %v12551_v23 }
 0x4c1   : > { %10491 = vmatpush3.bf16.xpose.msk.msra.mxu1 %vm12268_vm2, %v10486_v44  ;;  %4927 = vrot.lane.b32.xlu1 %v12206_v32, %s11680_s14  ;;  %v1711_v53 = vpop.xlane.xlu0 %1710  ;;  %v10962_v44 = vunpack.i.l.bf16 %v12439_v29 }
 0x4c2   : > { %9875 = vmatprep.mubr.msk.f32.mxu1 %vm986_vm1, %v12413_v4  ;;  %10500 = vmatprep.subr.msk.bf16.mxu1 %vm12268_vm2, %v10498_v9 }
 0x4c3   : > { %v10522_v16 = vpack.c.bf16 %v10963_v13, %v10962_v44  ;;  %v1747_v13 = vsub.f32 %v12359_v60, %v1711_v53 }
 0x4c5   : > { %v1720_v17 = vpop.xlane.xlu0 %1719 }
 0x4c8   : > { %v12565_v51 = vpop.eup %11252  ;;  %9876 = vmatmul.mubr.msk.f32.vlgmr.msra.gmra.mrb[28].mxu1 %vm986_vm1, %v12324_v31 }
 0x4c9   : > { %10503 = vmatpush3.bf16.xpose.msk.msra.mxu1 %vm12268_vm2, %v10498_v9  ;;  %9889 = vmatprep.mubr.msk.f32.mxu1 %vm986_vm1, %v12435_v49  ;;  %v1732_v4 = vpop.xlane.xlu0 %1731  ;;  %v1746_v9 = vsub.f32 %v12361_v37, %v1708_v57 }
 0x4ca   : > { %9812 = vmatprep.mubr.msk.f32.mxu0 %vm1693_vm3, %v12565_v51  ;;  %10512 = vmatprep.subr.msk.bf16.mxu1 %vm12268_vm2, %v10510_v11 }
 0x4cd   : > { %v10966_v52 = vpop.permute.xlu0 %10965 }
 0x4ce   : > { %v10968_v61 = vunpack.i.h.bf16 %v10966_v52  ;;  %v10967_v31 = vunpack.i.l.bf16 %v10966_v52 }
 0x4d0   : > { %9890 = vmatmul.mubr.msk.f32.vlgmr.msra.gmra.mrb[30].mxu1 %vm986_vm1, %v12427_v33  ;;  %v10448_v42 = vpack.c.bf16 %v10968_v61, %v10967_v31 }
 0x4d1   : > { %10515 = vmatpush3.bf16.xpose.msk.msra.mxu1 %vm12268_vm2, %v10510_v11  ;;  %9903 = vmatprep.mubr.msk.f32.mxu1 %vm986_vm1, %v12326_v39  ;;  %v12585_v49 = vpop.permute.xlu0 %10985  ;;  %v3210_v39 = vpop.permute.xlu1 %3209  ;;  %v1766_v11 = vmul.f32 1.442695, %v1746_v9 }
 0x4d2   : > { %10524 = vmatprep.subr.msk.bf16.mxu1 %vm12268_vm2, %v10522_v16  ;;  %10449 = vmatprep.subr.bf16.mxu0 %v10448_v42 }
 0x4d3   : > { %10451 = vmatpush3.bf16.msra.mxu0 %v10448_v42  ;;  %v1768_v42 = vmul.f32 1.442695, %v1747_v13 }
 0x4d5   : > { %v12589_v29 = vpop.permute.xlu0 %2570 }
 0x4d8   : > { %9904 = vmatmul.mubr.msk.f32.vlgmr.msra.gmra.mrb[32].mxu1 %vm986_vm1, %v3028_v19 }
 0x4d9   : > { %10527 = vmatpush3.bf16.xpose.msk.msra.mxu1 %vm12268_vm2, %v10522_v16  ;;  %9917 = vmatprep.mubr.msk.f32.mxu1 %vm986_vm1, %v3208_v5  ;;  %v12595_v33 = vpop.permute.xlu0 %10995  ;;  %v1750_v5 = vsub.f32 %v12369_v7, %v1720_v17 }
 0x4db   : > { %v1774_v57 = vmul.f32 1.442695, %v1750_v5 }
 0x4dd   : > { %v12597_v21 = vpop.permute.xlu0 %2754 }
 0x4e0   : > { %9918 = vmatmul.mubr.msk.f32.vlgmr.msra.gmra.mrb[34].mxu1 %vm986_vm1, %v3210_v39  ;;  %v1754_v39 = vsub.f32 %v12381_v36, %v1732_v4 }
 0x4e1   : > { %v12600_v56 = vpop.permute.xlu0 %2934 }
 0x4e2   : > { %v1782_v53 = vmul.f32 1.442695, %v1754_v39 }
 0x4e5   : > { %v1699_v27 = vpop.xlane.xlu1 %1698  ;;  %v12603_v35 = vpop.permute.xlu0 %3116 }
 0x4e6   : > { %v1743_v19 = vsub.f32 %v12347_v28, %v1699_v27 }
 0x4e8   : > { %v1760_v44 = vmul.f32 1.442695, %v1743_v19 }
 0x4e9   : > { %v1723_v52 = vpop.xlane.xlu1 %1722  ;;  %v11006_v61 = vpop.permute.xlu0 %11005 }
 0x4ea   : > { %11254 = vpow2.f32 %v1760_v44  ;;  %v11008_v31 = vunpack.i.h.bf16 %v11006_v61  ;;  %v11007_v16 = vunpack.i.l.bf16 %v11006_v61  ;;  %v1751_v37 = vsub.f32 %v12365_v25, %v1723_v52 }
 0x4eb   : > { %11256 = vpow2.f32 %v1766_v11  ;;  %v10988_v61 = vunpack.i.h.bf16 %v12585_v49 }
 0x4ec   : > { %v10532_v32 = vpack.c.bf16 %v11008_v31, %v11007_v16  ;;  %11258 = vpow2.f32 %v1768_v42  ;;  %v1776_v60 = vmul.f32 1.442695, %v1751_v37  ;;  %v10987_v31 = vunpack.i.l.bf16 %v12585_v49 }
 0x4ed   : > { %v1735_v28 = vpop.xlane.xlu1 %1734  ;;  %11260 = vpow2.f32 %v1774_v57 }
 0x4ee   : > { %10533 = vmatprep.subr.bf16.mxu1 %v10532_v32  ;;  %v1755_v7 = vsub.f32 %v12377_v20, %v1735_v28  ;;  %11262 = vpow2.f32 %v1776_v60  ;;  %v10480_v60 = vpack.c.bf16 %v10988_v61, %v10987_v31 }
 0x4ef   : > { %10535 = vmatpush3.bf16.msra.mxu1 %v10532_v32  ;;  %11264 = vpow2.f32 %v1782_v53 }
 0x4f0   : > { %v1784_v19 = vmul.f32 1.442695, %v1755_v7 }
 0x4f1   : > { %v10971_v17 = vpop.permute.xlu1 %10970 }
 0x4f2   : > { %v10973_v9 = vunpack.i.h.bf16 %v10971_v17  ;;  %v10972_v27 = vunpack.i.l.bf16 %v10971_v17  ;;  %11266 = vpow2.f32 %v1784_v19 }
 0x4f4   : > { %v12611_v11 = vpop.eup %11254  ;;  %v10456_v25 = vpack.c.bf16 %v10973_v9, %v10972_v27 }
 0x4f5   : > { %v12613_v36 = vpop.eup %11256  ;;  %v10976_v4 = vpop.permute.xlu1 %10975  ;;  %9813 = vmatmul.mubr.msk.f32.vlgmr.msra.gmra.mrb[12].mxu0 %vm1693_vm3, %v12611_v11 }
 0x4f6   : > { %v10978_v13 = vunpack.i.h.bf16 %v10976_v4  ;;  %v10977_v20 = vunpack.i.l.bf16 %v10976_v4  ;;  %10457 = vmatprep.subr.bf16.mxu0 %v10456_v25  ;;  %9826 = vmatprep.mubr.msk.f32.mxu0 %vm1693_vm3, %v12613_v36  ;;  %v12619_v5 = vpop.eup %11258  ;;  %v10997_v4 = vunpack.i.l.bf16 %v12595_v33 }
 0x4f7   : > { %10459 = vmatpush3.bf16.msra.mxu0 %v10456_v25  ;;  %v12621_v52 = vpop.eup %11260  ;;  %v10998_v25 = vunpack.i.h.bf16 %v12595_v33 }
 0x4f8   : > { %v10464_v32 = vpack.c.bf16 %v10978_v13, %v10977_v20  ;;  %v12629_v57 = vpop.eup %11262 }
 0x4f9   : > { %v10981_v44 = vpop.permute.xlu1 %10980  ;;  %v12631_v28 = vpop.eup %11264  ;;  %v10504_v20 = vpack.c.bf16 %v10998_v25, %v10997_v4 }
 0x4fa   : > { %v10983_v16 = vunpack.i.h.bf16 %v10981_v44  ;;  %v10982_v42 = vunpack.i.l.bf16 %v10981_v44  ;;  %9827 = vmatmul.mubr.msk.f32.vlgmr.msra.gmra.mrb[14].mxu0 %vm1693_vm3, %v12619_v5  ;;  %10465 = vmatprep.subr.bf16.mxu0 %v10464_v32 }
 0x4fb   : > { %10467 = vmatpush3.bf16.msra.mxu0 %v10464_v32  ;;  %9840 = vmatprep.mubr.msk.f32.mxu0 %vm1693_vm3, %v12621_v52 }
 0x4fc   : > { %v10472_v37 = vpack.c.bf16 %v10983_v16, %v10982_v42  ;;  %v12639_v49 = vpop.eup %11266 }
 0x4fd   : > { %v10991_v39 = vpop.permute.xlu1 %10990 }
 0x4fe   : > { %9841 = vmatmul.mubr.msk.f32.vlgmr.msra.gmra.mrb[16].mxu0 %vm1693_vm3, %v12629_v57  ;;  %10473 = vmatprep.subr.bf16.mxu0 %v10472_v37  ;;  %v10993_v53 = vunpack.i.h.bf16 %v10991_v39  ;;  %v10992_v17 = vunpack.i.l.bf16 %v10991_v39 }
 0x4ff   : > { %10475 = vmatpush3.bf16.msra.mxu0 %v10472_v37  ;;  %9854 = vmatprep.mubr.msk.f32.mxu0 %vm1693_vm3, %v12631_v28 }
 0x500   : > { %10482 = vmatprep.subr.msk.bf16.mxu0 %vm12268_vm2, %v10480_v60  ;;  %v10492_v27 = vpack.c.bf16 %v10993_v53, %v10992_v17 }
 0x501   : > { %v2573_v7 = vpop.permute.xlu1 %2572 }
 0x502   : > { %9855 = vmatmul.mubr.msk.f32.vlgmr.msra.gmra.mrb[18].mxu0 %vm1693_vm3, %v12639_v49 }
 0x503   : > { %9868 = vmatprep.mubr.msk.f32.mxu0 %vm986_vm1, %v12589_v29 }
 0x505   : > { %v2753_v9 = vpop.permute.xlu1 %2752 }
 0x508   : > { %10485 = vmatpush3.bf16.xpose.msk.msra.mxu0 %vm12268_vm2, %v10480_v60 }
 0x509   : > { %v11001_v19 = vpop.permute.xlu1 %11000  ;;  %10494 = vmatprep.subr.msk.bf16.mxu0 %vm12268_vm2, %v10492_v27 }
 0x50a   : > { %v11003_v32 = vunpack.i.h.bf16 %v11001_v19  ;;  %v11002_v44 = vunpack.i.l.bf16 %v11001_v19 }
 0x50c   : > { %v10516_v42 = vpack.c.bf16 %v11003_v32, %v11002_v44 }
 0x50d   : > { %v2937_v13 = vpop.permute.xlu1 %2936 }
 0x50f   : > { %9869 = vmatmul.mubr.msk.f32.vlgmr.msra.gmra.mrb[20].mxu0 %vm986_vm1, %v2573_v7 }
 0x510   : > { %10497 = vmatpush3.bf16.xpose.msk.msra.mxu0 %vm12268_vm2, %v10492_v27  ;;  %9882 = vmatprep.mubr.msk.f32.mxu0 %vm986_vm1, %v2753_v9 }
 0x511   : > { %v3119_v29 = vpop.permute.xlu1 %3118  ;;  %10506 = vmatprep.subr.msk.bf16.mxu0 %vm12268_vm2, %v10504_v20 }
 0x515   : > { %v11011_v61 = vpop.permute.xlu1 %11010 }
 0x516   : > { %v11013_v31 = vunpack.i.h.bf16 %v11011_v61  ;;  %v11012_v16 = vunpack.i.l.bf16 %v11011_v61 }
 0x517   : > { %9883 = vmatmul.mubr.msk.f32.vlgmr.msra.gmra.mrb[22].mxu0 %vm986_vm1, %v12597_v21 }
 0x518   : > { %10509 = vmatpush3.bf16.xpose.msk.msra.mxu0 %vm12268_vm2, %v10504_v20  ;;  %9896 = vmatprep.mubr.msk.f32.mxu0 %vm986_vm1, %v12600_v56  ;;  %v12663_v33 = vpack.c.bf16 %v11013_v31, %v11012_v16 }
 0x519   : > { %10518 = vmatprep.subr.msk.bf16.mxu0 %vm12268_vm2, %v10516_v42 }
 0x51a   : > { %10541 = vmatprep.subr.bf16.mxu1 %v12663_v33 }
 0x51f   : > { %9897 = vmatmul.mubr.msk.f32.vlgmr.msra.gmra.mrb[24].mxu0 %vm986_vm1, %v2937_v13 }
 0x520   : > { %10521 = vmatpush3.bf16.xpose.msk.msra.mxu0 %vm12268_vm2, %v10516_v42  ;;  %9910 = vmatprep.mubr.msk.f32.mxu0 %vm986_vm1, %v12603_v35 }
 0x527   : > { %9911 = vmatmul.mubr.msk.f32.vlgmr.msra.gmra.mrb[26].mxu0 %vm986_vm1, %v3119_v29 }
 0x548   : > { %v12674_v21 = vpop.f32.mrb[20].mxu1 }
 0x549   : > { %14311 = vst [vmem:[#allocation41_spill] sm:$0xff] %v12674_v21  ;;  %v12676_v56 = vpop.f32.mrb[21].mxu1 }
 0x54a   : > { %14312 = vst [vmem:[#allocation42_spill] sm:$0xff] %v12676_v56 }
 0x55b   : > { %v12678_v37 = vpop.f32.mrb[22].mxu1 }
 0x55c   : > { %14313 = vst [vmem:[#allocation43_spill] sm:$0xff] %v12678_v37  ;;  %v12680_v39 = vpop.f32.mrb[23].mxu1 }
 0x55d   : > { %14314 = vst [vmem:[#allocation44_spill] sm:$0xff] %v12680_v39 }
 0x560   : > { %v12682_v60 = vpop.f32.mrb[24].mxu1 }
 0x561   : > { %14315 = vst [vmem:[#allocation45_spill] sm:$0xff] %v12682_v60  ;;  %v12684_v7 = vpop.f32.mrb[25].mxu1 }
 0x562   : > { %14316 = vst [vmem:[#allocation46_spill] sm:$0xff] %v12684_v7 }
 0x593   : > { %v12686_v53 = vpop.f32.mrb[26].mxu1 }
 0x594   : > { %14317 = vst [vmem:[#allocation47_spill] sm:$0xff] %v12686_v53  ;;  %v12688_v17 = vpop.f32.mrb[27].mxu1 }
 0x595   : > { %14318 = vst [vmem:[#allocation48_spill] sm:$0xff] %v12688_v17 }
 0x59b   : > { %v9877_v9 = vpop.f32.mrb[28].mxu1 }
 0x59c   : > { %v2743_v35 = vpop.f32.mrb[29].mxu1 }
 0x59d   : > { %v12733_v60 = vadd.f32 %v9076_v38, %v2743_v35 }
 0x59f   : > { %v3304_v35 = vsel %vm1693_vm3, %v12733_v60, -inf }
 0x5a3   : > { %v9891_v27 = vpop.f32.mrb[30].mxu1 }
 0x5a4   : > { %v2925_v19 = vpop.f32.mrb[31].mxu1 }
 0x5ab   : > { %v9905_v25 = vpop.f32.mrb[32].mxu1 }
 0x5ac   : > { %v3107_v4 = vpop.f32.mrb[33].mxu1 }
 0x5b3   : > { %v9919_v13 = vpop.f32.mrb[34].mxu1 }
 0x5b4   : > { %v3289_v20 = vpop.f32.mrb[35].mxu1 }
 0x5c8   : > { %v12690_v29 = vpop.f32.mrb[12].mxu0 }
 0x5c9   : > { %14319 = vst [vmem:[#allocation49_spill] sm:$0xff] %v12690_v29  ;;  %v12692_v32 = vpop.f32.mrb[13].mxu0 }
 0x5ca   : > { %14320 = vst [vmem:[#allocation50_spill] sm:$0xff] %v12692_v32 }
 0x5cd   : > { %v12694_v44 = vpop.f32.mrb[14].mxu0 }
 0x5ce   : > { %14321 = vst [vmem:[#allocation51_spill] sm:$0xff] %v12694_v44  ;;  %v12696_v61 = vpop.f32.mrb[15].mxu0 }
 0x5cf   : > { %14322 = vst [vmem:[#allocation52_spill] sm:$0xff] %v12696_v61 }
 0x5d1   : > { %v12698_v31 = vpop.f32.mrb[16].mxu0 }
 0x5d2   : > { %14323 = vst [vmem:[#allocation53_spill] sm:$0xff] %v12698_v31  ;;  %v12700_v16 = vpop.f32.mrb[17].mxu0  ;;  %v12753_v31 = vadd.f32 %v9076_v38, %v3107_v4 }
 0x5d3   : > { %14324 = vst [vmem:[#allocation54_spill] sm:$0xff] %v12700_v16 }
 0x5d5   : > { %v12702_v42 = vpop.f32.mrb[18].mxu0 }
 0x5d6   : > { %14325 = vst [vmem:[#allocation55_spill] sm:$0xff] %v12702_v42  ;;  %v12704_v26 = vpop.f32.mrb[19].mxu0 }
 0x5d7   : > { %14326 = vst [vmem:[#allocation56_spill] sm:$0xff] %v12704_v26 }
 0x5e2   : > { %v9870_v8 = vpop.f32.mrb[20].mxu0 }
 0x5e3   : > { %v12715_v18 = vadd.f32 %v9870_v8, %v12709_v15  ;;  %v2652_v6 = vpop.f32.mrb[21].mxu0  ;;  %v12729_v8 = vadd.f32 %v9877_v9, %v12709_v15 }
 0x5e4   : > { %v12717_v53 = vadd.f32 %v9076_v38, %v2652_v6 }
 0x5e5   : > { %v3301_v12 = vsel %vm1693_vm3, %v12715_v18, -inf }
 0x5e6   : > { %3302 = vmax.xlane.f32.xlu1 %v3301_v12  ;;  %v3298_v17 = vsel %vm1693_vm3, %v12717_v53, -inf }
 0x5e7   : > { %3299 = vmax.xlane.f32.xlu0 %v3298_v17  ;;  %v12738_v17 = vadd.f32 %v9905_v25, %v12709_v15 }
 0x5ea   : > { %v9884_v2 = vpop.f32.mrb[22].mxu0 }
 0x5eb   : > { %v12724_v42 = vadd.f32 %v9884_v2, %v12709_v15  ;;  %v2834_v3 = vpop.f32.mrb[23].mxu0  ;;  %v3307_v2 = vsel %vm1693_vm3, %v12729_v8, -inf }
 0x5ec   : > { %v12726_v26 = vadd.f32 %v9076_v38, %v2834_v3  ;;  %v12743_v3 = vadd.f32 %v9891_v27, %v12709_v15 }
 0x5ed   : > { %v3313_v6 = vsel %vm1693_vm3, %v12724_v42, -inf }
 0x5ee   : > { %3314 = vmax.xlane.f32.xlu1 %v3313_v6  ;;  %v3310_v12 = vsel %vm1693_vm3, %v12726_v26, -inf  ;;  %v3331_v6 = vsel %vm1693_vm3, %v12738_v17, -inf  ;;  %v3319_v25 = vsel %vm1693_vm3, %v12743_v3, -inf }
 0x5ef   : > { %3311 = vmax.xlane.f32.xlu0 %v3310_v12  ;;  %v12749_v12 = vadd.f32 %v9076_v38, %v2925_v19  ;;  %v12761_v19 = vadd.f32 %v9076_v38, %v3289_v20  ;;  %v12775_v20 = vadd.f32 %v9919_v13, %v12709_v15 }
 0x5f1   : > { %v3340_v4 = vsel %vm1693_vm3, %v12761_v19, -inf }
 0x5f2   : > { %3308 = vmax.xlane.f32.xlu1 %v3307_v2  ;;  %v9898_v9 = vpop.f32.mrb[24].mxu0  ;;  %v3316_v2 = vsel %vm1693_vm3, %v12749_v12, -inf }
 0x5f3   : > { %v3016_v7 = vpop.f32.mrb[25].mxu0  ;;  %3305 = vmax.xlane.f32.xlu0 %v3304_v35  ;;  %v3328_v35 = vsel %vm1693_vm3, %v12753_v31, -inf }
 0x5f4   : > { %v12757_v37 = vadd.f32 %v9076_v38, %v3016_v7  ;;  %v12772_v7 = vadd.f32 %v9898_v9, %v12709_v15 }
 0x5f6   : > { %3332 = vmax.xlane.f32.xlu1 %v3331_v6  ;;  %v3322_v6 = vsel %vm1693_vm3, %v12757_v37, -inf }
 0x5f7   : > { %3320 = vmax.xlane.f32.xlu0 %v3319_v25  ;;  %v3325_v25 = vsel %vm1693_vm3, %v12772_v7, -inf }
 0x5fa   : > { %v9912_v27 = vpop.f32.mrb[26].mxu0 }
 0x5fb   : > { %v3198_v16 = vpop.f32.mrb[27].mxu0  ;;  %3317 = vmax.xlane.f32.xlu0 %v3316_v2  ;;  %v3343_v2 = vsel %vm1693_vm3, %v12775_v20, -inf  ;;  %v12832_v44 = vadd.f32 %v9912_v27, %v12709_v15 }
 0x5fd   : > { %14327 = vst [vmem:[#allocation57_spill] sm:$0xff] %v12832_v44 }
 0x5ff   : > { %3329 = vmax.xlane.f32.xlu0 %v3328_v35  ;;  %v12781_v35 = vpop.permute.xlu1 %11015 }
 0x603   : > { %3323 = vmax.xlane.f32.xlu0 %v3322_v6  ;;  %v12783_v6 = vadd.f32 %v9076_v38, %v3198_v16  ;;  %v12787_v9 = vpop.permute.xlu1 %11020  ;;  %v12799_v38 = vpop.permute.xlu0 %11025 }
 0x607   : > { %11055 = vrot.lane.b32.xlu1 %v12238_v24, %s11679_s13  ;;  %3341 = vmax.xlane.f32.xlu0 %v3340_v4  ;;  %v3334_v4 = vsel %vm1693_vm3, %v12783_v6, -inf  ;;  %v12791_v13 = vpop.permute.xlu1 %11030 }
 0x61d   : > { %5016 = vrot.lane.b32.xlu0 %v12204_v0, %s11680_s14 }
 0x62b   : > { %3326 = vmax.xlane.f32.xlu1 %v3325_v25  ;;  %v12797_v25 = vpop.permute.xlu1 %4563 }
 0x62f   : > { %3344 = vmax.xlane.f32.xlu1 %v3343_v2  ;;  %v12801_v16 = vpop.permute.xlu1 %4652  ;;  %v12803_v2 = vpop.permute.xlu0 %4561 }
 0x633   : > { %v12811_v0 = vpop.permute.xlu0 %11035 }
 0x63c   : > { %3335 = vmax.xlane.f32.xlu0 %v3334_v4  ;;  %v12807_v4 = vpop.permute.xlu1 %11040 }
 0x640   : > { %5018 = vrot.lane.b32.xlu1 %v12202_v55, %s11680_s14  ;;  %v12815_v55 = vpop.permute.xlu1 %4745 }
 0x644   : > { %11060 = vrot.lane.b32.xlu1 %v12164_v30, %s11678_s26  ;;  %v12821_v39 = vpop.permute.xlu1 %11045 }
 0x648   : > { %11065 = vrot.lane.b32.xlu1 %v12230_v10, %s11679_s13  ;;  %v12817_v10 = vpop.permute.xlu0 %4654 }
 0x652   : > { %5107 = vrot.lane.b32.xlu0 %v12226_v46, %s11680_s14  ;;  %v12825_v46 = vpop.permute.xlu0 %4743 }
 0x656   : > { %5109 = vrot.lane.b32.xlu0 %v12224_v43, %s11680_s14  ;;  %v12829_v43 = vpop.permute.xlu1 %4836  ;;  %v12834_v61 = vpop.permute.xlu0 %4834 }
 0x65a   : > { %11070 = vrot.lane.b32.xlu0 %v12184_v14, %s11678_s26  ;;  %v12838_v21 = vpop.permute.xlu1 %11050  ;;  %v12840_v56 = vpop.permute.xlu0 %4925 }
 0x65e   : > { %5200 = vrot.lane.b32.xlu0 %v12218_v41, %s11680_s14  ;;  %v3337_v41 = vsel %vm1693_vm3, %v12832_v44, -inf  ;;  %v12842_v29 = vpop.permute.xlu1 %4927 }
 0x65f   : > { %14328 = vst [vmem:[#allocation58_spill] sm:$0xff] %v12842_v29 }
 0x662   : > { %11075 = vrot.lane.b32.xlu0 %v12216_v40, %s11678_s26 }
 0x666   : > { %11080 = vrot.lane.b32.xlu0 %v12238_v24, %s11678_s26  ;;  %s11604_s26 = scalar_lea.vmem %s11603_s21, 4096 }
 0x66c   : > { %3338 = vmax.xlane.f32.xlu1 %v3337_v41 }
 0x673   : > { %v12845_v34 = vpop.xlane.xlu1 %3302 }
 0x674   : > { %v3300_v32 = vpop.xlane.xlu0 %3299 }
 0x675   : > { %v3346_v24 = vsub.f32 %v12717_v53, %v3300_v32 }
 0x677   : > { %v3362_v30 = vmul.f32 1.442695, %v3346_v24  ;;  %v1790_v24 = vsel %vm1693_vm3, %v12565_v51, 0.0  ;;  %v1802_v51 = vsel %vm1693_vm3, %v12613_v36, 0.0  ;;  %v1808_v36 = vsel %vm1693_vm3, %v12491_v62, 0.0 }
 0x679   : > { %11268 = vpow2.f32 %v3362_v30 }
 0x67b   : > { %v12847_v15 = vpop.xlane.xlu1 %3314 }
 0x67c   : > { %v3312_v27 = vpop.xlane.xlu0 %3311 }
 0x67d   : > { %5198 = vrot.lane.b32.xlu1 %v12220_v1, %s11680_s14  ;;  %s11682_s14 = smov 72  }
 0x67f   : > { %v3309_v41 = vpop.xlane.xlu1 %3308 }
 0x680   : > { %v3349_v40 = vsub.f32 %v12729_v8, %v3309_v41  ;;  %v3306_v22 = vpop.xlane.xlu0 %3305 }
 0x681   : > { %v3348_v44 = vsub.f32 %v12733_v60, %v3306_v22  ;;  %v1796_v22 = vsel %vm1693_vm3, %v12457_v58, 0.0 }
 0x682   : > { %v3368_v14 = vmul.f32 1.442695, %v3349_v40 }
 0x683   : > { %v12853_v45 = vpop.eup %11268  ;;  %v3366_v53 = vmul.f32 1.442695, %v3348_v44  ;;  %v3333_v8 = vpop.xlane.xlu1 %3332 }
 0x684   : > { %9924 = vmatprep.mubr.msk.f32.mxu0 %vm1693_vm3, %v12853_v45  ;;  %v3321_v30 = vpop.xlane.xlu0 %3320  ;;  %v3357_v60 = vsub.f32 %v12738_v17, %v3333_v8  ;;  %v11022_v8 = vunpack.i.l.bf16 %v12787_v9 }
 0x685   : > { %11270 = vpow2.f32 %v3366_v53  ;;  %1791 = vadd.xlane.f32.xlu0 %v1790_v24  ;;  %v3353_v32 = vsub.f32 %v12743_v3, %v3321_v30  ;;  %v11017_v3 = vunpack.i.l.bf16 %v12781_v35 }
 0x686   : > { %11272 = vpow2.f32 %v3368_v14  ;;  %v11018_v14 = vunpack.i.h.bf16 %v12781_v35  ;;  %v3384_v58 = vmul.f32 1.442695, %v3357_v60  ;;  %v1814_v35 = vsel %vm1693_vm3, %v12621_v52, 0.0 }
 0x687   : > { %v3376_v44 = vmul.f32 1.442695, %v3353_v32  ;;  %v11023_v32 = vunpack.i.h.bf16 %v12787_v9  ;;  %v11028_v52 = vunpack.i.h.bf16 %v12799_v38 }
 0x688   : > { %v3318_v41 = vpop.xlane.xlu0 %3317 }
 0x689   : > { %v3352_v40 = vsub.f32 %v12749_v12, %v3318_v41  ;;  %1797 = vadd.xlane.f32.xlu0 %v1796_v22 }
 0x68b   : > { %v3374_v1 = vmul.f32 1.442695, %v3352_v40 }
 0x68c   : > { %v3330_v29 = vpop.xlane.xlu0 %3329 }
 0x68d   : > { %11274 = vpow2.f32 %v3374_v1  ;;  %v3356_v53 = vsub.f32 %v12753_v31, %v3330_v29  ;;  %1803 = vadd.xlane.f32.xlu0 %v1802_v51  ;;  %v10548_v1 = vpack.c.bf16 %v11018_v14, %v11017_v3  ;;  %v3350_v29 = vsub.f32 %v12726_v26, %v3312_v27 }
 0x68e   : > { %11276 = vpow2.f32 %v3376_v44  ;;  %v1820_v26 = vsel %vm1693_vm3, %v12507_v59, 0.0  ;;  %v1826_v59 = vsel %vm1693_vm3, %v12631_v28, 0.0  ;;  %v1793_v51 = vsel %vm1693_vm3, %v12611_v11, 0.0 }
 0x68f   : > { %v12869_v12 = vpop.eup %11270  ;;  %v3382_v30 = vmul.f32 1.442695, %v3356_v53  ;;  %v3370_v22 = vmul.f32 1.442695, %v3350_v29  ;;  %v1832_v14 = vsel %vm1693_vm3, %v12521_v63, 0.0  ;;  %v3394_v53 = vsel %vm1693_vm3, %v12853_v45, 0.0 }
 0x690   : > { %v11273_v17 = vpop.eup %11272  ;;  %9931 = vmatprep.mubr.msk.f32.mxu1 %vm1693_vm3, %v12869_v12  ;;  %v3324_v24 = vpop.xlane.xlu0 %3323  ;;  %v1805_v63 = vsel %vm1693_vm3, %v12619_v5, 0.0  ;;  %v1817_v5 = vsel %vm1693_vm3, %v12629_v57, 0.0 }
 0x691   : > { %11278 = vpow2.f32 %v3382_v30  ;;  %1809 = vadd.xlane.f32.xlu0 %v1808_v36  ;;  %9932 = vmatmul.mubr.msk.f32.vlgmr.msra.gmra.mrb[36].mxu1 %vm1693_vm3, %v11273_v17  ;;  %v3354_v44 = vsub.f32 %v12757_v37, %v3324_v24  ;;  %v1799_v37 = vsel %vm1693_vm3, %v12459_v54, 0.0  ;;  %v3347_v30 = vsub.f32 %v12715_v18, %v12845_v34  ;;  %v12942_v34 = vpop.permute.xlu1 %11055 }
 0x692   : > { %11280 = vpow2.f32 %v3384_v58  ;;  %10543 = vmatpush3.bf16.msra.mxu1 %v12663_v33  ;;  %v11027_v33 = vunpack.i.l.bf16 %v12799_v38  ;;  %v1811_v54 = vsel %vm1693_vm3, %v12495_v48, 0.0  ;;  %v3403_v45 = vsel %vm1693_vm3, %v11273_v17, 0.0 }
 0x693   : > { %10549 = vmatprep.subr.bf16.mxu1 %v10548_v1  ;;  %v3378_v3 = vmul.f32 1.442695, %v3354_v44  ;;  %v3364_v24 = vmul.f32 1.442695, %v3347_v30  ;;  %v3351_v36 = vsub.f32 %v12724_v42, %v12847_v15  ;;  %v1823_v48 = vsel %vm1693_vm3, %v12509_v47, 0.0 }
 0x694   : > { %v3342_v31 = vpop.xlane.xlu0 %3341  ;;  %v12903_v38 = vpack.c.bf16 %v11028_v52, %v11027_v33  ;;  %v1829_v15 = vsel %vm1693_vm3, %v12639_v49, 0.0  ;;  %v1835_v47 = vsel %vm1693_vm3, %v12551_v23, 0.0  ;;  %v11032_v44 = vunpack.i.l.bf16 %v12791_v13 }
 0x695   : > { %v3360_v62 = vsub.f32 %v12761_v19, %v3342_v31  ;;  %1815 = vadd.xlane.f32.xlu0 %v1814_v35  ;;  %v10556_v19 = vpack.c.bf16 %v11023_v32, %v11022_v8  ;;  %v3372_v18 = vmul.f32 1.442695, %v3351_v36 }
 0x697   : > { %v12883_v41 = vpop.eup %11274  ;;  %v3390_v40 = vmul.f32 1.442695, %v3360_v62 }
 0x698   : > { %v12885_v60 = vpop.eup %11276  ;;  %9945 = vmatprep.mubr.msk.f32.mxu1 %vm1693_vm3, %v12883_v41 }
 0x699   : > { %11282 = vpow2.f32 %v3390_v40  ;;  %1821 = vadd.xlane.f32.xlu0 %v1820_v26  ;;  %9946 = vmatmul.mubr.msk.f32.vlgmr.msra.gmra.mrb[38].mxu1 %vm1693_vm3, %v12885_v60  ;;  %v12960_v26 = vpop.permute.xlu0 %5016 }
 0x69a   : > { %10551 = vmatpush3.bf16.msra.mxu1 %v10548_v1  ;;  %11284 = vpow2.f32 %v3370_v22  ;;  %v3400_v1 = vsel %vm1693_vm3, %v12869_v12, 0.0  ;;  %v3412_v12 = vsel %vm1693_vm3, %v12883_v41, 0.0 }
 0x69b   : > { %v12895_v9 = vpop.eup %11278  ;;  %10557 = vmatprep.subr.bf16.mxu1 %v10556_v19  ;;  %11286 = vpow2.f32 %v3378_v3 }
 0x69c   : > { %v12897_v27 = vpop.eup %11280  ;;  %9959 = vmatprep.mubr.msk.f32.mxu1 %vm1693_vm3, %v12895_v9  ;;  %11288 = vpow2.f32 %v3364_v24 }
 0x69d   : > { %1827 = vadd.xlane.f32.xlu0 %v1826_v59  ;;  %9960 = vmatmul.mubr.msk.f32.vlgmr.msra.gmra.mrb[40].mxu1 %vm1693_vm3, %v12897_v27  ;;  %11290 = vpow2.f32 %v3372_v18  ;;  %v11033_v59 = vunpack.i.h.bf16 %v12791_v13  ;;  %v3415_v13 = vsel %vm1693_vm3, %v12885_v60, 0.0 }
 0x69e   : > { %10559 = vmatpush3.bf16.msra.mxu1 %v10556_v19 }
 0x69f   : > { %10562 = vmatprep.subr.msk.bf16.mxu1 %vm12268_vm2, %v12903_v38 }
 0x6a1   : > { %1794 = vadd.xlane.f32.xlu1 %v1793_v51  ;;  %1833 = vadd.xlane.f32.xlu0 %v1832_v14 }
 0x6a3   : > { %v12915_v28 = vpop.eup %11282 }
 0x6a4   : > { %9973 = vmatprep.mubr.msk.f32.mxu1 %vm1693_vm3, %v12915_v28  ;;  %v12923_v58 = vpop.eup %11284 }
 0x6a5   : > { %1800 = vadd.xlane.f32.xlu1 %v1799_v37  ;;  %3395 = vadd.xlane.f32.xlu0 %v3394_v53  ;;  %v3406_v11 = vsel %vm1693_vm3, %v12923_v58, 0.0  ;;  %v12940_v29 = vpop.eup %11286  ;;  %v10566_v53 = vpack.c.bf16 %v11033_v59, %v11032_v44  ;;  %v3436_v59 = vsel %vm1693_vm3, %v12915_v28, 0.0 }
 0x6a6   : > { %v3418_v42 = vsel %vm1693_vm3, %v12940_v29, 0.0  ;;  %v11289_v32 = vpop.eup %11288 }
 0x6a7   : > { %v3397_v49 = vsel %vm1693_vm3, %v11289_v32, 0.0  ;;  %v11291_v41 = vpop.eup %11290 }
 0x6a8   : > { %v3409_v40 = vsel %vm1693_vm3, %v11291_v41, 0.0 }
 0x6a9   : > { %1806 = vadd.xlane.f32.xlu1 %v1805_v63  ;;  %3407 = vadd.xlane.f32.xlu0 %v3406_v11 }
 0x6ad   : > { %1812 = vadd.xlane.f32.xlu1 %v1811_v54  ;;  %3404 = vadd.xlane.f32.xlu0 %v3403_v45  ;;  %v11042_v45 = vunpack.i.l.bf16 %v12807_v4 }
 0x6b1   : > { %1818 = vadd.xlane.f32.xlu1 %v1817_v5  ;;  %3401 = vadd.xlane.f32.xlu0 %v3400_v1 }
 0x6b5   : > { %1824 = vadd.xlane.f32.xlu1 %v1823_v48  ;;  %3419 = vadd.xlane.f32.xlu0 %v3418_v42  ;;  %v11047_v48 = vunpack.i.l.bf16 %v12821_v39 }
 0x6b8   : > { %v3327_v57 = vpop.xlane.xlu1 %3326 }
 0x6b9   : > { %v3355_v17 = vsub.f32 %v12772_v7, %v3327_v57  ;;  %1830 = vadd.xlane.f32.xlu1 %v1829_v15  ;;  %3413 = vadd.xlane.f32.xlu0 %v3412_v12 }
 0x6bb   : > { %v3380_v31 = vmul.f32 1.442695, %v3355_v17  ;;  %v11057_v17 = vunpack.i.l.bf16 %v12942_v34 }
 0x6bc   : > { %v3345_v35 = vpop.xlane.xlu1 %3344 }
 0x6bd   : > { %11292 = vpow2.f32 %v3380_v31  ;;  %v3361_v8 = vsub.f32 %v12775_v20, %v3345_v35  ;;  %1836 = vadd.xlane.f32.xlu1 %v1835_v47  ;;  %v14331_v47 = vld [vmem:[#allocation25_spill] sm:$0xff] }
 0x6bf   : > { %v3392_v62 = vmul.f32 1.442695, %v3361_v8  ;;  %v14332_v8 = vld [vmem:[#allocation57_spill] sm:$0xff] }
 0x6c0   : > { %v12956_v22 = vpop.permute.xlu1 %5018 }
 0x6c1   : > { %11294 = vpow2.f32 %v3392_v62  ;;  %3398 = vadd.xlane.f32.xlu1 %v3397_v49 }
 0x6c4   : > { %v11061_v7 = vpop.permute.xlu1 %11060 }
 0x6c5   : > { %v11063_v52 = vunpack.i.h.bf16 %v11061_v7  ;;  %v11062_v23 = vunpack.i.l.bf16 %v11061_v7  ;;  %3410 = vadd.xlane.f32.xlu1 %v3409_v40  ;;  %v14333_v7 = vld [vmem:[#allocation28_spill] sm:$0xff]  ;;  %v14334_v40 = vld [vmem:[#allocation34_spill] sm:$0xff] }
 0x6c7   : > { %v12962_v33 = vpop.eup %11292  ;;  %v10528_v20 = vpack.c.bf16 %v11063_v52, %v11062_v23  ;;  %v3427_v23 = vsel %vm1693_vm3, %v12897_v27, 0.0  ;;  %v9126_v27 = vld [vmem:[%s14207_s6 + $0x8] sm:$0xff] }
 0x6c8   : > { %v3421_v19 = vsel %vm1693_vm3, %v12962_v33, 0.0  ;;  %v11066_v35 = vpop.permute.xlu1 %11065 }
 0x6c9   : > { %10529 = vmatprep.subr.bf16.mxu0 %v10528_v20  ;;  %3422 = vadd.xlane.f32.xlu1 %v3421_v19  ;;  %v3336_v51 = vpop.xlane.xlu0 %3335 }
 0x6ca   : > { %v3358_v14 = vsub.f32 %v12783_v6, %v3336_v51  ;;  %10531 = vmatpush3.bf16.msra.mxu0 %v10528_v20  ;;  %v11038_v6 = vunpack.i.h.bf16 %v12811_v0  ;;  %v14335_v51 = vld [vmem:[#allocation19_spill] sm:$0xff] }
 0x6cb   : > { %v12969_v3 = vpop.eup %11294 }
 0x6cc   : > { %v3386_v37 = vmul.f32 1.442695, %v3358_v14  ;;  %9974 = vmatmul.mubr.msk.f32.vlgmr.msra.gmra.mrb[42].mxu1 %vm1693_vm3, %v12969_v3 }
 0x6cd   : > { %10565 = vmatpush3.bf16.xpose.msk.msra.mxu1 %vm12268_vm2, %v12903_v38  ;;  %9925 = vmatmul.mubr.msk.f32.vlgmr.msra.gmra.mrb[28].mxu0 %vm1693_vm3, %v11289_v32  ;;  %v12979_v63 = vpop.permute.xlu0 %5107  ;;  %v11037_v38 = vunpack.i.l.bf16 %v12811_v0  ;;  %v11043_v0 = vunpack.i.h.bf16 %v12807_v4  ;;  %v3424_v4 = vsel %vm1693_vm3, %v12895_v9, 0.0 }
 0x6ce   : > { %11296 = vpow2.f32 %v3386_v37  ;;  %3416 = vadd.xlane.f32.xlu1 %v3415_v13  ;;  %10032 = vmatprep.mubr.msk.f32.mxu1 %vm986_vm1, %v12803_v2 }
 0x6cf   : > { %10568 = vmatprep.subr.msk.bf16.mxu1 %vm12268_vm2, %v10566_v53  ;;  %9938 = vmatprep.mubr.msk.f32.mxu0 %vm1693_vm3, %v12923_v58  ;;  %v10572_v60 = vpack.c.bf16 %v11038_v6, %v11037_v38 }
 0x6d1   : > { %v12989_v11 = vpop.permute.xlu0 %5109 }
 0x6d4   : > { %10033 = vmatmul.mubr.msk.f32.vlgmr.msra.gmra.mrb[44].mxu1 %vm986_vm1, %v12797_v25 }
 0x6d5   : > { %10571 = vmatpush3.bf16.xpose.msk.msra.mxu1 %vm12268_vm2, %v10566_v53  ;;  %10039 = vmatprep.mubr.msk.f32.mxu1 %vm986_vm1, %v12801_v16  ;;  %v11071_v2 = vpop.permute.xlu0 %11070  ;;  %v10578_v16 = vpack.c.bf16 %v11043_v0, %v11042_v45  ;;  %v14336_v53 = vld [vmem:[#allocation33_spill] sm:$0xff] }
 0x6d6   : > { %10574 = vmatprep.subr.msk.bf16.mxu1 %vm12268_vm2, %v10572_v60  ;;  %v11073_v58 = vunpack.i.h.bf16 %v11071_v2  ;;  %v11072_v30 = vunpack.i.l.bf16 %v11071_v2 }
 0x6d8   : > { %v11297_v54 = vpop.eup %11296  ;;  %v10536_v24 = vpack.c.bf16 %v11073_v58, %v11072_v30 }
 0x6d9   : > { %v13001_v36 = vpop.permute.xlu0 %5200  ;;  %v3430_v25 = vsel %vm1693_vm3, %v11297_v54, 0.0 }
 0x6da   : > { %3431 = vadd.xlane.f32.xlu0 %v3430_v25  ;;  %10537 = vmatprep.subr.bf16.mxu0 %v10536_v24 }
 0x6db   : > { %10539 = vmatpush3.bf16.msra.mxu0 %v10536_v24 }
 0x6dc   : > { %10040 = vmatmul.mubr.msk.f32.vlgmr.msra.gmra.mrb[46].mxu1 %vm986_vm1, %v12817_v10  ;;  %v11048_v10 = vunpack.i.h.bf16 %v12821_v39  ;;  %v11053_v39 = vunpack.i.h.bf16 %v12838_v21 }
 0x6dd   : > { %10577 = vmatpush3.bf16.xpose.msk.msra.mxu1 %vm12268_vm2, %v10572_v60  ;;  %10046 = vmatprep.mubr.msk.f32.mxu1 %vm986_vm1, %v12825_v46  ;;  %v11076_v5 = vpop.permute.xlu0 %11075 }
 0x6de   : > { %10580 = vmatprep.subr.msk.bf16.mxu1 %vm12268_vm2, %v10578_v16  ;;  %v11078_v1 = vunpack.i.h.bf16 %v11076_v5  ;;  %v11077_v18 = vunpack.i.l.bf16 %v11076_v5  ;;  %3425 = vadd.xlane.f32.xlu0 %v3424_v4  ;;  %v10584_v9 = vpack.c.bf16 %v11048_v10, %v11047_v48 }
 0x6df   : > { %9939 = vmatmul.mubr.msk.f32.vlgmr.msra.gmra.mrb[30].mxu0 %vm1693_vm3, %v11291_v41 }
 0x6e0   : > { %9952 = vmatprep.mubr.msk.f32.mxu0 %vm1693_vm3, %v12940_v29  ;;  %v10544_v46 = vpack.c.bf16 %v11078_v1, %v11077_v18 }
 0x6e1   : > { %v11081_v42 = vpop.permute.xlu0 %11080 }
 0x6e2   : > { %v11083_v57 = vunpack.i.h.bf16 %v11081_v42  ;;  %v11082_v15 = vunpack.i.l.bf16 %v11081_v42  ;;  %10545 = vmatprep.subr.bf16.mxu0 %v10544_v46 }
 0x6e3   : > { %10547 = vmatpush3.bf16.msra.mxu0 %v10544_v46 }
 0x6e4   : > { %10047 = vmatmul.mubr.msk.f32.vlgmr.msra.gmra.mrb[48].mxu1 %vm986_vm1, %v12815_v55  ;;  %v10552_v12 = vpack.c.bf16 %v11083_v57, %v11082_v15  ;;  %v11052_v55 = vunpack.i.l.bf16 %v12838_v21  ;;  %v14329_v21 = vld [vmem:[#allocation58_spill] sm:$0xff] }
 0x6e5   : > { %10583 = vmatpush3.bf16.xpose.msk.msra.mxu1 %vm12268_vm2, %v10578_v16  ;;  %10053 = vmatprep.mubr.msk.f32.mxu1 %vm986_vm1, %v12834_v61  ;;  %v11058_v61 = vunpack.i.h.bf16 %v12942_v34  ;;  %v11067_v34 = vunpack.i.l.bf16 %v11066_v35 }
 0x6e6   : > { %10586 = vmatprep.subr.msk.bf16.mxu1 %vm12268_vm2, %v10584_v9  ;;  %9953 = vmatmul.mubr.msk.f32.vlgmr.msra.gmra.mrb[32].mxu0 %vm1693_vm3, %v12962_v33  ;;  %v10590_v29 = vpack.c.bf16 %v11053_v39, %v11052_v55  ;;  %v3439_v33 = vsel %vm1693_vm3, %v12969_v3, 0.0  ;;  %v13098_v3 = vld [vmem:[%s14207_s6] sm:$0xff] }
 0x6e7   : > { %10553 = vmatprep.subr.bf16.mxu0 %v10552_v12  ;;  %9966 = vmatprep.mubr.msk.f32.mxu0 %vm1693_vm3, %v11297_v54  ;;  %v10596_v31 = vpack.c.bf16 %v11058_v61, %v11057_v17 }
 0x6e8   : > { %10555 = vmatpush3.bf16.msra.mxu0 %v10552_v12 }
 0x6e9   : > { %9976 = vmatprep.subr.mxu0 %v9126_v27 }
 0x6ec   : > { %10054 = vmatmul.mubr.msk.f32.vlgmr.msra.gmra.mrb[50].mxu1 %vm986_vm1, %v12829_v43  ;;  %v14330_v43 = vld [vmem:[#allocation22_spill] sm:$0xff] }
 0x6ed   : > { %10589 = vmatpush3.bf16.xpose.msk.msra.mxu1 %vm12268_vm2, %v10584_v9  ;;  %10060 = vmatprep.mubr.msk.f32.mxu1 %vm986_vm1, %v12840_v56  ;;  %v11068_v56 = vunpack.i.h.bf16 %v11066_v35 }
 0x6ee   : > { %10592 = vmatprep.subr.msk.bf16.mxu1 %vm12268_vm2, %v10590_v29 }
 0x6ef   : > { %v10602_v49 = vpack.c.bf16 %v11068_v56, %v11067_v34 }
 0x6f4   : > { %10061 = vmatmul.mubr.msk.f32.vlgmr.msra.gmra.mrb[52].mxu1 %vm986_vm1, %v14329_v21  ;;  %11090 = vrot.lane.b32.xlu0 %v14330_v43, %s11681_s22 }
 0x6f5   : > { %10595 = vmatpush3.bf16.xpose.msk.msra.mxu1 %vm12268_vm2, %v10590_v29  ;;  %10067 = vmatprep.mubr.msk.f32.mxu1 %vm986_vm1, %v12960_v26 }
 0x6f6   : > { %10598 = vmatprep.subr.msk.bf16.mxu1 %vm12268_vm2, %v10596_v31 }
 0x6f8   : > { %11095 = vrot.lane.b32.xlu0 %v14331_v47, %s11681_s22 }
 0x6f9   : > { %v3339_v32 = vpop.xlane.xlu1 %3338 }
 0x6fa   : > { %v3359_v62 = vsub.f32 %v14332_v8, %v3339_v32 }
 0x6fc   : > { %v3388_v41 = vmul.f32 1.442695, %v3359_v62  ;;  %10068 = vmatmul.mubr.msk.f32.vlgmr.msra.gmra.mrb[54].mxu1 %vm986_vm1, %v12956_v22  ;;  %11100 = vrot.lane.b32.xlu0 %v14333_v7, %s11681_s22 }
 0x6fd   : > { %10601 = vmatpush3.bf16.xpose.msk.msra.mxu1 %vm12268_vm2, %v10596_v31  ;;  %10074 = vmatprep.mubr.msk.f32.mxu1 %vm986_vm1, %v12979_v63  ;;  %v5199_v26 = vpop.permute.xlu1 %5198 }
 0x6fe   : > { %11298 = vpow2.f32 %v3388_v41  ;;  %10604 = vmatprep.subr.msk.bf16.mxu1 %vm12268_vm2, %v10602_v49 }
 0x700   : > { %11105 = vrot.lane.b32.xlu0 %v14334_v40, %s11681_s22 }
 0x704   : > { %10075 = vmatmul.mubr.msk.f32.vlgmr.msra.gmra.mrb[56].mxu1 %vm986_vm1, %v12989_v11 }
 0x705   : > { %10607 = vmatpush3.bf16.xpose.msk.msra.mxu1 %vm12268_vm2, %v10602_v49  ;;  %10081 = vmatprep.mubr.msk.f32.mxu1 %vm986_vm1, %v5199_v26 }
 0x708   : > { %v11299_v22 = vpop.eup %11298 }
 0x709   : > { %9967 = vmatmul.mubr.msk.f32.vlgmr.msra.gmra.mrb[34].mxu0 %vm1693_vm3, %v11299_v22  ;;  %v3433_v52 = vsel %vm1693_vm3, %v11299_v22, 0.0 }
 0x70a   : > { %3434 = vadd.xlane.f32.xlu1 %v3433_v52  ;;  %9977 = vmatpush3.msra.mxu0 %v9126_v27 }
 0x70b   : > { %10002 = vmatprep.subr.mxu0 %v13098_v3 }
 0x70c   : > { %10082 = vmatmul.mubr.msk.f32.vlgmr.msra.gmra.mrb[58].mxu1 %vm986_vm1, %v13001_v36 }
 0x70e   : > { %3428 = vadd.xlane.f32.xlu1 %v3427_v23 }
 0x712   : > { %3440 = vadd.xlane.f32.xlu1 %v3439_v33  ;;  %v13080_v20 = vpop.xlane.xlu0 %1791 }
 0x716   : > { %v13082_v19 = vpop.xlane.xlu0 %1797 }
 0x71a   : > { %v13086_v44 = vpop.xlane.xlu0 %1803 }
 0x71e   : > { %v13093_v14 = vpop.xlane.xlu0 %1809 }
 0x71f   : > { %3437 = vadd.xlane.f32.xlu0 %v3436_v59 }
 0x722   : > { %v13101_v28 = vpop.xlane.xlu0 %1815 }
 0x723   : > { %11085 = vrot.lane.b32.xlu1 %v14335_v51, %s11681_s22 }
 0x726   : > { %v13103_v37 = vpop.xlane.xlu0 %1821 }
 0x72a   : > { %v13107_v13 = vpop.xlane.xlu0 %1827 }
 0x72e   : > { %v13109_v63 = vpop.xlane.xlu0 %1833  ;;  %v13113_v11 = vpop.xlane.xlu1 %1794 }
 0x732   : > { %v3396_v6 = vpop.xlane.xlu0 %3395  ;;  %v13115_v2 = vpop.xlane.xlu1 %1800 }
 0x733   : > { %11300 = vrcp.f32 %v3396_v6 }
 0x735   : > { %11110 = vrot.lane.b32.xlu0 %v14336_v53, %s11681_s22 }
 0x736   : > { %v13111_v38 = vpop.xlane.xlu0 %3407  ;;  %v13117_v30 = vpop.xlane.xlu1 %1806 }
 0x73a   : > { %v3405_v60 = vpop.xlane.xlu0 %3404  ;;  %v13121_v0 = vpop.xlane.xlu1 %1812 }
 0x73d   : > { %v11301_v26 = vpop.eup %11300 }
 0x73e   : > { %v3402_v58 = vpop.xlane.xlu0 %3401  ;;  %v13127_v16 = vpop.xlane.xlu1 %1818 }
 0x742   : > { %v13119_v54 = vpop.xlane.xlu0 %3419  ;;  %v13135_v18 = vpop.xlane.xlu1 %1824 }
 0x746   : > { %v13123_v45 = vpop.xlane.xlu0 %3413  ;;  %v13143_v12 = vpop.xlane.xlu1 %1830 }
 0x74a   : > { %v13147_v17 = vpop.xlane.xlu1 %1836 }
 0x74e   : > { %v3399_v31 = vpop.xlane.xlu1 %3398 }
 0x74f   : > { %11302 = vrcp.f32 %v3399_v31 }
 0x750   : > { %11304 = vrcp.f32 %v3402_v58 }
 0x751   : > { %11306 = vrcp.f32 %v3405_v60  ;;  %v13163_v60 = vld [vmem:[%s14206_s5 + $0x28] sm:$0xff] }
 0x752   : > { %v3411_v21 = vpop.xlane.xlu1 %3410  ;;  %11308 = vrcp.f32 %v13111_v38 }
 0x753   : > { %11310 = vrcp.f32 %v3411_v21 }
 0x754   : > { %11312 = vrcp.f32 %v13123_v45 }
 0x756   : > { %v3423_v35 = vpop.xlane.xlu1 %3422 }
 0x759   : > { %v11303_v52 = vpop.eup %11302 }
 0x75a   : > { %v11305_v33 = vpop.eup %11304 }
 0x75b   : > { %v3417_v56 = vpop.xlane.xlu1 %3416  ;;  %v11307_v58 = vpop.eup %11306 }
 0x75c   : > { %11314 = vrcp.f32 %v3417_v56 }
 0x75d   : > { %11316 = vrcp.f32 %v13119_v54 }
 0x764   : > { %v9933_v24 = vpop.f32.mrb[36].mxu1 }
 0x765   : > { %v3607_v36 = vpop.f32.mrb[37].mxu1 }
 0x766   : > { %v4156_v6 = vmul.f32 %v11305_v33, %v3607_v36  ;;  %v13170_v36 = vld [vmem:[%s14206_s5 + $0x20] sm:$0xff] }
 0x767   : > { %v13125_v25 = vpop.xlane.xlu0 %3431 }
 0x76b   : > { %v13129_v5 = vpop.xlane.xlu0 %3425 }
 0x76c   : > { %v13131_v4 = vpop.f32.mrb[38].mxu1  ;;  %11318 = vrcp.f32 %v13129_v5 }
 0x76d   : > { %v13133_v1 = vpop.f32.mrb[39].mxu1  ;;  %11320 = vrcp.f32 %v3423_v35 }
 0x76f   : > { %v11091_v10 = vpop.permute.xlu0 %11090 }
 0x770   : > { %v11093_v48 = vunpack.i.h.bf16 %v11091_v10  ;;  %v11092_v46 = vunpack.i.l.bf16 %v11091_v10  ;;  %v13137_v42 = vpop.f32.mrb[40].mxu1 }
 0x771   : > { %v13139_v57 = vpop.f32.mrb[41].mxu1 }
 0x772   : > { %v10612_v15 = vpack.c.bf16 %v11093_v48, %v11092_v46 }
 0x773   : > { %v13141_v9 = vpop.permute.xlu0 %11095 }
 0x774   : > { %10613 = vmatprep.subr.bf16.mxu1 %v10612_v15 }
 0x775   : > { %10615 = vmatpush3.bf16.msra.mxu1 %v10612_v15  ;;  %v4157_v15 = vmul.f32 %v11307_v58, %v9933_v24 }
 0x777   : > { %v11101_v39 = vpop.permute.xlu0 %11100 }
 0x778   : > { %v11103_v55 = vunpack.i.h.bf16 %v11101_v39  ;;  %v11102_v29 = vunpack.i.l.bf16 %v11101_v39 }
 0x77a   : > { %v13145_v61 = vpack.c.bf16 %v11103_v55, %v11102_v29 }
 0x77c   : > { %10621 = vmatprep.subr.bf16.mxu1 %v13145_v61 }
 0x797   : > { %v13150_v34 = vpop.xlane.xlu1 %3434 }
 0x79b   : > { %v3429_v32 = vpop.xlane.xlu1 %3428 }
 0x79c   : > { %11322 = vrcp.f32 %v3429_v32 }
 0x79d   : > { %11324 = vrcp.f32 %v13125_v25 }
 0x79f   : > { %v13152_v8 = vpop.xlane.xlu1 %3440  ;;  %v13154_v62 = vpop.f32.mrb[42].mxu1 }
 0x7a0   : > { %v9926_v49 = vpop.f32.mrb[28].mxu0  ;;  %v13156_v41 = vpop.f32.mrb[43].mxu1 }
 0x7a1   : > { %v3520_v22 = vpop.f32.mrb[29].mxu0  ;;  %v4155_v59 = vmul.f32 %v11303_v52, %v9926_v49  ;;  %v11309_v52 = vpop.eup %11308 }
 0x7a2   : > { %v4154_v23 = vmul.f32 %v11301_v26, %v3520_v22 }
 0x7a3   : > { %v11086_v27 = vpop.permute.xlu1 %11085 }
 0x7a4   : > { %v11088_v10 = vunpack.i.h.bf16 %v11086_v27  ;;  %v11087_v48 = vunpack.i.l.bf16 %v11086_v27  ;;  %9978 = vmatprep.mubr.msk.f32.mxu0 %vm986_vm1, %v4154_v23  ;;  %v11311_v23 = vpop.eup %11310 }
 0x7a5   : > { %9979 = vmatmul.mubr.msk.f32.vlgmr.msra.gmra.mrb[36].mxu0 %vm986_vm1, %v4155_v59  ;;  %v11313_v59 = vpop.eup %11312 }
 0x7a6   : > { %9981 = vmatprep.mubr.msk.f32.mxu0 %vm986_vm1, %v4156_v6  ;;  %10003 = vmatpush3.msra.mxu0 %v13098_v3  ;;  %v13172_v46 = vpack.c.bf16 %v11088_v10, %v11087_v48  ;;  %v4160_v27 = vmul.f32 %v11313_v59, %v13133_v1  ;;  %v11315_v6 = vpop.eup %11314 }
 0x7a7   : > { %v10034_v39 = vpop.f32.mrb[44].mxu1  ;;  %v4161_v32 = vmul.f32 %v11315_v6, %v13131_v4 }
 0x7a8   : > { %v13175_v55 = vadd.f32 %v10034_v39, %v13163_v60  ;;  %v4643_v29 = vpop.f32.mrb[45].mxu1  ;;  %10609 = vmatprep.subr.bf16.mxu0 %v13172_v46  ;;  %v11317_v39 = vpop.eup %11316 }
 0x7a9   : > { %v13180_v31 = vadd.f32 %v13170_v36, %v4643_v29  ;;  %9982 = vmatmul.mubr.msk.f32.gmra.mrb[38].mxu0 %vm986_vm1, %v4157_v15 }
 0x7aa   : > { %v5292_v3 = vsel %vm1693_vm3, %v13175_v55, -inf }
 0x7ab   : > { %5293 = vmax.xlane.f32.xlu1 %v5292_v3  ;;  %v5289_v24 = vsel %vm1693_vm3, %v13180_v31, -inf  ;;  %v11319_v3 = vpop.eup %11318 }
 0x7ac   : > { %5290 = vmax.xlane.f32.xlu0 %v5289_v24 }
 0x7af   : > { %v10041_v49 = vpop.f32.mrb[46].mxu1 }
 0x7b0   : > { %v13190_v38 = vadd.f32 %v10041_v49, %v13163_v60  ;;  %v4734_v26 = vpop.f32.mrb[47].mxu1 }
 0x7b1   : > { %v13194_v21 = vadd.f32 %v13170_v36, %v4734_v26  ;;  %v11321_v26 = vpop.eup %11320 }
 0x7b2   : > { %v9940_v45 = vpop.f32.mrb[30].mxu0  ;;  %v5298_v22 = vsel %vm1693_vm3, %v13190_v38, -inf }
 0x7b3   : > { %5299 = vmax.xlane.f32.xlu1 %v5298_v22  ;;  %v3694_v56 = vpop.f32.mrb[31].mxu0  ;;  %v5295_v54 = vsel %vm1693_vm3, %v13194_v21, -inf  ;;  %v4159_v5 = vmul.f32 %v11311_v23, %v9940_v45  ;;  %v11323_v45 = vpop.eup %11322  ;;  %v4164_v22 = vmul.f32 %v11319_v3, %v13139_v57 }
 0x7b4   : > { %v4158_v33 = vmul.f32 %v11309_v52, %v3694_v56  ;;  %5296 = vmax.xlane.f32.xlu0 %v5295_v54 }
 0x7b6   : > { %9984 = vmatprep.mubr.msk.f32.mxu0 %vm986_vm1, %v4158_v33  ;;  %v4165_v33 = vmul.f32 %v11323_v45, %v13137_v42 }
 0x7b7   : > { %9985 = vmatmul.mubr.msk.f32.gmra.mrb[40].mxu0 %vm986_vm1, %v4159_v5  ;;  %v10048_v35 = vpop.f32.mrb[48].mxu1 }
 0x7b8   : > { %v13204_v10 = vadd.f32 %v10048_v35, %v13163_v60  ;;  %9987 = vmatprep.mubr.msk.f32.mxu0 %vm986_vm1, %v4160_v27  ;;  %v4825_v48 = vpop.f32.mrb[49].mxu1 }
 0x7b9   : > { %v13209_v58 = vadd.f32 %v13170_v36, %v4825_v48  ;;  %v9954_v15 = vpop.f32.mrb[32].mxu0 }
 0x7ba   : > { %v5304_v1 = vsel %vm1693_vm3, %v13204_v10, -inf  ;;  %v3868_v29 = vpop.f32.mrb[33].mxu0  ;;  %v4163_v4 = vmul.f32 %v11321_v26, %v9954_v15 }
 0x7bb   : > { %5305 = vmax.xlane.f32.xlu1 %v5304_v1  ;;  %v4162_v24 = vmul.f32 %v11317_v39, %v3868_v29  ;;  %9988 = vmatmul.mubr.msk.f32.gmra.mrb[42].mxu0 %vm986_vm1, %v4161_v32  ;;  %v5301_v49 = vsel %vm1693_vm3, %v13209_v58, -inf  ;;  %v13242_v32 = vpop.permute.xlu0 %11105 }
 0x7bc   : > { %5302 = vmax.xlane.f32.xlu0 %v5301_v49 }
 0x7bd   : > { %9990 = vmatprep.mubr.msk.f32.mxu0 %vm986_vm1, %v4162_v24 }
 0x7bf   : > { %9991 = vmatmul.mubr.msk.f32.gmra.mrb[44].mxu0 %vm986_vm1, %v4163_v4  ;;  %v10055_v52 = vpop.f32.mrb[50].mxu1  ;;  %v3438_v39 = vpop.xlane.xlu0 %3437 }
 0x7c0   : > { %v13220_v56 = vadd.f32 %v10055_v52, %v13163_v60  ;;  %9993 = vmatprep.mubr.msk.f32.mxu0 %vm986_vm1, %v4164_v22  ;;  %v4916_v54 = vpop.f32.mrb[51].mxu1  ;;  %11326 = vrcp.f32 %v3438_v39 }
 0x7c1   : > { %v13224_v23 = vadd.f32 %v13170_v36, %v4916_v54  ;;  %11328 = vrcp.f32 %v13150_v34  ;;  %v11325_v34 = vpop.eup %11324 }
 0x7c2   : > { %v5310_v59 = vsel %vm1693_vm3, %v13220_v56, -inf  ;;  %11330 = vrcp.f32 %v13152_v8 }
 0x7c3   : > { %5311 = vmax.xlane.f32.xlu1 %v5310_v59  ;;  %9994 = vmatmul.mubr.msk.f32.gmra.mrb[46].mxu0 %vm986_vm1, %v4165_v33  ;;  %v5307_v57 = vsel %vm1693_vm3, %v13224_v23, -inf  ;;  %11332 = vrcp.f32 %v13080_v20 }
 0x7c4   : > { %5308 = vmax.xlane.f32.xlu0 %v5307_v57  ;;  %11334 = vrcp.f32 %v13113_v11 }
 0x7c5   : > { %11336 = vrcp.f32 %v13082_v19 }
 0x7c6   : > { %11338 = vrcp.f32 %v13115_v2 }
 0x7c7   : > { %v10062_v5 = vpop.f32.mrb[52].mxu1  ;;  %11340 = vrcp.f32 %v13086_v44 }
 0x7c8   : > { %v13233_v27 = vadd.f32 %v10062_v5, %v13163_v60  ;;  %v5007_v35 = vpop.f32.mrb[53].mxu1  ;;  %11342 = vrcp.f32 %v13117_v30  ;;  %v11098_v30 = vunpack.i.h.bf16 %v13141_v9 }
 0x7c9   : > { %v13236_v6 = vadd.f32 %v13170_v36, %v5007_v35  ;;  %11344 = vrcp.f32 %v13093_v14  ;;  %v14338_v14 = vld [vmem:[#allocation49_spill] sm:$0xff] }
 0x7ca   : > { %v5316_v42 = vsel %vm1693_vm3, %v13233_v27, -inf  ;;  %v11327_v52 = vpop.eup %11326  ;;  %11346 = vrcp.f32 %v13121_v0 }
 0x7cb   : > { %5317 = vmax.xlane.f32.xlu1 %v5316_v42  ;;  %v5313_v48 = vsel %vm1693_vm3, %v13236_v6, -inf  ;;  %v11329_v54 = vpop.eup %11328  ;;  %v4168_v42 = vmul.f32 %v11327_v52, %v13156_v41  ;;  %11348 = vrcp.f32 %v13101_v28  ;;  %v14340_v28 = vld [vmem:[#allocation41_spill] sm:$0xff] }
 0x7cc   : > { %5314 = vmax.xlane.f32.xlu0 %v5313_v48  ;;  %v11331_v5 = vpop.eup %11330  ;;  %11350 = vrcp.f32 %v13127_v16  ;;  %v14342_v16 = vld [vmem:[#allocation51_spill] sm:$0xff] }
 0x7cd   : > { %v11333_v48 = vpop.eup %11332  ;;  %11352 = vrcp.f32 %v13103_v37  ;;  %v14343_v37 = vld [vmem:[#allocation44_spill] sm:$0xff] }
 0x7ce   : > { %11354 = vrcp.f32 %v13135_v18 }
 0x7cf   : > { %v10069_v15 = vpop.f32.mrb[54].mxu1  ;;  %11356 = vrcp.f32 %v13107_v13  ;;  %v14346_v13 = vld [vmem:[#allocation54_spill] sm:$0xff] }
 0x7d0   : > { %v13245_v1 = vadd.f32 %v10069_v15, %v13163_v60  ;;  %v5098_v29 = vpop.f32.mrb[55].mxu1  ;;  %v11335_v15 = vpop.eup %11334  ;;  %11358 = vrcp.f32 %v13143_v12  ;;  %v14347_v12 = vld [vmem:[#allocation53_spill] sm:$0xff] }
 0x7d1   : > { %v13248_v3 = vadd.f32 %v13170_v36, %v5098_v29  ;;  %v11337_v29 = vpop.eup %11336  ;;  %11360 = vrcp.f32 %v13109_v63  ;;  %v14348_v63 = vld [vmem:[#allocation46_spill] sm:$0xff] }
 0x7d2   : > { %v5322_v24 = vsel %vm1693_vm3, %v13245_v1, -inf  ;;  %11362 = vrcp.f32 %v13147_v17  ;;  %v14350_v17 = vld [vmem:[#allocation45_spill] sm:$0xff] }
 0x7d3   : > { %5323 = vmax.xlane.f32.xlu1 %v5322_v24  ;;  %v5319_v49 = vsel %vm1693_vm3, %v13248_v3, -inf  ;;  %v11097_v24 = vunpack.i.l.bf16 %v13141_v9 }
 0x7d4   : > { %5320 = vmax.xlane.f32.xlu0 %v5319_v49  ;;  %v11339_v49 = vpop.eup %11338 }
 0x7d5   : > { %v2553_v0 = vmul.f32 %v11339_v49, %v14340_v28 }
 0x7d7   : > { %v10076_v26 = vpop.f32.mrb[56].mxu1 }
 0x7d8   : > { %v13259_v4 = vadd.f32 %v10076_v26, %v13163_v60  ;;  %v5189_v25 = vpop.f32.mrb[57].mxu1  ;;  %v14339_v26 = vld [vmem:[#allocation42_spill] sm:$0xff] }
 0x7d9   : > { %v13263_v45 = vadd.f32 %v13170_v36, %v5189_v25  ;;  %v2552_v25 = vmul.f32 %v11337_v29, %v14339_v26  ;;  %v14351_v29 = vld [vmem:[#allocation56_spill] sm:$0xff] }
 0x7da   : > { %v5328_v22 = vsel %vm1693_vm3, %v13259_v4, -inf }
 0x7db   : > { %5329 = vmax.xlane.f32.xlu0 %v5328_v22  ;;  %v5325_v11 = vsel %vm1693_vm3, %v13263_v45, -inf  ;;  %v11341_v22 = vpop.eup %11340 }
 0x7dc   : > { %v9968_v8 = vpop.f32.mrb[34].mxu0  ;;  %v11343_v9 = vpop.eup %11342 }
 0x7dd   : > { %v4042_v20 = vpop.f32.mrb[35].mxu0  ;;  %v4167_v59 = vmul.f32 %v11329_v54, %v9968_v8  ;;  %v14341_v8 = vld [vmem:[#allocation52_spill] sm:$0xff] }
 0x7de   : > { %v4166_v33 = vmul.f32 %v11325_v34, %v4042_v20  ;;  %v13299_v34 = vpack.c.bf16 %v11098_v30, %v11097_v24  ;;  %v2554_v52 = vmul.f32 %v11341_v22, %v14341_v8  ;;  %v11345_v20 = vpop.eup %11344  ;;  %v14355_v22 = vld [vmem:[#allocation48_spill] sm:$0xff] }
 0x7df   : > { %5326 = vmax.xlane.f32.xlu0 %v5325_v11  ;;  %v10083_v57 = vpop.f32.mrb[58].mxu1  ;;  %v11347_v54 = vpop.eup %11346 }
 0x7e0   : > { %v13273_v19 = vadd.f32 %v10083_v57, %v13163_v60  ;;  %v5280_v35 = vpop.f32.mrb[59].mxu1  ;;  %9996 = vmatprep.mubr.msk.f32.mxu0 %vm986_vm1, %v4166_v33  ;;  %v4169_v60 = vmul.f32 %v11331_v5, %v13154_v62  ;;  %v2551_v62 = vmul.f32 %v11335_v15, %v14338_v14  ;;  %v2556_v33 = vmul.f32 %v11345_v20, %v14343_v37  ;;  %v11349_v11 = vpop.eup %11348  ;;  %v14345_v5 = vld [vmem:[#allocation39_spill] sm:$0xff]  ;;  %v14349_v15 = vld [vmem:[#allocation40_spill] sm:$0xff]  ;;  %v14352_v14 = vld [vmem:[#allocation18_spill] sm:$0xff] }
 0x7e1   : > { %v13278_v2 = vadd.f32 %v13170_v36, %v5280_v35  ;;  %9997 = vmatmul.mubr.msk.f32.gmra.mrb[48].mxu0 %vm986_vm1, %v4167_v59  ;;  %v14337_v36 = vld [vmem:[#allocation50_spill] sm:$0xff]  ;;  %v14344_v59 = vld [vmem:[#allocation43_spill] sm:$0xff]  ;;  %v11351_v57 = vpop.eup %11350  ;;  %v2558_v35 = vmul.f32 %v11349_v11, %v14346_v13 }
 0x7e2   : > { %v5334_v44 = vsel %vm1693_vm3, %v13273_v19, -inf  ;;  %9999 = vmatprep.mubr.msk.f32.mxu0 %vm986_vm1, %v4168_v42  ;;  %v2550_v39 = vmul.f32 %v11333_v48, %v14337_v36  ;;  %v2557_v18 = vmul.f32 %v11347_v54, %v14344_v59  ;;  %v11353_v42 = vpop.eup %11352  ;;  %v2559_v48 = vmul.f32 %v11351_v57, %v14347_v12  ;;  %v14359_v20 = vld [vmem:[#allocation27_spill] sm:$0xff]  ;;  %v11111_v54 = vpop.permute.xlu0 %11110 }
 0x7e3   : > { %5335 = vmax.xlane.f32.xlu1 %v5334_v44  ;;  %v5331_v41 = vsel %vm1693_vm3, %v13278_v2, -inf  ;;  %v11355_v44 = vpop.eup %11354 }
 0x7e4   : > { %5332 = vmax.xlane.f32.xlu0 %v5331_v41  ;;  %v11357_v41 = vpop.eup %11356  ;;  %v2561_v36 = vmul.f32 %v11355_v44, %v14350_v17 }
 0x7e5   : > { %10000 = vmatmul.mubr.msk.f32.gmra.mrb[50].mxu0 %vm986_vm1, %v4169_v60  ;;  %v2560_v60 = vmul.f32 %v11353_v42, %v14348_v63  ;;  %v2562_v30 = vmul.f32 %v11357_v41, %v14351_v29  ;;  %v11108_v63 = vunpack.i.h.bf16 %v13242_v32 }
 0x7e6   : > { %10004 = vmatprep.mubr.msk.f32.mxu0 %vm986_vm1, %v2550_v39  ;;  %v11359_v39 = vpop.eup %11358 }
 0x7e7   : > { %v11361_v24 = vpop.eup %11360 }
 0x7e8   : > { %v11363_v26 = vpop.eup %11362  ;;  %v2564_v28 = vmul.f32 %v11361_v24, %v14355_v22  ;;  %v11113_v24 = vunpack.i.h.bf16 %v11111_v54 }
 0x7e9   : > { %10005 = vmatmul.mubr.msk.f32.vlgmr.msra.gmra.mrb[36].mxu0 %vm986_vm1, %v2551_v62  ;;  %v14353_v62 = vld [vmem:[#allocation55_spill] sm:$0xff] }
 0x7ea   : > { %10611 = vmatpush3.bf16.msra.mxu0 %v13172_v46  ;;  %10007 = vmatprep.mubr.msk.f32.mxu0 %vm986_vm1, %v2552_v25  ;;  %v2555_v46 = vmul.f32 %v11343_v9, %v14342_v16  ;;  %v2563_v49 = vmul.f32 %v11359_v39, %v14353_v62  ;;  %v14354_v25 = vld [vmem:[#allocation17_spill] sm:$0xff]  ;;  %v14357_v9 = vld [vmem:[#allocation47_spill] sm:$0xff]  ;;  %v14360_v16 = vld [vmem:[#allocation20_spill] sm:$0xff] }
 0x7eb   : > { %10617 = vmatprep.subr.bf16.mxu0 %v13299_v34  ;;  %v2565_v8 = vmul.f32 %v11363_v26, %v14357_v9 }
 0x7ed   : > { %10008 = vmatmul.mubr.msk.f32.gmra.mrb[38].mxu0 %vm986_vm1, %v2553_v0  ;;  %v14356_v0 = vld [vmem:[#allocation24_spill] sm:$0xff] }
 0x7ee   : > { %10010 = vmatprep.mubr.msk.f32.mxu0 %vm986_vm1, %v2554_v52  ;;  %v14358_v52 = vld [vmem:[#allocation21_spill] sm:$0xff] }
 0x7f1   : > { %10011 = vmatmul.mubr.msk.f32.gmra.mrb[40].mxu0 %vm986_vm1, %v2555_v46  ;;  %v14361_v46 = vld [vmem:[#allocation23_spill] sm:$0xff] }
 0x7f2   : > { %10013 = vmatprep.mubr.msk.f32.mxu0 %vm986_vm1, %v2556_v33 }
 0x7f4   : > { %11120 = vrot.lane.b32.xlu1 %v14345_v5, %s11681_s22 }
 0x7f5   : > { %10014 = vmatmul.mubr.msk.f32.gmra.mrb[42].mxu0 %vm986_vm1, %v2557_v18 }
 0x7f6   : > { %10016 = vmatprep.mubr.msk.f32.mxu0 %vm986_vm1, %v2558_v35 }
 0x7f8   : > { %11125 = vrot.lane.b32.xlu1 %v14335_v51, %s11682_s14 }
 0x7f9   : > { %10017 = vmatmul.mubr.msk.f32.gmra.mrb[44].mxu0 %vm986_vm1, %v2559_v48 }
 0x7fa   : > { %11115 = vrot.lane.b32.xlu0 %v14349_v15, %s11681_s22  ;;  %10019 = vmatprep.mubr.msk.f32.mxu0 %vm986_vm1, %v2560_v60 }
 0x7fc   : > { %11130 = vrot.lane.b32.xlu1 %v14330_v43, %s11682_s14 }
 0x7fd   : > { %10020 = vmatmul.mubr.msk.f32.gmra.mrb[46].mxu0 %vm986_vm1, %v2561_v36 }
 0x7fe   : > { %6375 = vrot.lane.b32.xlu0 %v14352_v14, %s11683_s28  ;;  %10022 = vmatprep.mubr.msk.f32.mxu0 %vm986_vm1, %v2562_v30 }
 0x800   : > { %6377 = vrot.lane.b32.xlu1 %v14354_v25, %s11683_s28 }
 0x801   : > { %10023 = vmatmul.mubr.msk.f32.gmra.mrb[48].mxu0 %vm986_vm1, %v2563_v49 }
 0x802   : > { %6557 = vrot.lane.b32.xlu0 %v14356_v0, %s11683_s28  ;;  %10025 = vmatprep.mubr.msk.f32.mxu0 %vm986_vm1, %v2564_v28 }
 0x804   : > { %11135 = vrot.lane.b32.xlu1 %v14331_v47, %s11682_s14 }
 0x805   : > { %10026 = vmatmul.mubr.msk.f32.gmra.mrb[50].mxu0 %vm986_vm1, %v2565_v8 }
 0x806   : > { %11145 = vrot.lane.b32.xlu0 %v14334_v40, %s11682_s14 }
 0x808   : > { %6466 = vrot.lane.b32.xlu1 %v14358_v52, %s11683_s28 }
 0x80a   : > { %6648 = vrot.lane.b32.xlu0 %v14359_v20, %s11683_s28 }
 0x80c   : > { %6468 = vrot.lane.b32.xlu1 %v14360_v16, %s11683_s28 }
 0x80e   : > { %11155 = vrot.lane.b32.xlu0 %v14349_v15, %s11682_s14 }
 0x810   : > { %11140 = vrot.lane.b32.xlu1 %v14333_v7, %s11682_s14 }
 0x814   : > { %6559 = vrot.lane.b32.xlu1 %v14361_v46, %s11683_s28  ;;  %v14362_v46 = vld [vmem:[#allocation26_spill] sm:$0xff] }
 0x818   : > { %11150 = vrot.lane.b32.xlu1 %v14336_v53, %s11682_s14 }
 0x838   : > { %v5294_v37 = vpop.xlane.xlu1 %5293 }
 0x839   : > { %v5338_v33 = vsub.f32 %v13175_v55, %v5294_v37  ;;  %v5291_v11 = vpop.xlane.xlu0 %5290  ;;  %v11107_v55 = vunpack.i.l.bf16 %v13242_v32 }
 0x83a   : > { %v5337_v59 = vsub.f32 %v13180_v31, %v5291_v11 }
 0x83b   : > { %v5355_v18 = vmul.f32 1.442695, %v5338_v33  ;;  %v10624_v32 = vpack.c.bf16 %v11108_v63, %v11107_v55 }
 0x83c   : > { %v5353_v57 = vmul.f32 1.442695, %v5337_v59 }
 0x83d   : > { %11364 = vpow2.f32 %v5355_v18 }
 0x83e   : > { %11366 = vpow2.f32 %v5353_v57 }
 0x840   : > { %v5300_v13 = vpop.xlane.xlu1 %5299 }
 0x841   : > { %v5340_v35 = vsub.f32 %v13190_v38, %v5300_v13  ;;  %v5297_v42 = vpop.xlane.xlu0 %5296 }
 0x842   : > { %v5339_v12 = vsub.f32 %v13194_v21, %v5297_v42 }
 0x843   : > { %v5359_v48 = vmul.f32 1.442695, %v5340_v35 }
 0x844   : > { %v5357_v44 = vmul.f32 1.442695, %v5339_v12 }
 0x845   : > { %11368 = vpow2.f32 %v5359_v48 }
 0x846   : > { %11370 = vpow2.f32 %v5357_v44 }
 0x847   : > { %v11365_v60 = vpop.eup %11364 }
 0x848   : > { %v11367_v31 = vpop.eup %11366  ;;  %v5306_v41 = vpop.xlane.xlu1 %5305  ;;  %v5388_v17 = vsel %vm1693_vm3, %v11365_v60, 0.0 }
 0x849   : > { %v5342_v36 = vsub.f32 %v13204_v10, %v5306_v41  ;;  %5389 = vadd.xlane.f32.xlu1 %v5388_v17  ;;  %v5303_v38 = vpop.xlane.xlu0 %5302  ;;  %10088 = vmatprep.mubr.msk.f32.mxu0 %vm1693_vm3, %v11367_v31  ;;  %v5385_v21 = vsel %vm1693_vm3, %v11367_v31, 0.0  ;;  %v11112_v10 = vunpack.i.l.bf16 %v11111_v54 }
 0x84a   : > { %v5341_v39 = vsub.f32 %v13209_v58, %v5303_v38  ;;  %5386 = vadd.xlane.f32.xlu0 %v5385_v21  ;;  %10089 = vmatmul.mubr.msk.f32.vlgmr.msra.gmra.mrb[52].mxu0 %vm1693_vm3, %v11365_v60 }
 0x84b   : > { %v5363_v29 = vmul.f32 1.442695, %v5342_v36  ;;  %10619 = vmatpush3.bf16.msra.mxu0 %v13299_v34  ;;  %v10628_v34 = vpack.c.bf16 %v11113_v24, %v11112_v10 }
 0x84c   : > { %v5361_v30 = vmul.f32 1.442695, %v5341_v39  ;;  %10625 = vmatprep.subr.bf16.mxu0 %v10624_v32 }
 0x84d   : > { %11372 = vpow2.f32 %v5363_v29 }
 0x84e   : > { %11374 = vpow2.f32 %v5361_v30 }
 0x84f   : > { %v11369_v14 = vpop.eup %11368 }
 0x850   : > { %v11371_v62 = vpop.eup %11370  ;;  %v5312_v49 = vpop.xlane.xlu1 %5311  ;;  %v5394_v26 = vsel %vm1693_vm3, %v11369_v14, 0.0 }
 0x851   : > { %v5344_v58 = vsub.f32 %v13220_v56, %v5312_v49  ;;  %5395 = vadd.xlane.f32.xlu0 %v5394_v26  ;;  %10095 = vmatprep.mubr.msk.f32.mxu1 %vm1693_vm3, %v11371_v62  ;;  %v5309_v25 = vpop.xlane.xlu0 %5308  ;;  %v5391_v9 = vsel %vm1693_vm3, %v11371_v62, 0.0 }
 0x852   : > { %v5343_v22 = vsub.f32 %v13224_v23, %v5309_v25  ;;  %10096 = vmatmul.mubr.msk.f32.vlgmr.msra.gmra.mrb[60].mxu1 %vm1693_vm3, %v11369_v14 }
 0x853   : > { %v5367_v28 = vmul.f32 1.442695, %v5344_v58  ;;  %10623 = vmatpush3.bf16.msra.mxu1 %v13145_v61 }
 0x854   : > { %v5365_v0 = vmul.f32 1.442695, %v5343_v22  ;;  %10629 = vmatprep.subr.bf16.mxu1 %v10628_v34 }
 0x855   : > { %11376 = vpow2.f32 %v5367_v28  ;;  %5392 = vadd.xlane.f32.xlu0 %v5391_v9 }
 0x856   : > { %11378 = vpow2.f32 %v5365_v0  ;;  %v9209_v0 = vld [vmem:[%s14207_s6 + $0x10] sm:$0xff] }
 0x857   : > { %v11373_v56 = vpop.eup %11372 }
 0x858   : > { %v11375_v8 = vpop.eup %11374  ;;  %v5318_v52 = vpop.xlane.xlu1 %5317  ;;  %v5400_v20 = vsel %vm1693_vm3, %v11373_v56, 0.0 }
 0x859   : > { %v5346_v23 = vsub.f32 %v13233_v27, %v5318_v52  ;;  %5401 = vadd.xlane.f32.xlu0 %v5400_v20  ;;  %v5315_v16 = vpop.xlane.xlu0 %5314  ;;  %10102 = vmatprep.mubr.msk.f32.mxu0 %vm1693_vm3, %v11375_v8  ;;  %v5397_v33 = vsel %vm1693_vm3, %v11375_v8, 0.0 }
 0x85a   : > { %v5345_v61 = vsub.f32 %v13236_v6, %v5315_v16  ;;  %6650 = vrot.lane.b32.xlu1 %v14362_v46, %s11683_s28  ;;  %10103 = vmatmul.mubr.msk.f32.vlgmr.msra.gmra.mrb[54].mxu0 %vm1693_vm3, %v11373_v56 }
 0x85b   : > { %v5371_v54 = vmul.f32 1.442695, %v5346_v23  ;;  %10627 = vmatpush3.bf16.msra.mxu0 %v10624_v32 }
 0x85c   : > { %v5369_v37 = vmul.f32 1.442695, %v5345_v61 }
 0x85d   : > { %11380 = vpow2.f32 %v5371_v54  ;;  %5398 = vadd.xlane.f32.xlu0 %v5397_v33 }
 0x85e   : > { %11382 = vpow2.f32 %v5369_v37 }
 0x85f   : > { %v11377_v27 = vpop.eup %11376 }
 0x860   : > { %v11379_v11 = vpop.eup %11378  ;;  %v5324_v59 = vpop.xlane.xlu1 %5323  ;;  %v5406_v18 = vsel %vm1693_vm3, %v11377_v27, 0.0 }
 0x861   : > { %v5348_v6 = vsub.f32 %v13245_v1, %v5324_v59  ;;  %5407 = vadd.xlane.f32.xlu0 %v5406_v18  ;;  %v5321_v57 = vpop.xlane.xlu0 %5320  ;;  %10109 = vmatprep.mubr.msk.f32.mxu1 %vm1693_vm3, %v11379_v11  ;;  %v5403_v12 = vsel %vm1693_vm3, %v11379_v11, 0.0 }
 0x862   : > { %v5347_v13 = vsub.f32 %v13248_v3, %v5321_v57  ;;  %10110 = vmatmul.mubr.msk.f32.vlgmr.msra.gmra.mrb[62].mxu1 %vm1693_vm3, %v11377_v27 }
 0x863   : > { %v5375_v35 = vmul.f32 1.442695, %v5348_v6  ;;  %10631 = vmatpush3.bf16.msra.mxu1 %v10628_v34 }
 0x864   : > { %v5373_v42 = vmul.f32 1.442695, %v5347_v13 }
 0x865   : > { %11384 = vpow2.f32 %v5375_v35  ;;  %5404 = vadd.xlane.f32.xlu0 %v5403_v12 }
 0x866   : > { %11386 = vpow2.f32 %v5373_v42 }
 0x867   : > { %v11381_v48 = vpop.eup %11380 }
 0x868   : > { %v11383_v44 = vpop.eup %11382  ;;  %v5330_v63 = vpop.xlane.xlu0 %5329  ;;  %v5412_v1 = vsel %vm1693_vm3, %v11381_v48, 0.0 }
 0x869   : > { %v5350_v55 = vsub.f32 %v13259_v4, %v5330_v63  ;;  %5413 = vadd.xlane.f32.xlu0 %v5412_v1  ;;  %10116 = vmatprep.mubr.msk.f32.mxu0 %vm1693_vm3, %v11383_v44  ;;  %v5409_v23 = vsel %vm1693_vm3, %v11383_v44, 0.0 }
 0x86a   : > { %10117 = vmatmul.mubr.msk.f32.vlgmr.msra.gmra.mrb[56].mxu0 %vm1693_vm3, %v11381_v48 }
 0x86b   : > { %v5379_v3 = vmul.f32 1.442695, %v5350_v55 }
 0x86c   : > { %v5327_v60 = vpop.xlane.xlu0 %5326 }
 0x86d   : > { %11388 = vpow2.f32 %v5379_v3  ;;  %v5349_v31 = vsub.f32 %v13263_v45, %v5327_v60 }
 0x86f   : > { %v11385_v41 = vpop.eup %11384  ;;  %v5377_v17 = vmul.f32 1.442695, %v5349_v31  ;;  %v14363_v31 = vld [vmem:[#allocation29_spill] sm:$0xff] }
 0x870   : > { %v11387_v36 = vpop.eup %11386  ;;  %v5336_v38 = vpop.xlane.xlu1 %5335  ;;  %v5418_v21 = vsel %vm1693_vm3, %v11385_v41, 0.0 }
 0x871   : > { %11390 = vpow2.f32 %v5377_v17  ;;  %v5352_v39 = vsub.f32 %v13273_v19, %v5336_v38  ;;  %5419 = vadd.xlane.f32.xlu0 %v5418_v21  ;;  %v5333_v4 = vpop.xlane.xlu0 %5332  ;;  %10123 = vmatprep.mubr.msk.f32.mxu1 %vm1693_vm3, %v11387_v36  ;;  %v5415_v11 = vsel %vm1693_vm3, %v11387_v36, 0.0 }
 0x872   : > { %v5351_v32 = vsub.f32 %v13278_v2, %v5333_v4  ;;  %10124 = vmatmul.mubr.msk.f32.vlgmr.msra.gmra.mrb[64].mxu1 %vm1693_vm3, %v11385_v41  ;;  %v14364_v4 = vld [vmem:[#allocation30_spill] sm:$0xff] }
 0x873   : > { %v5383_v29 = vmul.f32 1.442695, %v5352_v39 }
 0x874   : > { %v5381_v30 = vmul.f32 1.442695, %v5351_v32  ;;  %v11121_v45 = vpop.permute.xlu1 %11120  ;;  %v14365_v32 = vld [vmem:[#allocation32_spill] sm:$0xff] }
 0x875   : > { %11392 = vpow2.f32 %v5383_v29  ;;  %v11123_v24 = vunpack.i.h.bf16 %v11121_v45  ;;  %v11122_v10 = vunpack.i.l.bf16 %v11121_v45  ;;  %v11116_v14 = vpop.permute.xlu0 %11115  ;;  %v14366_v29 = vld [vmem:[#allocation37_spill] sm:$0xff]  ;;  %v14368_v45 = vld [vmem:[#allocation35_spill] sm:$0xff] }
 0x876   : > { %11394 = vpow2.f32 %v5381_v30  ;;  %v11118_v62 = vunpack.i.h.bf16 %v11116_v14  ;;  %v11117_v49 = vunpack.i.l.bf16 %v11116_v14  ;;  %v14367_v30 = vld [vmem:[#allocation31_spill] sm:$0xff] }
 0x877   : > { %v11389_v26 = vpop.eup %11388  ;;  %v10636_v19 = vpack.c.bf16 %v11123_v24, %v11122_v10  ;;  %v14369_v24 = vld [vmem:[#allocation38_spill] sm:$0xff]  ;;  %v14370_v10 = vld [vmem:[#allocation36_spill] sm:$0xff] }
 0x878   : > { %v11126_v58 = vpop.permute.xlu1 %11125  ;;  %v5424_v25 = vsel %vm1693_vm3, %v11389_v26, 0.0  ;;  %v10632_v22 = vpack.c.bf16 %v11118_v62, %v11117_v49 }
 0x879   : > { %v11128_v34 = vunpack.i.h.bf16 %v11126_v58  ;;  %v11127_v2 = vunpack.i.l.bf16 %v11126_v58  ;;  %5425 = vadd.xlane.f32.xlu0 %v5424_v25  ;;  %v6376_v28 = vpop.permute.xlu0 %6375  ;;  %10637 = vmatprep.subr.bf16.mxu1 %v10636_v19 }
 0x87a   : > { %10633 = vmatprep.subr.bf16.mxu0 %v10632_v22  ;;  %10639 = vmatpush3.bf16.msra.mxu1 %v10636_v19 }
 0x87b   : > { %v11391_v9 = vpop.eup %11390  ;;  %v10640_v56 = vpack.c.bf16 %v11128_v34, %v11127_v2  ;;  %10635 = vmatpush3.bf16.msra.mxu0 %v10632_v22 }
 0x87c   : > { %v11131_v8 = vpop.permute.xlu1 %11130  ;;  %10130 = vmatprep.mubr.msk.f32.mxu0 %vm1693_vm3, %v11391_v9  ;;  %v5421_v52 = vsel %vm1693_vm3, %v11391_v9, 0.0  ;;  %10140 = vmatprep.subr.mxu0 %v9209_v0 }
 0x87d   : > { %5422 = vadd.xlane.f32.xlu0 %v5421_v52  ;;  %v6558_v20 = vpop.permute.xlu0 %6557  ;;  %10642 = vmatprep.subr.msk.bf16.mxu1 %vm12268_vm2, %v10640_v56  ;;  %v11133_v16 = vunpack.i.h.bf16 %v11131_v8  ;;  %v11132_v61 = vunpack.i.l.bf16 %v11131_v8 }
 0x87e   : > { %5410 = vadd.xlane.f32.xlu1 %v5409_v23  ;;  %10131 = vmatmul.mubr.msk.f32.vlgmr.msra.gmra.mrb[58].mxu0 %vm1693_vm3, %v11389_v26 }
 0x87f   : > { %v11393_v46 = vpop.eup %11392  ;;  %10141 = vmatpush3.msra.mxu0 %v9209_v0  ;;  %v10646_v59 = vpack.c.bf16 %v11133_v16, %v11132_v61 }
 0x880   : > { %v11395_v54 = vpop.eup %11394  ;;  %v6378_v37 = vpop.permute.xlu1 %6377  ;;  %v5430_v33 = vsel %vm1693_vm3, %v11393_v46, 0.0 }
 0x881   : > { %5431 = vadd.xlane.f32.xlu0 %v5430_v33  ;;  %v11146_v27 = vpop.permute.xlu0 %11145  ;;  %10137 = vmatprep.mubr.msk.f32.mxu1 %vm1693_vm3, %v11395_v54  ;;  %v5427_v35 = vsel %vm1693_vm3, %v11395_v54, 0.0 }
 0x882   : > { %v11148_v18 = vunpack.i.h.bf16 %v11146_v27  ;;  %v11147_v6 = vunpack.i.l.bf16 %v11146_v27  ;;  %5416 = vadd.xlane.f32.xlu1 %v5415_v11  ;;  %10138 = vmatmul.mubr.msk.f32.vlgmr.msra.gmra.mrb[66].mxu1 %vm1693_vm3, %v11393_v46 }
 0x883   : > { %10645 = vmatpush3.bf16.xpose.msk.msra.mxu1 %vm12268_vm2, %v10640_v56  ;;  %10170 = vmatprep.mubr.msk.f32.mxu1 %vm986_vm1, %v6376_v28 }
 0x884   : > { %v13430_v57 = vpack.c.bf16 %v11148_v18, %v11147_v6  ;;  %v11136_v13 = vpop.permute.xlu1 %11135  ;;  %10648 = vmatprep.subr.msk.bf16.mxu1 %vm12268_vm2, %v10646_v59 }
 0x885   : > { %5428 = vadd.xlane.f32.xlu0 %v5427_v35  ;;  %v11138_v42 = vunpack.i.h.bf16 %v11136_v13  ;;  %v11137_v12 = vunpack.i.l.bf16 %v11136_v13  ;;  %v6649_v21 = vpop.permute.xlu0 %6648 }
 0x886   : > { %10666 = vmatprep.subr.msk.bf16.mxu0 %vm12268_vm2, %v13430_v57 }
 0x887   : > { %v10652_v44 = vpack.c.bf16 %v11138_v42, %v11137_v12 }
 0x888   : > { %v6467_v48 = vpop.permute.xlu1 %6466 }
 0x889   : > { %v11156_v14 = vpop.permute.xlu0 %11155 }
 0x88a   : > { %10171 = vmatmul.mubr.msk.f32.vlgmr.msra.gmra.mrb[68].mxu1 %vm986_vm1, %v6378_v37  ;;  %v11158_v6 = vunpack.i.h.bf16 %v11156_v14  ;;  %v11157_v13 = vunpack.i.l.bf16 %v11156_v14 }
 0x88b   : > { %10651 = vmatpush3.bf16.xpose.msk.msra.mxu1 %vm12268_vm2, %v10646_v59  ;;  %10177 = vmatprep.mubr.msk.f32.mxu1 %vm986_vm1, %v6467_v48 }
 0x88c   : > { %v6469_v63 = vpop.permute.xlu1 %6468  ;;  %10654 = vmatprep.subr.msk.bf16.mxu1 %vm12268_vm2, %v10652_v44 }
 0x890   : > { %v11141_v1 = vpop.permute.xlu1 %11140 }
 0x891   : > { %v11143_v55 = vunpack.i.h.bf16 %v11141_v1  ;;  %v11142_v3 = vunpack.i.l.bf16 %v11141_v1  ;;  %v13506_v1 = vpack.c.bf16 %v11158_v6, %v11157_v13 }
 0x892   : > { %10178 = vmatmul.mubr.msk.f32.vlgmr.msra.gmra.mrb[70].mxu1 %vm986_vm1, %v6469_v63 }
 0x893   : > { %v10658_v60 = vpack.c.bf16 %v11143_v55, %v11142_v3  ;;  %6739 = vrot.lane.b32.xlu1 %v14363_v31, %s11683_s28  ;;  %10657 = vmatpush3.bf16.xpose.msk.msra.mxu1 %vm12268_vm2, %v10652_v44 }
 0x894   : > { %10184 = vmatprep.mubr.msk.f32.mxu1 %vm986_vm1, %v6558_v20  ;;  %v6560_v41 = vpop.permute.xlu1 %6559 }
 0x895   : > { %10660 = vmatprep.subr.msk.bf16.mxu1 %vm12268_vm2, %v10658_v60 }
 0x897   : > { %11160 = vrot.lane.b32.xlu1 %v14345_v5, %s11682_s14 }
 0x898   : > { %v11151_v17 = vpop.permute.xlu1 %11150 }
 0x899   : > { %v11153_v36 = vunpack.i.h.bf16 %v11151_v17  ;;  %v11152_v38 = vunpack.i.l.bf16 %v11151_v17 }
 0x89a   : > { %10185 = vmatmul.mubr.msk.f32.vlgmr.msra.gmra.mrb[72].mxu1 %vm986_vm1, %v6560_v41 }
 0x89b   : > { %v10670_v39 = vpack.c.bf16 %v11153_v36, %v11152_v38  ;;  %6832 = vrot.lane.b32.xlu1 %v14364_v4, %s11683_s28  ;;  %6741 = vrot.lane.b32.xlu0 %v14365_v32, %s11683_s28 }
 0x89c   : > { %10663 = vmatpush3.bf16.xpose.msk.msra.mxu1 %vm12268_vm2, %v10658_v60  ;;  %10191 = vmatprep.mubr.msk.f32.mxu1 %vm986_vm1, %v6649_v21 }
 0x89d   : > { %10672 = vmatprep.subr.msk.bf16.mxu1 %vm12268_vm2, %v10670_v39 }
 0x89f   : > { %6923 = vrot.lane.b32.xlu1 %v14366_v29, %s11683_s28  ;;  %6830 = vrot.lane.b32.xlu0 %v14367_v30, %s11683_s28 }
 0x8a3   : > { %7014 = vrot.lane.b32.xlu1 %v14368_v45, %s11683_s28  ;;  %6921 = vrot.lane.b32.xlu0 %v14369_v24, %s11683_s28 }
 0x8a7   : > { %7012 = vrot.lane.b32.xlu0 %v14370_v10, %s11683_s28  ;;  %s14373_s28 = sld [smem:[#allocation61_spill]] }
 0x8d6   : > { %v5390_v62 = vpop.xlane.xlu1 %5389 }
 0x8d7   : > { %v5387_v49 = vpop.xlane.xlu0 %5386 }
 0x8d8   : > { %11396 = vrcp.f32 %v5387_v49 }
 0x8d9   : > { %11398 = vrcp.f32 %v5390_v62 }
 0x8da   : > { %v6651_v26 = vpop.permute.xlu1 %6650 }
 0x8db   : > { %10192 = vmatmul.mubr.msk.f32.vlgmr.msra.gmra.mrb[74].mxu1 %vm986_vm1, %v6651_v26 }
 0x8dc   : > { %10675 = vmatpush3.bf16.xpose.msk.msra.mxu1 %vm12268_vm2, %v10670_v39 }
 0x8de   : > { %v5396_v19 = vpop.xlane.xlu0 %5395 }
 0x8e2   : > { %v5393_v58 = vpop.xlane.xlu0 %5392  ;;  %v11397_v18 = vpop.eup %11396 }
 0x8e3   : > { %11400 = vrcp.f32 %v5393_v58  ;;  %v11399_v12 = vpop.eup %11398 }
 0x8e4   : > { %11402 = vrcp.f32 %v5396_v19 }
 0x8e6   : > { %v5402_v25 = vpop.xlane.xlu0 %5401 }
 0x8ea   : > { %v5399_v22 = vpop.xlane.xlu0 %5398 }
 0x8eb   : > { %11404 = vrcp.f32 %v5399_v22 }
 0x8ec   : > { %11406 = vrcp.f32 %v5402_v25 }
 0x8ed   : > { %v11401_v31 = vpop.eup %11400 }
 0x8ee   : > { %v5408_v34 = vpop.xlane.xlu0 %5407  ;;  %v11403_v17 = vpop.eup %11402 }
 0x8f2   : > { %v5405_v2 = vpop.xlane.xlu0 %5404 }
 0x8f3   : > { %11408 = vrcp.f32 %v5405_v2 }
 0x8f4   : > { %11410 = vrcp.f32 %v5408_v34 }
 0x8f5   : > { %v11405_v21 = vpop.eup %11404 }
 0x8f6   : > { %v13477_v28 = vpop.xlane.xlu0 %5413  ;;  %v11407_v4 = vpop.eup %11406 }
 0x8fd   : > { %v11409_v45 = vpop.eup %11408 }
 0x8fe   : > { %v13479_v0 = vpop.xlane.xlu0 %5419  ;;  %v11411_v10 = vpop.eup %11410 }
 0x906   : > { %v13481_v9 = vpop.xlane.xlu0 %5425 }
 0x90a   : > { %v13483_v56 = vpop.xlane.xlu0 %5422 }
 0x90b   : > { %v5411_v8 = vpop.xlane.xlu1 %5410 }
 0x90c   : > { %11412 = vrcp.f32 %v5411_v8 }
 0x90d   : > { %11414 = vrcp.f32 %v13477_v28 }
 0x90e   : > { %v13485_v52 = vpop.xlane.xlu0 %5431 }
 0x90f   : > { %v13487_v20 = vpop.xlane.xlu1 %5416 }
 0x910   : > { %11416 = vrcp.f32 %v13487_v20 }
 0x911   : > { %11418 = vrcp.f32 %v13479_v0 }
 0x912   : > { %v13489_v23 = vpop.xlane.xlu0 %5428  ;;  %11420 = vrcp.f32 %v13481_v9 }
 0x913   : > { %v13491_v16 = vpop.permute.xlu1 %6739  ;;  %11422 = vrcp.f32 %v13483_v56 }
 0x914   : > { %11424 = vrcp.f32 %v13489_v23  ;;  %v13548_v23 = vld [vmem:[%s14206_s5 + $0x30] sm:$0xff] }
 0x915   : > { %11426 = vrcp.f32 %v13485_v52  ;;  %v13543_v52 = vld [vmem:[%s14206_s5 + $0x38] sm:$0xff] }
 0x916   : > { %v13493_v61 = vpop.permute.xlu0 %6741  ;;  %v11413_v26 = vpop.eup %11412 }
 0x917   : > { %v11161_v46 = vpop.permute.xlu1 %11160  ;;  %v11415_v58 = vpop.eup %11414 }
 0x918   : > { %v11163_v54 = vunpack.i.h.bf16 %v11161_v46  ;;  %v11162_v37 = vunpack.i.l.bf16 %v11161_v46 }
 0x91a   : > { %v10682_v33 = vpack.c.bf16 %v11163_v54, %v11162_v37  ;;  %v6831_v27 = vpop.permute.xlu0 %6830  ;;  %v11417_v2 = vpop.eup %11416 }
 0x91b   : > { %v6833_v11 = vpop.permute.xlu1 %6832  ;;  %10205 = vmatprep.mubr.msk.f32.mxu1 %vm986_vm1, %v6831_v27  ;;  %v11419_v8 = vpop.eup %11418 }
 0x91c   : > { %10206 = vmatmul.mubr.msk.f32.vlgmr.msra.gmra.mrb[76].mxu1 %vm986_vm1, %v6833_v11  ;;  %10684 = vmatprep.subr.msk.bf16.mxu1 %vm12268_vm2, %v10682_v33  ;;  %v11421_v20 = vpop.eup %11420 }
 0x91d   : > { %v10090_v59 = vpop.f32.mrb[52].mxu0  ;;  %10687 = vmatpush3.bf16.xpose.msk.msra.mxu1 %vm12268_vm2, %v10682_v33  ;;  %v11423_v37 = vpop.eup %11422 }
 0x91e   : > { %v13501_v35 = vpop.permute.xlu0 %6921  ;;  %v5511_v42 = vpop.f32.mrb[53].mxu0  ;;  %v6146_v63 = vmul.f32 %v11399_v12, %v10090_v59 }
 0x91f   : > { %v6145_v48 = vmul.f32 %v11397_v18, %v5511_v42  ;;  %v13503_v44 = vpop.permute.xlu1 %6923  ;;  %v11425_v9 = vpop.eup %11424 }
 0x920   : > { %v11427_v18 = vpop.eup %11426 }
 0x921   : > { %10142 = vmatprep.mubr.msk.f32.mxu0 %vm986_vm1, %v6145_v48 }
 0x922   : > { %v7013_v55 = vpop.permute.xlu0 %7012  ;;  %10143 = vmatmul.mubr.msk.f32.vlgmr.msra.gmra.mrb[36].mxu0 %vm986_vm1, %v6146_v63 }
 0x923   : > { %10669 = vmatpush3.bf16.xpose.msk.msra.mxu0 %vm12268_vm2, %v13430_v57  ;;  %v7015_v3 = vpop.permute.xlu1 %7014  ;;  %10219 = vmatprep.mubr.msk.f32.mxu1 %vm986_vm1, %v7013_v55 }
 0x924   : > { %10678 = vmatprep.subr.msk.bf16.mxu0 %vm12268_vm2, %v13506_v1  ;;  %10220 = vmatmul.mubr.msk.f32.vlgmr.msra.gmra.mrb[78].mxu1 %vm986_vm1, %v7015_v3 }
 0x925   : > { %v10097_v60 = vpop.f32.mrb[60].mxu1 }
 0x926   : > { %v5598_v41 = vpop.f32.mrb[61].mxu1  ;;  %v6148_v38 = vmul.f32 %v11403_v17, %v10097_v60 }
 0x927   : > { %v6147_v36 = vmul.f32 %v11401_v31, %v5598_v41 }
 0x929   : > { %10145 = vmatprep.mubr.msk.f32.mxu0 %vm986_vm1, %v6147_v36 }
 0x92a   : > { %10146 = vmatmul.mubr.msk.f32.gmra.mrb[38].mxu0 %vm986_vm1, %v6148_v38 }
 0x92d   : > { %v10104_v57 = vpop.f32.mrb[54].mxu0 }
 0x92e   : > { %v5685_v39 = vpop.f32.mrb[55].mxu0  ;;  %v6150_v29 = vmul.f32 %v11407_v4, %v10104_v57 }
 0x92f   : > { %v6149_v32 = vmul.f32 %v11405_v21, %v5685_v39 }
 0x931   : > { %10148 = vmatprep.mubr.msk.f32.mxu0 %vm986_vm1, %v6149_v32 }
 0x932   : > { %10149 = vmatmul.mubr.msk.f32.gmra.mrb[40].mxu0 %vm986_vm1, %v6150_v29 }
 0x935   : > { %v10111_v30 = vpop.f32.mrb[62].mxu1 }
 0x936   : > { %v5772_v24 = vpop.f32.mrb[63].mxu1  ;;  %v6152_v62 = vmul.f32 %v11411_v10, %v10111_v30 }
 0x937   : > { %v6151_v14 = vmul.f32 %v11409_v45, %v5772_v24 }
 0x939   : > { %10151 = vmatprep.mubr.msk.f32.mxu0 %vm986_vm1, %v6151_v14 }
 0x93a   : > { %10152 = vmatmul.mubr.msk.f32.gmra.mrb[42].mxu0 %vm986_vm1, %v6152_v62 }
 0x93d   : > { %v10118_v49 = vpop.f32.mrb[56].mxu0 }
 0x93e   : > { %v5859_v19 = vpop.f32.mrb[57].mxu0  ;;  %v6154_v22 = vmul.f32 %v11415_v58, %v10118_v49 }
 0x93f   : > { %v6153_v25 = vmul.f32 %v11413_v26, %v5859_v19 }
 0x941   : > { %10154 = vmatprep.mubr.msk.f32.mxu0 %vm986_vm1, %v6153_v25 }
 0x942   : > { %10155 = vmatmul.mubr.msk.f32.gmra.mrb[44].mxu0 %vm986_vm1, %v6154_v22 }
 0x945   : > { %v10125_v34 = vpop.f32.mrb[64].mxu1 }
 0x946   : > { %v5946_v28 = vpop.f32.mrb[65].mxu1  ;;  %v6156_v0 = vmul.f32 %v11419_v8, %v10125_v34 }
 0x947   : > { %v6155_v46 = vmul.f32 %v11417_v2, %v5946_v28 }
 0x949   : > { %10157 = vmatprep.mubr.msk.f32.mxu0 %vm986_vm1, %v6155_v46 }
 0x94a   : > { %10158 = vmatmul.mubr.msk.f32.gmra.mrb[46].mxu0 %vm986_vm1, %v6156_v0 }
 0x951   : > { %v10132_v54 = vpop.f32.mrb[58].mxu0 }
 0x952   : > { %v6158_v33 = vmul.f32 %v11421_v20, %v10132_v54  ;;  %v6033_v27 = vpop.f32.mrb[59].mxu0 }
 0x953   : > { %v6157_v11 = vmul.f32 %v11423_v37, %v6033_v27 }
 0x955   : > { %v10139_v59 = vpop.f32.mrb[66].mxu1  ;;  %10160 = vmatprep.mubr.msk.f32.mxu0 %vm986_vm1, %v6157_v11 }
 0x956   : > { %v6120_v56 = vpop.f32.mrb[67].mxu1  ;;  %10161 = vmatmul.mubr.msk.f32.gmra.mrb[48].mxu0 %vm986_vm1, %v6158_v33  ;;  %v6160_v13 = vmul.f32 %v11427_v18, %v10139_v59 }
 0x957   : > { %v6159_v6 = vmul.f32 %v11425_v9, %v6120_v56 }
 0x959   : > { %10163 = vmatprep.mubr.msk.f32.mxu0 %vm986_vm1, %v6159_v6 }
 0x95a   : > { %10164 = vmatmul.mubr.msk.f32.gmra.mrb[50].mxu0 %vm986_vm1, %v6160_v13 }
 0x95b   : > { %10198 = vmatprep.mubr.msk.f32.mxu0 %vm986_vm1, %v13491_v16 }
 0x95d   : > { %v10172_v42 = vpop.f32.mrb[68].mxu1 }
 0x95e   : > { %v13551_v12 = vadd.f32 %v10172_v42, %v13543_v52  ;;  %v6457_v48 = vpop.f32.mrb[69].mxu1  ;;  %10199 = vmatmul.mubr.msk.f32.vlgmr.msra.gmra.mrb[60].mxu0 %vm986_vm1, %v13493_v61 }
 0x95f   : > { %v6458_v16 = vadd.f32 %v13548_v23, %v6457_v48  ;;  %10681 = vmatpush3.bf16.xpose.msk.msra.mxu0 %vm12268_vm2, %v13506_v1  ;;  %10212 = vmatprep.mubr.msk.f32.mxu0 %vm986_vm1, %v13501_v35 }
 0x960   : > { %v7106_v63 = vsel %vm1693_vm3, %v13551_v12, -inf }
 0x961   : > { %7107 = vmax.xlane.f32.xlu1 %v7106_v63  ;;  %v7103_v55 = vsel %vm1693_vm3, %v6458_v16, -inf }
 0x962   : > { %7104 = vmax.xlane.f32.xlu0 %v7103_v55 }
 0x965   : > { %v10179_v3 = vpop.f32.mrb[70].mxu1 }
 0x966   : > { %v13565_v60 = vadd.f32 %v10179_v3, %v13543_v52  ;;  %10213 = vmatmul.mubr.msk.f32.vlgmr.msra.gmra.mrb[62].mxu0 %vm986_vm1, %v13503_v44  ;;  %v6548_v61 = vpop.f32.mrb[71].mxu1 }
 0x967   : > { %v13570_v50 = vadd.f32 %v13548_v23, %v6548_v61 }
 0x968   : > { %v7112_v35 = vsel %vm1693_vm3, %v13565_v60, -inf }
 0x969   : > { %7113 = vmax.xlane.f32.xlu0 %v7112_v35  ;;  %v7109_v1 = vsel %vm1693_vm3, %v13570_v50, -inf }
 0x96d   : > { %v10186_v31 = vpop.f32.mrb[72].mxu1  ;;  %7110 = vmax.xlane.f32.xlu0 %v7109_v1 }
 0x96e   : > { %v13577_v41 = vadd.f32 %v10186_v31, %v13543_v52  ;;  %v6639_v17 = vpop.f32.mrb[73].mxu1 }
 0x96f   : > { %v6640_v36 = vadd.f32 %v13548_v23, %v6639_v17 }
 0x970   : > { %v7118_v44 = vsel %vm1693_vm3, %v13577_v41, -inf }
 0x971   : > { %7119 = vmax.xlane.f32.xlu0 %v7118_v44  ;;  %v7115_v38 = vsel %vm1693_vm3, %v6640_v36, -inf }
 0x972   : > { %7116 = vmax.xlane.f32.xlu1 %v7115_v38 }
 0x9ae   : > { %v10193_v57 = vpop.f32.mrb[74].mxu1 }
 0x9af   : > { %v13584_v21 = vadd.f32 %v10193_v57, %v13543_v52  ;;  %v6730_v39 = vpop.f32.mrb[75].mxu1 }
 0x9b0   : > { %v13587_v4 = vadd.f32 %v13548_v23, %v6730_v39 }
 0x9b1   : > { %v7124_v32 = vsel %vm1693_vm3, %v13584_v21, -inf }
 0x9b2   : > { %7125 = vmax.xlane.f32.xlu0 %v7124_v32  ;;  %v7121_v29 = vsel %vm1693_vm3, %v13587_v4, -inf }
 0x9b3   : > { %7122 = vmax.xlane.f32.xlu1 %v7121_v29 }
 0x9ee   : > { %v7108_v34 = vpop.xlane.xlu1 %7107 }
 0x9ef   : > { %v10207_v30 = vpop.f32.mrb[76].mxu1  ;;  %v7105_v45 = vpop.xlane.xlu0 %7104  ;;  %v7152_v56 = vsub.f32 %v13551_v12, %v7108_v34 }
 0x9f0   : > { %v13594_v24 = vadd.f32 %v10207_v30, %v13543_v52  ;;  %v7151_v10 = vsub.f32 %v6458_v16, %v7105_v45  ;;  %v6912_v14 = vpop.f32.mrb[77].mxu1 }
 0x9f1   : > { %v13597_v62 = vadd.f32 %v13548_v23, %v6912_v14  ;;  %v7169_v6 = vmul.f32 1.442695, %v7152_v56 }
 0x9f2   : > { %v7167_v49 = vmul.f32 1.442695, %v7151_v10  ;;  %v7136_v26 = vsel %vm1693_vm3, %v13594_v24, -inf }
 0x9f3   : > { %7137 = vmax.xlane.f32.xlu0 %v7136_v26  ;;  %v7133_v19 = vsel %vm1693_vm3, %v13597_v62, -inf }
 0x9f4   : > { %11428 = vpow2.f32 %v7167_v49  ;;  %7134 = vmax.xlane.f32.xlu1 %v7133_v19 }
 0x9f6   : > { %v7114_v9 = vpop.xlane.xlu0 %7113 }
 0x9f7   : > { %v10221_v58 = vpop.f32.mrb[78].mxu1 }
 0x9f8   : > { %v7094_v25 = vpop.f32.mrb[79].mxu1 }
 0x9f9   : > { %v13604_v22 = vadd.f32 %v13548_v23, %v7094_v25 }
 0x9fa   : > { %v7111_v18 = vpop.xlane.xlu0 %7110 }
 0x9fb   : > { %v7145_v2 = vsel %vm1693_vm3, %v13604_v22, -inf  ;;  %v7153_v13 = vsub.f32 %v13570_v50, %v7111_v18 }
 0x9fc   : > { %7146 = vmax.xlane.f32.xlu1 %v7145_v2 }
 0x9fd   : > { %v7171_v42 = vmul.f32 1.442695, %v7153_v13 }
 0x9fe   : > { %v13608_v28 = vpop.eup %11428  ;;  %v7120_v16 = vpop.xlane.xlu0 %7119 }
 0x9ff   : > { %v7117_v8 = vpop.xlane.xlu1 %7116  ;;  %10226 = vmatprep.mubr.msk.f32.mxu0 %vm1693_vm3, %v13608_v28  ;;  %v7156_v12 = vsub.f32 %v13577_v41, %v7120_v16  ;;  %v7199_v32 = vsel %vm1693_vm3, %v13608_v28, 0.0 }
 0xa00   : > { %v7155_v46 = vsub.f32 %v6640_v36, %v7117_v8 }
 0xa02   : > { %v7175_v0 = vmul.f32 1.442695, %v7155_v46 }
 0xa04   : > { %11430 = vpow2.f32 %v7175_v0 }
 0xa05   : > { %11432 = vpow2.f32 %v7169_v6 }
 0xa06   : > { %11434 = vpow2.f32 %v7171_v42 }
 0xa0d   : > { %11170 = vrot.lane.b32.xlu1 %v14330_v43, %s11684_s15 }
 0xa0e   : > { %v11431_v20 = vpop.eup %11430 }
 0xa0f   : > { %10240 = vmatprep.mubr.msk.f32.mxu1 %vm1693_vm3, %v11431_v20  ;;  %v13658_v3 = vpop.eup %11432  ;;  %v7211_v44 = vsel %vm1693_vm3, %v11431_v20, 0.0 }
 0xa10   : > { %v7202_v50 = vsel %vm1693_vm3, %v13658_v3, 0.0 }
 0xa11   : > { %11175 = vrot.lane.b32.xlu1 %v14331_v47, %s11684_s15 }
 0xa15   : > { %11180 = vrot.lane.b32.xlu1 %v14333_v7, %s11684_s15 }
 0xa19   : > { %11185 = vrot.lane.b32.xlu1 %v14334_v40, %s11684_s15 }
 0xa1d   : > { %11190 = vrot.lane.b32.xlu1 %v14336_v53, %s11684_s15 }
 0xa21   : > { %11195 = vrot.lane.b32.xlu1 %v14349_v15, %s11684_s15 }
 0xa31   : > { %v10200_v54 = vpop.f32.mrb[60].mxu0 }
 0xa32   : > { %v13626_v43 = vadd.f32 %v10200_v54, %v13543_v52  ;;  %v6821_v37 = vpop.f32.mrb[61].mxu0 }
 0xa33   : > { %v13631_v27 = vadd.f32 %v13548_v23, %v6821_v37 }
 0xa34   : > { %v7130_v47 = vsel %vm1693_vm3, %v13626_v43, -inf }
 0xa35   : > { %7131 = vmax.xlane.f32.xlu0 %v7130_v47  ;;  %v7127_v53 = vsel %vm1693_vm3, %v13631_v27, -inf }
 0xa39   : > { %v10214_v33 = vpop.f32.mrb[62].mxu0 }
 0xa3a   : > { %v7003_v7 = vpop.f32.mrb[63].mxu0  ;;  %v13634_v40 = vadd.f32 %v10214_v33, %v13543_v52 }
 0xa3b   : > { %v13639_v15 = vadd.f32 %v13548_v23, %v7003_v7  ;;  %v7154_v23 = vsub.f32 %v13565_v60, %v7114_v9 }
 0xa3c   : > { %v7142_v11 = vsel %vm1693_vm3, %v13634_v40, -inf }
 0xa3d   : > { %v7139_v59 = vsel %vm1693_vm3, %v13639_v15, -inf  ;;  %v7173_v48 = vmul.f32 1.442695, %v7154_v23 }
 0xa3f   : > { %11436 = vpow2.f32 %v7173_v48  ;;  %v7126_v61 = vpop.xlane.xlu0 %7125 }
 0xa40   : > { %v7123_v63 = vpop.xlane.xlu1 %7122  ;;  %v7158_v35 = vsub.f32 %v13584_v21, %v7126_v61 }
 0xa41   : > { %v7157_v60 = vsub.f32 %v13587_v4, %v7123_v63 }
 0xa42   : > { %v7181_v17 = vmul.f32 1.442695, %v7158_v35 }
 0xa43   : > { %v7179_v1 = vmul.f32 1.442695, %v7157_v60 }
 0xa45   : > { %7128 = vmax.xlane.f32.xlu1 %v7127_v53 }
 0xa49   : > { %7143 = vmax.xlane.f32.xlu1 %v7142_v11 }
 0xa4b   : > { %11165 = vrot.lane.b32.xlu0 %v14335_v51, %s11684_s15  ;;  %v13653_v51 = vadd.f32 %v10221_v58, %v13543_v52  ;;  %v13663_v52 = vpop.eup %11434 }
 0xa4c   : > { %v7205_v31 = vsel %vm1693_vm3, %v13663_v52, 0.0  ;;  %v13668_v41 = vpop.eup %11436 }
 0xa4d   : > { %7140 = vmax.xlane.f32.xlu1 %v7139_v59  ;;  %v7148_v55 = vsel %vm1693_vm3, %v13653_v51, -inf  ;;  %v7208_v36 = vsel %vm1693_vm3, %v13668_v41, 0.0 }
 0xa5e   : > { %11200 = vrot.lane.b32.xlu1 %v14345_v5, %s11684_s15  ;;  %v7177_v5 = vmul.f32 1.442695, %v7156_v12  ;;  %s14150_s15 = scalar_lea.hbm %s14375_s27, %s9323_s18 }
 0xa60   : > { %11438 = vpow2.f32 %v7177_v5 }
 0xa61   : > { %11440 = vpow2.f32 %v7179_v1 }
 0xa62   : > { %11442 = vpow2.f32 %v7181_v17 }
 0xa6a   : > { %7149 = vmax.xlane.f32.xlu0 %v7148_v55  ;;  %v11439_v38 = vpop.eup %11438 }
 0xa6b   : > { %v7214_v57 = vsel %vm1693_vm3, %v11439_v38, 0.0  ;;  %v13674_v21 = vpop.eup %11440 }
 0xa6c   : > { %v7217_v4 = vsel %vm1693_vm3, %v13674_v21, 0.0  ;;  %v13680_v29 = vpop.eup %11442 }
 0xa6d   : > { %v7220_v10 = vsel %vm1693_vm3, %v13680_v29, 0.0 }
 0xa6e   : > { %7203 = vadd.xlane.f32.xlu0 %v7202_v50 }
 0xa72   : > { %7206 = vadd.xlane.f32.xlu0 %v7205_v31 }
 0xa76   : > { %7209 = vadd.xlane.f32.xlu0 %v7208_v36 }
 0xa7a   : > { %7212 = vadd.xlane.f32.xlu0 %v7211_v44 }
 0xa7e   : > { %7215 = vadd.xlane.f32.xlu0 %v7214_v57 }
 0xa80   : > { %v7138_v7 = vpop.xlane.xlu0 %7137 }
 0xa81   : > { %v7135_v39 = vpop.xlane.xlu1 %7134  ;;  %v7162_v6 = vsub.f32 %v13594_v24, %v7138_v7 }
 0xa82   : > { %v7161_v30 = vsub.f32 %v13597_v62, %v7135_v39  ;;  %7218 = vadd.xlane.f32.xlu0 %v7217_v4  ;;  %7200 = vadd.xlane.f32.xlu1 %v7199_v32 }
 0xa83   : > { %v7189_v12 = vmul.f32 1.442695, %v7162_v6 }
 0xa84   : > { %v7187_v45 = vmul.f32 1.442695, %v7161_v30 }
 0xa86   : > { %11444 = vpow2.f32 %v7187_v45  ;;  %7221 = vadd.xlane.f32.xlu0 %v7220_v10 }
 0xa87   : > { %11446 = vpow2.f32 %v7189_v12 }
 0xa89   : > { %v7147_v14 = vpop.xlane.xlu1 %7146 }
 0xa8a   : > { %v7165_v13 = vsub.f32 %v13604_v22, %v7147_v14 }
 0xa8c   : > { %v7195_v63 = vmul.f32 1.442695, %v7165_v13 }
 0xa8d   : > { %v11171_v49 = vpop.permute.xlu1 %11170 }
 0xa8e   : > { %v11173_v59 = vunpack.i.h.bf16 %v11171_v49  ;;  %v11172_v9 = vunpack.i.l.bf16 %v11171_v49  ;;  %11448 = vpow2.f32 %v7195_v63 }
 0xa90   : > { %v13685_v26 = vpop.eup %11444  ;;  %v10692_v42 = vpack.c.bf16 %v11173_v59, %v11172_v9 }
 0xa91   : > { %v11176_v19 = vpop.permute.xlu1 %11175  ;;  %v7229_v58 = vsel %vm1693_vm3, %v13685_v26, 0.0 }
 0xa92   : > { %v11178_v25 = vunpack.i.h.bf16 %v11176_v19  ;;  %v11177_v34 = vunpack.i.l.bf16 %v11176_v19  ;;  %7230 = vadd.xlane.f32.xlu1 %v7229_v58 }
 0xa94   : > { %v10696_v62 = vpack.c.bf16 %v11178_v25, %v11177_v34  ;;  %v9276_v34 = vld [vmem:[%s14207_s6 + $0x18] sm:$0xff] }
 0xa95   : > { %v11181_v2 = vpop.permute.xlu1 %11180 }
 0xa96   : > { %10697 = vmatprep.subr.bf16.mxu1 %v10696_v62  ;;  %v11183_v48 = vunpack.i.h.bf16 %v11181_v2  ;;  %v11182_v16 = vunpack.i.l.bf16 %v11181_v2 }
 0xa97   : > { %10699 = vmatpush3.bf16.msra.mxu1 %v10696_v62 }
 0xa98   : > { %v10700_v55 = vpack.c.bf16 %v11183_v48, %v11182_v16 }
 0xa99   : > { %v11186_v28 = vpop.permute.xlu1 %11185 }
 0xa9a   : > { %v11188_v8 = vunpack.i.h.bf16 %v11186_v28  ;;  %v11187_v46 = vunpack.i.l.bf16 %v11186_v28  ;;  %10241 = vmatmul.mubr.msk.f32.vlgmr.msra.gmra.mrb[80].mxu1 %vm1693_vm3, %v11439_v38 }
 0xa9c   : > { %v10704_v0 = vpack.c.bf16 %v11188_v8, %v11187_v46 }
 0xa9d   : > { %v11191_v20 = vpop.permute.xlu1 %11190 }
 0xa9e   : > { %10705 = vmatprep.subr.bf16.mxu1 %v10704_v0  ;;  %v11193_v5 = vunpack.i.h.bf16 %v11191_v20  ;;  %v11192_v60 = vunpack.i.l.bf16 %v11191_v20 }
 0xa9f   : > { %10707 = vmatpush3.bf16.msra.mxu1 %v10704_v0 }
 0xaa0   : > { %v10708_v61 = vpack.c.bf16 %v11193_v5, %v11192_v60 }
 0xaa1   : > { %v11196_v54 = vpop.permute.xlu1 %11195 }
 0xaa2   : > { %v11198_v37 = vunpack.i.h.bf16 %v11196_v54  ;;  %v11197_v47 = vunpack.i.l.bf16 %v11196_v54 }
 0xaa4   : > { %v13690_v33 = vpack.c.bf16 %v11198_v37, %v11197_v47 }
 0xaa6   : > { %10713 = vmatprep.subr.bf16.mxu1 %v13690_v33 }
 0xac2   : > { %v7132_v53 = vpop.xlane.xlu0 %7131 }
 0xac3   : > { %v7160_v24 = vsub.f32 %v13626_v43, %v7132_v53 }
 0xac5   : > { %v7185_v35 = vmul.f32 1.442695, %v7160_v24 }
 0xac6   : > { %v11166_v11 = vpop.permute.xlu0 %11165 }
 0xac7   : > { %v11168_v56 = vunpack.i.h.bf16 %v11166_v11  ;;  %v11167_v18 = vunpack.i.l.bf16 %v11166_v11 }
 0xac9   : > { %v10688_v23 = vpack.c.bf16 %v11168_v56, %v11167_v18 }
 0xacb   : > { %10689 = vmatprep.subr.bf16.mxu0 %v10688_v23 }
 0xacc   : > { %10691 = vmatpush3.bf16.msra.mxu0 %v10688_v23 }
 0xacd   : > { %10693 = vmatprep.subr.bf16.mxu0 %v10692_v42 }
 0xacf   : > { %10227 = vmatmul.mubr.msk.f32.vlgmr.msra.gmra.mrb[64].mxu0 %vm1693_vm3, %v13658_v3 }
 0xad0   : > { %10695 = vmatpush3.bf16.msra.mxu0 %v10692_v42  ;;  %10233 = vmatprep.mubr.msk.f32.mxu0 %vm1693_vm3, %v13663_v52 }
 0xad1   : > { %10701 = vmatprep.subr.bf16.mxu0 %v10700_v55 }
 0xad2   : > { %v7129_v22 = vpop.xlane.xlu1 %7128 }
 0xad3   : > { %v7159_v50 = vsub.f32 %v13631_v27, %v7129_v22  ;;  %10234 = vmatmul.mubr.msk.f32.vlgmr.msra.gmra.mrb[66].mxu0 %vm1693_vm3, %v13668_v41  ;;  %v11447_v27 = vpop.eup %11446 }
 0xad4   : > { %10703 = vmatpush3.bf16.msra.mxu0 %v10700_v55  ;;  %10247 = vmatprep.mubr.msk.f32.mxu0 %vm1693_vm3, %v13674_v21  ;;  %v11449_v31 = vpop.eup %11448  ;;  %v7232_v30 = vsel %vm1693_vm3, %v11447_v27, 0.0 }
 0xad5   : > { %v7183_v3 = vmul.f32 1.442695, %v7159_v50  ;;  %10709 = vmatprep.subr.bf16.mxu0 %v10708_v61  ;;  %v7241_v14 = vsel %vm1693_vm3, %v11449_v31, 0.0 }
 0xad6   : > { %v7144_v43 = vpop.xlane.xlu1 %7143 }
 0xad7   : > { %11450 = vpow2.f32 %v7183_v3  ;;  %10248 = vmatmul.mubr.msk.f32.vlgmr.msra.gmra.mrb[68].mxu0 %vm1693_vm3, %v13680_v29  ;;  %v7164_v52 = vsub.f32 %v13634_v40, %v7144_v43 }
 0xad8   : > { %11452 = vpow2.f32 %v7185_v35  ;;  %10711 = vmatpush3.bf16.msra.mxu0 %v10708_v61  ;;  %10261 = vmatprep.mubr.msk.f32.mxu0 %vm1693_vm3, %v13685_v26 }
 0xad9   : > { %v7193_v17 = vmul.f32 1.442695, %v7164_v52 }
 0xada   : > { %v7141_v1 = vpop.xlane.xlu1 %7140 }
 0xadb   : > { %v7163_v41 = vsub.f32 %v13639_v15, %v7141_v1  ;;  %10262 = vmatmul.mubr.msk.f32.vlgmr.msra.gmra.mrb[70].mxu0 %vm1693_vm3, %v11447_v27 }
 0xadc   : > { %10275 = vmatprep.mubr.msk.f32.mxu0 %vm1693_vm3, %v11449_v31 }
 0xadd   : > { %v7191_v36 = vmul.f32 1.442695, %v7163_v41 }
 0xade   : > { %v11201_v44 = vpop.permute.xlu1 %11200 }
 0xadf   : > { %11454 = vpow2.f32 %v7191_v36  ;;  %v11203_v38 = vunpack.i.h.bf16 %v11201_v44  ;;  %v11202_v57 = vunpack.i.l.bf16 %v11201_v44 }
 0xae0   : > { %11456 = vpow2.f32 %v7193_v17 }
 0xae1   : > { %v11451_v40 = vpop.eup %11450  ;;  %v10716_v21 = vpack.c.bf16 %v11203_v38, %v11202_v57 }
 0xae2   : > { %v11453_v39 = vpop.eup %11452  ;;  %10254 = vmatprep.mubr.msk.f32.mxu1 %vm1693_vm3, %v11451_v40  ;;  %v7223_v4 = vsel %vm1693_vm3, %v11451_v40, 0.0 }
 0xae3   : > { %10255 = vmatmul.mubr.msk.f32.vlgmr.msra.gmra.mrb[82].mxu1 %vm1693_vm3, %v11453_v39  ;;  %7224 = vadd.xlane.f32.xlu0 %v7223_v4  ;;  %v7226_v15 = vsel %vm1693_vm3, %v11453_v39, 0.0 }
 0xae4   : > { %10715 = vmatpush3.bf16.msra.mxu1 %v13690_v33  ;;  %10717 = vmatprep.subr.bf16.mxu0 %v10716_v21 }
 0xae5   : > { %10719 = vmatpush3.bf16.msra.mxu0 %v10716_v21 }
 0xae6   : > { %10278 = vmatprep.subr.mxu0 %v9276_v34 }
 0xae7   : > { %7227 = vadd.xlane.f32.xlu0 %v7226_v15 }
 0xae9   : > { %v11455_v32 = vpop.eup %11454 }
 0xaea   : > { %v11457_v29 = vpop.eup %11456  ;;  %10268 = vmatprep.mubr.msk.f32.mxu1 %vm1693_vm3, %v11455_v32  ;;  %v7235_v45 = vsel %vm1693_vm3, %v11455_v32, 0.0 }
 0xaeb   : > { %7233 = vadd.xlane.f32.xlu0 %v7232_v30  ;;  %10269 = vmatmul.mubr.msk.f32.vlgmr.msra.gmra.mrb[84].mxu1 %vm1693_vm3, %v11457_v29  ;;  %v7238_v10 = vsel %vm1693_vm3, %v11457_v29, 0.0 }
 0xaec   : > { %7236 = vadd.xlane.f32.xlu1 %v7235_v45 }
 0xaef   : > { %7239 = vadd.xlane.f32.xlu0 %v7238_v10 }
 0xaf0   : > { %7242 = vadd.xlane.f32.xlu1 %v7241_v14 }
 0xaf7   : > { %v7150_v49 = vpop.xlane.xlu0 %7149 }
 0xaf8   : > { %v7166_v26 = vsub.f32 %v13653_v51, %v7150_v49 }
 0xafa   : > { %v7197_v19 = vmul.f32 1.442695, %v7166_v26 }
 0xafb   : > { %v7204_v28 = vpop.xlane.xlu0 %7203 }
 0xafc   : > { %11458 = vpow2.f32 %v7197_v19 }
 0xaff   : > { %v7207_v8 = vpop.xlane.xlu0 %7206 }
 0xb03   : > { %v7210_v46 = vpop.xlane.xlu0 %7209 }
 0xb06   : > { %v11459_v58 = vpop.eup %11458 }
 0xb07   : > { %10276 = vmatmul.mubr.msk.f32.vlgmr.msra.gmra.mrb[72].mxu0 %vm1693_vm3, %v11459_v58  ;;  %v7244_v25 = vsel %vm1693_vm3, %v11459_v58, 0.0  ;;  %v7213_v51 = vpop.xlane.xlu0 %7212 }
 0xb08   : > { %7245 = vadd.xlane.f32.xlu0 %v7244_v25  ;;  %10279 = vmatpush3.msra.mxu0 %v9276_v34 }
 0xb0b   : > { %v7216_v0 = vpop.xlane.xlu0 %7215 }
 0xb0f   : > { %v7201_v20 = vpop.xlane.xlu1 %7200  ;;  %v7219_v54 = vpop.xlane.xlu0 %7218 }
 0xb10   : > { %11460 = vrcp.f32 %v7201_v20 }
 0xb11   : > { %11462 = vrcp.f32 %v7204_v28  ;;  %v11524_v28 = vld [vmem:[%s11905_s29 + $0x8] sm:$0xff] }
 0xb12   : > { %11464 = vrcp.f32 %v7207_v8 }
 0xb13   : > { %v7222_v37 = vpop.xlane.xlu0 %7221  ;;  %11466 = vrcp.f32 %v7210_v46 }
 0xb14   : > { %11468 = vrcp.f32 %v7213_v51  ;;  %v11525_v51 = vld [vmem:[%s11905_s29] sm:$0xff] }
 0xb15   : > { %11470 = vrcp.f32 %v7216_v0 }
 0xb16   : > { %11472 = vrcp.f32 %v7219_v54 }
 0xb17   : > { %11474 = vrcp.f32 %v7222_v37 }
 0xb1a   : > { %v11461_v7 = vpop.eup %11460 }
 0xb1b   : > { %v11463_v11 = vpop.eup %11462 }
 0xb1c   : > { %v11465_v18 = vpop.eup %11464 }
 0xb1d   : > { %v11467_v23 = vpop.eup %11466 }
 0xb1e   : > { %v11469_v48 = vpop.eup %11468 }
 0xb1f   : > { %v11471_v5 = vpop.eup %11470  ;;  %v7231_v60 = vpop.xlane.xlu1 %7230 }
 0xb20   : > { %v11473_v24 = vpop.eup %11472 }
 0xb21   : > { %v11475_v43 = vpop.eup %11474 }
 0xb6d   : > { %v10242_v62 = vpop.f32.mrb[80].mxu1 }
 0xb6e   : > { %v7499_v2 = vpop.f32.mrb[81].mxu1  ;;  %v7964_v22 = vmul.f32 %v11471_v5, %v10242_v62 }
 0xb6f   : > { %v7963_v12 = vmul.f32 %v11469_v48, %v7499_v2  ;;  %v13749_v2 = vld [vmem:[%s14208_s7] ss:$0 sm:$0xff] }
 0xb70   : > { %v7225_v47 = vpop.xlane.xlu0 %7224 }
 0xb71   : > { %11476 = vrcp.f32 %v7225_v47  ;;  %v11526_v47 = vld [vmem:[%s11905_s29 + $0x18] sm:$0xff] }
 0xb74   : > { %v7228_v6 = vpop.xlane.xlu0 %7227 }
 0xb75   : > { %11478 = vrcp.f32 %v7228_v6 }
 0xb76   : > { %11480 = vrcp.f32 %v7231_v60 }
 0xb78   : > { %v7234_v61 = vpop.xlane.xlu0 %7233 }
 0xb79   : > { %11482 = vrcp.f32 %v7234_v61  ;;  %v7237_v27 = vpop.xlane.xlu1 %7236 }
 0xb7a   : > { %11484 = vrcp.f32 %v7237_v27 }
 0xb7b   : > { %v11477_v41 = vpop.eup %11476 }
 0xb7c   : > { %v7240_v1 = vpop.xlane.xlu0 %7239 }
 0xb7d   : > { %11486 = vrcp.f32 %v7240_v1  ;;  %v7243_v10 = vpop.xlane.xlu1 %7242 }
 0xb7e   : > { %11488 = vrcp.f32 %v7243_v10 }
 0xb7f   : > { %v11479_v36 = vpop.eup %11478 }
 0xb80   : > { %v11481_v38 = vpop.eup %11480 }
 0xb83   : > { %v11483_v21 = vpop.eup %11482 }
 0xb84   : > { %v11485_v15 = vpop.eup %11484 }
 0xb87   : > { %v11487_v29 = vpop.eup %11486 }
 0xb88   : > { %v11489_v26 = vpop.eup %11488 }
 0xb95   : > { %v7246_v14 = vpop.xlane.xlu0 %7245 }
 0xb96   : > { %11490 = vrcp.f32 %v7246_v14 }
 0xba0   : > { %v11491_v58 = vpop.eup %11490 }
 0xba2   : > { %v10228_v33 = vpop.f32.mrb[64].mxu0 }
 0xba3   : > { %v7325_v53 = vpop.f32.mrb[65].mxu0  ;;  %v7960_v9 = vmul.f32 %v11463_v11, %v10228_v33  ;;  %v11527_v11 = vld [vmem:[%s11905_s29 + $0x10] sm:$0xff] }
 0xba4   : > { %v7959_v59 = vmul.f32 %v11461_v7, %v7325_v53 }
 0xba6   : > { %v10235_v56 = vpop.f32.mrb[66].mxu0  ;;  %10280 = vmatprep.mubr.msk.f32.mxu0 %vm986_vm1, %v7959_v59 }
 0xba7   : > { %v7412_v13 = vpop.f32.mrb[67].mxu0  ;;  %10281 = vmatmul.mubr.msk.f32.vlgmr.msra.gmra.mrb[36].mxu0 %vm986_vm1, %v7960_v9  ;;  %v7962_v16 = vmul.f32 %v11467_v23, %v10235_v56 }
 0xba8   : > { %v7961_v42 = vmul.f32 %v11465_v18, %v7412_v13  ;;  %v11528_v13 = vld [vmem:[%s11905_s29 + $0x28] sm:$0xff] }
 0xbaa   : > { %v10249_v63 = vpop.f32.mrb[68].mxu0  ;;  %10283 = vmatprep.mubr.msk.f32.mxu0 %vm986_vm1, %v7961_v42 }
 0xbab   : > { %v7586_v55 = vpop.f32.mrb[69].mxu0  ;;  %10284 = vmatmul.mubr.msk.f32.gmra.mrb[38].mxu0 %vm986_vm1, %v7962_v16  ;;  %v7966_v52 = vmul.f32 %v11475_v43, %v10249_v63  ;;  %v11529_v16 = vld [vmem:[%s11905_s29 + $0x20] sm:$0xff] }
 0xbac   : > { %10286 = vmatprep.mubr.msk.f32.mxu0 %vm986_vm1, %v7963_v12  ;;  %v7965_v50 = vmul.f32 %v11473_v24, %v7586_v55  ;;  %v11530_v24 = vld [vmem:[%s11905_s29 + $0x38] sm:$0xff] }
 0xbae   : > { %v10263_v35 = vpop.f32.mrb[70].mxu0 }
 0xbaf   : > { %v7760_v3 = vpop.f32.mrb[71].mxu0  ;;  %10287 = vmatmul.mubr.msk.f32.gmra.mrb[40].mxu0 %vm986_vm1, %v7964_v22  ;;  %v7970_v39 = vmul.f32 %v11483_v21, %v10263_v35  ;;  %v11531_v35 = vld [vmem:[%s11905_s29 + $0x30] sm:$0xff] }
 0xbb0   : > { %10289 = vmatprep.mubr.msk.f32.mxu0 %vm986_vm1, %v7965_v50  ;;  %v7969_v40 = vmul.f32 %v11481_v38, %v7760_v3  ;;  %v11533_v38 = vld [vmem:[%s11905_s29 + $0x40] sm:$0xff] }
 0xbb3   : > { %10290 = vmatmul.mubr.msk.f32.gmra.mrb[42].mxu0 %vm986_vm1, %v7966_v52 }
 0xbb6   : > { %v10256_v31 = vpop.f32.mrb[82].mxu1 }
 0xbb7   : > { %v7673_v17 = vpop.f32.mrb[83].mxu1  ;;  %v7968_v57 = vmul.f32 %v11479_v36, %v10256_v31 }
 0xbb8   : > { %v7967_v44 = vmul.f32 %v11477_v41, %v7673_v17  ;;  %v11532_v17 = vld [vmem:[%s11905_s29 + $0x48] sm:$0xff] }
 0xbba   : > { %10292 = vmatprep.mubr.msk.f32.mxu0 %vm986_vm1, %v7967_v44 }
 0xbbb   : > { %10293 = vmatmul.mubr.msk.f32.gmra.mrb[44].mxu0 %vm986_vm1, %v7968_v57 }
 0xbbc   : > { %10295 = vmatprep.mubr.msk.f32.mxu0 %vm986_vm1, %v7969_v40 }
 0xbbe   : > { %v10270_v4 = vpop.f32.mrb[84].mxu1 }
 0xbbf   : > { %v7847_v32 = vpop.f32.mrb[85].mxu1  ;;  %10296 = vmatmul.mubr.msk.f32.gmra.mrb[46].mxu0 %vm986_vm1, %v7970_v39  ;;  %v7972_v45 = vmul.f32 %v11487_v29, %v10270_v4  ;;  %v11534_v4 = vld [vmem:[%s11905_s29 + $0x58] sm:$0xff] }
 0xbc0   : > { %v7971_v30 = vmul.f32 %v11485_v15, %v7847_v32 }
 0xbc2   : > { %10298 = vmatprep.mubr.msk.f32.mxu0 %vm986_vm1, %v7971_v30  ;;  %v11535_v30 = vld [vmem:[%s11905_s29 + $0x50] sm:$0xff] }
 0xbc3   : > { %10299 = vmatmul.mubr.msk.f32.gmra.mrb[48].mxu0 %vm986_vm1, %v7972_v45 }
 0xbda   : > { %v10277_v49 = vpop.f32.mrb[72].mxu0 }
 0xbdb   : > { %v7934_v19 = vpop.f32.mrb[73].mxu0  ;;  %v7974_v34 = vmul.f32 %v11491_v58, %v10277_v49 }
 0xbdc   : > { %v7973_v25 = vmul.f32 %v11489_v26, %v7934_v19  ;;  %v11536_v19 = vld [vmem:[%s11905_s29 + $0x68] sm:$0xff] }
 0xbde   : > { %10301 = vmatprep.mubr.msk.f32.mxu0 %vm986_vm1, %v7973_v25 }
 0xbdf   : > { %10302 = vmatmul.mubr.msk.f32.gmra.mrb[50].mxu0 %vm986_vm1, %v7974_v34 }
 0xc7a   : > { %v10282_v62 = vpop.f32.mrb[36].mxu0 }
 0xc7b   : > { %v8187_v8 = vadd.f32 %v11524_v28, %v10282_v62  ;;  %v8091_v46 = vpop.f32.mrb[37].mxu0  ;;  %v11537_v62 = vld [vmem:[%s11905_s29 + $0x60] sm:$0xff] }
 0xc7c   : > { %v8186_v0 = vadd.f32 %v11525_v51, %v8091_v46 }
 0xc7d   : > { %v13754_v20 = vadd.f32 %v13749_v2, %v8187_v8 }
 0xc7e   : > { %v13757_v54 = vadd.f32 %v13749_v2, %v8186_v0  ;;  %v10285_v37 = vpop.f32.mrb[38].mxu0 }
 0xc7f   : > { %v8189_v33 = vadd.f32 %v11526_v47, %v10285_v37  ;;  %v8101_v7 = vpop.f32.mrb[39].mxu0  ;;  %v8230_v53 = vsel %vm520_vm0, %v13754_v20, 0.0 }
 0xc80   : > { %v8188_v59 = vadd.f32 %v11527_v11, %v8101_v7  ;;  %8231 = vadd.xlane.f32.xlu0 %v8230_v53  ;;  %v8227_v9 = vsel %vm520_vm0, %v13757_v54, 0.0  ;;  %v11539_v11 = vld [vmem:[%s11905_s29 + $0x70] sm:$0xff] }
 0xc81   : > { %v13766_v56 = vadd.f32 %v13749_v2, %v8189_v33  ;;  %8228 = vadd.xlane.f32.xlu1 %v8227_v9  ;;  %v11538_v33 = vld [vmem:[%s11905_s29 + $0x78] sm:$0xff] }
 0xc82   : > { %v13769_v18 = vadd.f32 %v13749_v2, %v8188_v59  ;;  %v10288_v6 = vpop.f32.mrb[40].mxu0 }
 0xc83   : > { %v8191_v23 = vadd.f32 %v11528_v13, %v10288_v6  ;;  %v8111_v42 = vpop.f32.mrb[41].mxu0  ;;  %v8236_v48 = vsel %vm520_vm0, %v13766_v56, 0.0 }
 0xc84   : > { %v8190_v12 = vadd.f32 %v11529_v16, %v8111_v42  ;;  %8237 = vadd.xlane.f32.xlu0 %v8236_v48  ;;  %v8233_v63 = vsel %vm520_vm0, %v13769_v18, 0.0 }
 0xc85   : > { %v13778_v55 = vadd.f32 %v13749_v2, %v8191_v23  ;;  %8234 = vadd.xlane.f32.xlu1 %v8233_v63 }
 0xc86   : > { %v13781_v5 = vadd.f32 %v13749_v2, %v8190_v12  ;;  %v10291_v60 = vpop.f32.mrb[42].mxu0 }
 0xc87   : > { %v8193_v22 = vadd.f32 %v11530_v24, %v10291_v60  ;;  %v8121_v61 = vpop.f32.mrb[43].mxu0  ;;  %v8242_v50 = vsel %vm520_vm0, %v13778_v55, 0.0 }
 0xc88   : > { %v8192_v3 = vadd.f32 %v11531_v35, %v8121_v61  ;;  %8243 = vadd.xlane.f32.xlu0 %v8242_v50  ;;  %v8239_v43 = vsel %vm520_vm0, %v13781_v5, 0.0 }
 0xc89   : > { %v13790_v52 = vadd.f32 %v13749_v2, %v8193_v22  ;;  %8240 = vadd.xlane.f32.xlu1 %v8239_v43 }
 0xc8a   : > { %v13793_v27 = vadd.f32 %v13749_v2, %v8192_v3 }
 0xc8b   : > { %v8248_v1 = vsel %vm520_vm0, %v13790_v52, 0.0 }
 0xc8c   : > { %8249 = vadd.xlane.f32.xlu0 %v8248_v1  ;;  %v8245_v31 = vsel %vm520_vm0, %v13793_v27, 0.0 }
 0xc8d   : > { %8246 = vadd.xlane.f32.xlu1 %v8245_v31 }
 0xc8e   : > { %v10294_v41 = vpop.f32.mrb[44].mxu0 }
 0xc8f   : > { %v8195_v36 = vadd.f32 %v11532_v17, %v10294_v41  ;;  %v8131_v44 = vpop.f32.mrb[45].mxu0 }
 0xc90   : > { %v8194_v57 = vadd.f32 %v11533_v38, %v8131_v44 }
 0xc91   : > { %v13802_v40 = vadd.f32 %v13749_v2, %v8195_v36 }
 0xc92   : > { %v13805_v21 = vadd.f32 %v13749_v2, %v8194_v57  ;;  %v10297_v39 = vpop.f32.mrb[46].mxu0 }
 0xc93   : > { %v8197_v15 = vadd.f32 %v11534_v4, %v10297_v39  ;;  %v8141_v32 = vpop.f32.mrb[47].mxu0  ;;  %v8254_v29 = vsel %vm520_vm0, %v13802_v40, 0.0 }
 0xc94   : > { %v8196_v45 = vadd.f32 %v11535_v30, %v8141_v32  ;;  %8255 = vadd.xlane.f32.xlu0 %v8254_v29  ;;  %v8251_v10 = vsel %vm520_vm0, %v13805_v21, 0.0 }
 0xc95   : > { %v13814_v14 = vadd.f32 %v13749_v2, %v8197_v15  ;;  %8252 = vadd.xlane.f32.xlu1 %v8251_v10 }
 0xc96   : > { %v13817_v49 = vadd.f32 %v13749_v2, %v8196_v45  ;;  %v10300_v26 = vpop.f32.mrb[48].mxu0 }
 0xc97   : > { %v8199_v58 = vadd.f32 %v11536_v19, %v10300_v26  ;;  %v8151_v25 = vpop.f32.mrb[49].mxu0  ;;  %v8260_v34 = vsel %vm520_vm0, %v13814_v14, 0.0 }
 0xc98   : > { %v8198_v28 = vadd.f32 %v11537_v62, %v8151_v25  ;;  %8261 = vadd.xlane.f32.xlu0 %v8260_v34  ;;  %v8257_v8 = vsel %vm520_vm0, %v13817_v49, 0.0 }
 0xc99   : > { %v13826_v46 = vadd.f32 %v13749_v2, %v8199_v58  ;;  %8258 = vadd.xlane.f32.xlu1 %v8257_v8 }
 0xc9a   : > { %v13829_v51 = vadd.f32 %v13749_v2, %v8198_v28 }
 0xc9b   : > { %v8266_v0 = vsel %vm520_vm0, %v13826_v46, 0.0 }
 0xc9c   : > { %8267 = vadd.xlane.f32.xlu0 %v8266_v0  ;;  %v8263_v37 = vsel %vm520_vm0, %v13829_v51, 0.0 }
 0xc9d   : > { %8264 = vadd.xlane.f32.xlu1 %v8263_v37 }
 0xcb2   : > { %v10303_v47 = vpop.f32.mrb[50].mxu0 }
 0xcb3   : > { %v8201_v7 = vadd.f32 %v11538_v33, %v10303_v47  ;;  %v8161_v53 = vpop.f32.mrb[51].mxu0 }
 0xcb4   : > { %v8200_v59 = vadd.f32 %v11539_v11, %v8161_v53 }
 0xcb5   : > { %v13838_v9 = vadd.f32 %v13749_v2, %v8201_v7 }
 0xcb6   : > { %v13841_v6 = vadd.f32 %v13749_v2, %v8200_v59 }
 0xcb7   : > { %v8272_v13 = vsel %vm520_vm0, %v13838_v9, 0.0 }
 0xcb8   : > { %8273 = vadd.xlane.f32.xlu0 %v8272_v13  ;;  %v8269_v23 = vsel %vm520_vm0, %v13841_v6, 0.0 }
 0xcb9   : > { %8270 = vadd.xlane.f32.xlu1 %v8269_v23 }
 0xd0d   : > { %v8232_v42 = vpop.xlane.xlu0 %8231 }
 0xd0e   : > { %v8276_v48 = vmul.f32 0.03125, %v8232_v42  ;;  %v8229_v16 = vpop.xlane.xlu1 %8228 }
 0xd0f   : > { %v8275_v12 = vmul.f32 0.03125, %v8229_v16 }
 0xd10   : > { %v13848_v63 = vsub.f32 %v13754_v20, %v8276_v48 }
 0xd11   : > { %v13851_v60 = vsub.f32 %v13757_v54, %v8275_v12  ;;  %v8238_v2 = vpop.xlane.xlu0 %8237 }
 0xd12   : > { %v8278_v24 = vmul.f32 0.03125, %v8238_v2  ;;  %v8235_v22 = vpop.xlane.xlu1 %8234  ;;  %v8308_v61 = vmul.f32 %v13848_v63, %v13848_v63 }
 0xd13   : > { %v8277_v50 = vmul.f32 0.03125, %v8235_v22  ;;  %v8307_v35 = vmul.f32 %v13851_v60, %v13851_v60 }
 0xd14   : > { %v13858_v3 = vsub.f32 %v13766_v56, %v8278_v24  ;;  %v8326_v43 = vsel %vm520_vm0, %v8308_v61, 0.0 }
 0xd15   : > { %v13862_v1 = vsub.f32 %v13769_v18, %v8277_v50  ;;  %v8244_v31 = vpop.xlane.xlu0 %8243  ;;  %8327 = vadd.xlane.f32.xlu0 %v8326_v43  ;;  %v8323_v41 = vsel %vm520_vm0, %v8307_v35, 0.0 }
 0xd16   : > { %v8280_v17 = vmul.f32 0.03125, %v8244_v31  ;;  %v8241_v36 = vpop.xlane.xlu1 %8240  ;;  %8324 = vadd.xlane.f32.xlu1 %v8323_v41  ;;  %v8310_v44 = vmul.f32 %v13858_v3, %v13858_v3 }
 0xd17   : > { %v8279_v38 = vmul.f32 0.03125, %v8241_v36  ;;  %v8309_v57 = vmul.f32 %v13862_v1, %v13862_v1 }
 0xd18   : > { %v13870_v39 = vsub.f32 %v13778_v55, %v8280_v17  ;;  %v8332_v4 = vsel %vm520_vm0, %v8310_v44, 0.0 }
 0xd19   : > { %v13874_v15 = vsub.f32 %v13781_v5, %v8279_v38  ;;  %v8250_v32 = vpop.xlane.xlu0 %8249  ;;  %8333 = vadd.xlane.f32.xlu0 %v8332_v4  ;;  %v8329_v29 = vsel %vm520_vm0, %v8309_v57, 0.0 }
 0xd1a   : > { %v8282_v30 = vmul.f32 0.03125, %v8250_v32  ;;  %v8247_v45 = vpop.xlane.xlu1 %8246  ;;  %8330 = vadd.xlane.f32.xlu1 %v8329_v29  ;;  %v8312_v10 = vmul.f32 %v13870_v39, %v13870_v39 }
 0xd1b   : > { %v8281_v26 = vmul.f32 0.03125, %v8247_v45  ;;  %v8311_v19 = vmul.f32 %v13874_v15, %v13874_v15  ;;  %v8480_v45 = vld [vmem:[%s14211_s10 + $0x8] sm:$0xff] }
 0xd1c   : > { %v13882_v58 = vsub.f32 %v13790_v52, %v8282_v30  ;;  %v8338_v25 = vsel %vm520_vm0, %v8312_v10, 0.0  ;;  %v8479_v30 = vld [vmem:[%s14211_s10] sm:$0xff] }
 0xd1d   : > { %v13886_v34 = vsub.f32 %v13793_v27, %v8281_v26  ;;  %8339 = vadd.xlane.f32.xlu0 %v8338_v25  ;;  %v8335_v62 = vsel %vm520_vm0, %v8311_v19, 0.0  ;;  %v10720_v26 = vpack.c.bf16 %v8480_v45, %v8479_v30  ;;  %v8481_v19 = vld [vmem:[%s14211_s10 + $0x10] sm:$0xff]  ;;  %v8482_v25 = vld [vmem:[%s14211_s10 + $0x18] sm:$0xff]  ;;  %v8711_v45 = vld [vmem:[%s14213_s12 + $0x60] sm:$0xff] }
 0xd1e   : > { %8336 = vadd.xlane.f32.xlu1 %v8335_v62  ;;  %v8314_v28 = vmul.f32 %v13882_v58, %v13882_v58  ;;  %v10724_v62 = vpack.c.bf16 %v8482_v25, %v8481_v19 }
 0xd1f   : > { %v8313_v8 = vmul.f32 %v13886_v34, %v13886_v34  ;;  %10721 = vmatprep.subr.bf16.mxu1 %v10720_v26 }
 0xd20   : > { %v8344_v0 = vsel %vm520_vm0, %v8314_v28, 0.0  ;;  %10723 = vmatpush3.bf16.msra.mxu1 %v10720_v26 }
 0xd21   : > { %v8256_v37 = vpop.xlane.xlu0 %8255  ;;  %8345 = vadd.xlane.f32.xlu0 %v8344_v0  ;;  %v8341_v47 = vsel %vm520_vm0, %v8313_v8, 0.0  ;;  %10725 = vmatprep.subr.bf16.mxu1 %v10724_v62 }
 0xd22   : > { %v8284_v33 = vmul.f32 0.03125, %v8256_v37  ;;  %v8253_v7 = vpop.xlane.xlu1 %8252  ;;  %8342 = vadd.xlane.f32.xlu1 %v8341_v47 }
 0xd23   : > { %v8283_v53 = vmul.f32 0.03125, %v8253_v7 }
 0xd24   : > { %v13896_v11 = vsub.f32 %v13802_v40, %v8284_v33  ;;  %10727 = vmatpush3.bf16.msra.mxu1 %v10724_v62 }
 0xd25   : > { %v13899_v59 = vsub.f32 %v13805_v21, %v8283_v53  ;;  %v8262_v13 = vpop.xlane.xlu0 %8261 }
 0xd26   : > { %v8286_v23 = vmul.f32 0.03125, %v8262_v13  ;;  %v8259_v42 = vpop.xlane.xlu1 %8258  ;;  %v8316_v48 = vmul.f32 %v13896_v11, %v13896_v11 }
 0xd27   : > { %v8285_v16 = vmul.f32 0.03125, %v8259_v42  ;;  %v8315_v12 = vmul.f32 %v13899_v59, %v13899_v59  ;;  %v8699_v42 = vld [vmem:[%s14213_s12] sm:$0xff] }
 0xd28   : > { %v13906_v2 = vsub.f32 %v13814_v14, %v8286_v23  ;;  %v8350_v24 = vsel %vm520_vm0, %v8316_v48, 0.0  ;;  %v8700_v48 = vld [vmem:[%s14213_s12 + $0x8] sm:$0xff] }
 0xd29   : > { %v13910_v22 = vsub.f32 %v13817_v49, %v8285_v16  ;;  %v8268_v61 = vpop.xlane.xlu0 %8267  ;;  %8351 = vadd.xlane.f32.xlu0 %v8350_v24  ;;  %v8347_v50 = vsel %vm520_vm0, %v8315_v12, 0.0  ;;  %v8701_v16 = vld [vmem:[%s14213_s12 + $0x10] sm:$0xff]  ;;  %v10728_v12 = vpack.c.bf16 %v8700_v48, %v8699_v42  ;;  %v8702_v24 = vld [vmem:[%s14213_s12 + $0x18] sm:$0xff] }
 0xd2a   : > { %v8288_v35 = vmul.f32 0.03125, %v8268_v61  ;;  %v8265_v43 = vpop.xlane.xlu1 %8264  ;;  %8348 = vadd.xlane.f32.xlu1 %v8347_v50  ;;  %v8318_v31 = vmul.f32 %v13906_v2, %v13906_v2  ;;  %v10732_v61 = vpack.c.bf16 %v8702_v24, %v8701_v16  ;;  %v8703_v50 = vld [vmem:[%s14213_s12 + $0x20] sm:$0xff] }
 0xd2b   : > { %v8287_v41 = vmul.f32 0.03125, %v8265_v43  ;;  %v8317_v17 = vmul.f32 %v13910_v22, %v13910_v22  ;;  %10729 = vmatprep.subr.bf16.mxu0 %v10728_v12 }
 0xd2c   : > { %v13918_v36 = vsub.f32 %v13826_v46, %v8288_v35  ;;  %v8356_v44 = vsel %vm520_vm0, %v8318_v31, 0.0  ;;  %v8704_v35 = vld [vmem:[%s14213_s12 + $0x28] sm:$0xff]  ;;  %10731 = vmatpush3.bf16.msra.mxu0 %v10728_v12  ;;  %v8705_v31 = vld [vmem:[%s14213_s12 + $0x30] sm:$0xff] }
 0xd2d   : > { %v13922_v38 = vsub.f32 %v13829_v51, %v8287_v41  ;;  %8357 = vadd.xlane.f32.xlu0 %v8356_v44  ;;  %v8353_v57 = vsel %vm520_vm0, %v8317_v17, 0.0  ;;  %10733 = vmatprep.subr.bf16.mxu0 %v10732_v61  ;;  %v10736_v43 = vpack.c.bf16 %v8704_v35, %v8703_v50  ;;  %v8706_v41 = vld [vmem:[%s14213_s12 + $0x38] sm:$0xff]  ;;  %v8707_v44 = vld [vmem:[%s14213_s12 + $0x40] sm:$0xff] }
 0xd2e   : > { %8354 = vadd.xlane.f32.xlu1 %v8353_v57  ;;  %v8320_v4 = vmul.f32 %v13918_v36, %v13918_v36  ;;  %v10740_v17 = vpack.c.bf16 %v8706_v41, %v8705_v31  ;;  %v8708_v57 = vld [vmem:[%s14213_s12 + $0x48] sm:$0xff] }
 0xd2f   : > { %v8319_v32 = vmul.f32 %v13922_v38, %v13922_v38 }
 0xd30   : > { %v8362_v29 = vsel %vm520_vm0, %v8320_v4, 0.0  ;;  %10735 = vmatpush3.bf16.msra.mxu0 %v10732_v61  ;;  %v10744_v4 = vpack.c.bf16 %v8708_v57, %v8707_v44  ;;  %v14000_v57 = vld [vmem:[%s14371_s24] ss:$0 sm:$0xff] }
 0xd31   : > { %8363 = vadd.xlane.f32.xlu0 %v8362_v29  ;;  %v8359_v10 = vsel %vm520_vm0, %v8319_v32, 0.0  ;;  %10737 = vmatprep.subr.bf16.mxu0 %v10736_v43  ;;  %v8709_v32 = vld [vmem:[%s14213_s12 + $0x50] sm:$0xff]  ;;  %v8710_v29 = vld [vmem:[%s14213_s12 + $0x58] sm:$0xff] }
 0xd32   : > { %8360 = vadd.xlane.f32.xlu1 %v8359_v10  ;;  %v10748_v30 = vpack.c.bf16 %v8710_v29, %v8709_v32  ;;  %v8712_v10 = vld [vmem:[%s14213_s12 + $0x68] sm:$0xff] }
 0xd33   : > { %v10752_v26 = vpack.c.bf16 %v8712_v10, %v8711_v45  ;;  %v14007_v45 = vld [vmem:[%s14372_s20] ss:$0 sm:$0xff]  ;;  %s11598_s20 = scalar_lea.vmem %s14152_s8, 2048 }
 0xd34   : > { %10739 = vmatpush3.bf16.msra.mxu0 %v10736_v43  ;;  %p11599_p9 = scmp.ne.s32.totalorder %s14152_s8, %s11598_s20  ;;  %p11606_p0 = scmp.lt.s32.totalorder %s11604_s26, %s11598_s20 }
 0xd35   : > { %10741 = vmatprep.subr.bf16.mxu0 %v10740_v17 }
 0xd36   : > { %p11600_p2 = pnand %p11599_p9, %p14376_p10  ;;  %p11607_p6 = por %p11606_p0, %p11605_p5 }
 0xd38   : > { %10743 = vmatpush3.bf16.msra.mxu0 %v10740_v17  ;;  %p11601_p4 = pneg %p11600_p2 }
 0xd39   : > { %10745 = vmatprep.subr.bf16.mxu0 %v10744_v4 }
 0xd3a   : > { %p11608_p13 = pnand %p11607_p6, %p11601_p4 }
 0xd3c   : > { %10747 = vmatpush3.bf16.msra.mxu0 %v10744_v4 }
 0xd3d   : > { %10749 = vmatprep.subr.bf16.mxu0 %v10748_v30 }
 0xd40   : > { %10751 = vmatpush3.bf16.msra.mxu0 %v10748_v30 }
 0xd41   : > { %10753 = vmatprep.subr.bf16.mxu0 %v10752_v26 }
 0xd44   : > { %10755 = vmatpush3.bf16.msra.mxu0 %v10752_v26 }
 0xd45   : > { %v8274_v28 = vpop.xlane.xlu0 %8273 }
 0xd46   : > { %v8290_v8 = vmul.f32 0.03125, %v8274_v28  ;;  %v8271_v0 = vpop.xlane.xlu1 %8270 }
 0xd47   : > { %v8289_v37 = vmul.f32 0.03125, %v8271_v0 }
 0xd48   : > { %v13944_v47 = vsub.f32 %v13838_v9, %v8290_v8 }
 0xd49   : > { %v13947_v33 = vsub.f32 %v13841_v6, %v8289_v37 }
 0xd4a   : > { %v8322_v7 = vmul.f32 %v13944_v47, %v13944_v47 }
 0xd4b   : > { %v8321_v53 = vmul.f32 %v13947_v33, %v13947_v33 }
 0xd4c   : > { %v8368_v13 = vsel %vm520_vm0, %v8322_v7, 0.0 }
 0xd4d   : > { %8369 = vadd.xlane.f32.xlu0 %v8368_v13  ;;  %v8365_v23 = vsel %vm520_vm0, %v8321_v53, 0.0 }
 0xd4e   : > { %8366 = vadd.xlane.f32.xlu1 %v8365_v23 }
 0xda2   : > { %v8328_v19 = vpop.xlane.xlu0 %8327 }
 0xda3   : > { %v8372_v25 = vmul.f32 0.03125, %v8328_v19  ;;  %v8325_v62 = vpop.xlane.xlu1 %8324 }
 0xda4   : > { %v8371_v28 = vmul.f32 0.03125, %v8325_v62 }
 0xda5   : > { %v8388_v8 = vadd.f32 1e-05, %v8372_v25 }
 0xda6   : > { %v8387_v0 = vadd.f32 1e-05, %v8371_v28  ;;  %v8334_v37 = vpop.xlane.xlu0 %8333 }
 0xda7   : > { %11492 = vrsqrt.f32 %v8388_v8  ;;  %v8374_v7 = vmul.f32 0.03125, %v8334_v37  ;;  %v8331_v53 = vpop.xlane.xlu1 %8330 }
 0xda8   : > { %11494 = vrsqrt.f32 %v8387_v0  ;;  %v8373_v13 = vmul.f32 0.03125, %v8331_v53 }
 0xda9   : > { %v8390_v23 = vadd.f32 1e-05, %v8374_v7 }
 0xdaa   : > { %v8389_v42 = vadd.f32 1e-05, %v8373_v13  ;;  %v8340_v48 = vpop.xlane.xlu0 %8339 }
 0xdab   : > { %11496 = vrsqrt.f32 %v8390_v23  ;;  %v8376_v16 = vmul.f32 0.03125, %v8340_v48  ;;  %v8337_v12 = vpop.xlane.xlu1 %8336 }
 0xdac   : > { %11498 = vrsqrt.f32 %v8389_v42  ;;  %v8375_v24 = vmul.f32 0.03125, %v8337_v12 }
 0xdad   : > { %v8392_v61 = vadd.f32 1e-05, %v8376_v16 }
 0xdae   : > { %v8391_v50 = vadd.f32 1e-05, %v8375_v24  ;;  %v8346_v35 = vpop.xlane.xlu0 %8345 }
 0xdaf   : > { %11500 = vrsqrt.f32 %v8392_v61  ;;  %v8378_v43 = vmul.f32 0.03125, %v8346_v35  ;;  %v8343_v31 = vpop.xlane.xlu1 %8342 }
 0xdb0   : > { %11502 = vrsqrt.f32 %v8391_v50  ;;  %v8377_v41 = vmul.f32 0.03125, %v8343_v31 }
 0xdb1   : > { %v11493_v17 = vpop.eup %11492  ;;  %v8394_v44 = vadd.f32 1e-05, %v8378_v43 }
 0xdb2   : > { %v11495_v4 = vpop.eup %11494  ;;  %v8420_v32 = vmul.f32 %v11493_v17, %v13848_v63  ;;  %v8393_v29 = vadd.f32 1e-05, %v8377_v41 }
 0xdb3   : > { %11504 = vrsqrt.f32 %v8394_v44  ;;  %v8419_v30 = vmul.f32 %v11495_v4, %v13851_v60 }
 0xdb4   : > { %11506 = vrsqrt.f32 %v8393_v29  ;;  %v8442_v10 = vmul.f32 %v14000_v57, %v8420_v32 }
 0xdb5   : > { %v11497_v26 = vpop.eup %11496  ;;  %v8441_v19 = vmul.f32 %v14000_v57, %v8419_v30 }
 0xdb6   : > { %v11499_v25 = vpop.eup %11498  ;;  %v8352_v62 = vpop.xlane.xlu0 %8351  ;;  %v8422_v28 = vmul.f32 %v11497_v26, %v13858_v3  ;;  %v8464_v7 = vadd.f32 %v14007_v45, %v8442_v10 }
 0xdb7   : > { %v8380_v63 = vmul.f32 0.03125, %v8352_v62  ;;  %v8349_v8 = vpop.xlane.xlu1 %8348  ;;  %v8463_v0 = vadd.f32 %v14007_v45, %v8441_v19  ;;  %v8421_v60 = vmul.f32 %v11499_v25, %v13862_v1 }
 0xdb8   : > { %v8379_v37 = vmul.f32 0.03125, %v8349_v8  ;;  %v8444_v53 = vmul.f32 %v14000_v57, %v8422_v28 }
 0xdb9   : > { %v11501_v13 = vpop.eup %11500  ;;  %v8396_v23 = vadd.f32 1e-05, %v8380_v63  ;;  %10312 = vmatprep.mubr.msk.f32.mxu1 %vm520_vm0, %v8463_v0  ;;  %v8443_v42 = vmul.f32 %v14000_v57, %v8421_v60 }
 0xdba   : > { %v11503_v48 = vpop.eup %11502  ;;  %v8395_v16 = vadd.f32 1e-05, %v8379_v37  ;;  %v8358_v3 = vpop.xlane.xlu0 %8357  ;;  %10313 = vmatmul.mubr.msk.f32.vlgmr.msra.gmra.mrb[86].mxu1 %vm520_vm0, %v8464_v7  ;;  %v8424_v12 = vmul.f32 %v11501_v13, %v13870_v39  ;;  %v8466_v43 = vadd.f32 %v14007_v45, %v8444_v53 }
 0xdbb   : > { %11508 = vrsqrt.f32 %v8396_v23  ;;  %v8382_v1 = vmul.f32 0.03125, %v8358_v3  ;;  %v8355_v24 = vpop.xlane.xlu1 %8354  ;;  %v8465_v61 = vadd.f32 %v14007_v45, %v8443_v42  ;;  %v8423_v50 = vmul.f32 %v11503_v48, %v13874_v15 }
 0xdbc   : > { %11510 = vrsqrt.f32 %v8395_v16  ;;  %v8381_v35 = vmul.f32 0.03125, %v8355_v24  ;;  %v8446_v31 = vmul.f32 %v14000_v57, %v8424_v12 }
 0xdbd   : > { %v11505_v41 = vpop.eup %11504  ;;  %v8398_v17 = vadd.f32 1e-05, %v8382_v1  ;;  %10315 = vmatprep.mubr.msk.f32.mxu1 %vm520_vm0, %v8465_v61  ;;  %v8445_v44 = vmul.f32 %v14000_v57, %v8423_v50 }
 0xdbe   : > { %v11507_v39 = vpop.eup %11506  ;;  %v8397_v4 = vadd.f32 1e-05, %v8381_v35  ;;  %v8364_v32 = vpop.xlane.xlu0 %8363  ;;  %10316 = vmatmul.mubr.msk.f32.gmra.mrb[88].mxu1 %vm520_vm0, %v8466_v43  ;;  %v8426_v29 = vmul.f32 %v11505_v41, %v13882_v58  ;;  %v8468_v25 = vadd.f32 %v14007_v45, %v8446_v31 }
 0xdbf   : > { %11512 = vrsqrt.f32 %v8398_v17  ;;  %v8384_v15 = vmul.f32 0.03125, %v8364_v32  ;;  %v8361_v30 = vpop.xlane.xlu1 %8360  ;;  %v8467_v10 = vadd.f32 %v14007_v45, %v8445_v44  ;;  %v8425_v26 = vmul.f32 %v11507_v39, %v13886_v34 }
 0xdc0   : > { %11514 = vrsqrt.f32 %v8397_v4  ;;  %v8383_v19 = vmul.f32 0.03125, %v8361_v30  ;;  %v8448_v62 = vmul.f32 %v14000_v57, %v8426_v29 }
 0xdc1   : > { %v8400_v28 = vadd.f32 1e-05, %v8384_v15  ;;  %10318 = vmatprep.mubr.msk.f32.mxu1 %vm520_vm0, %v8467_v10  ;;  %v8447_v63 = vmul.f32 %v14000_v57, %v8425_v26 }
 0xdc2   : > { %v8399_v8 = vadd.f32 1e-05, %v8383_v19  ;;  %10319 = vmatmul.mubr.msk.f32.gmra.mrb[90].mxu1 %vm520_vm0, %v8468_v25  ;;  %v8470_v34 = vadd.f32 %v14007_v45, %v8448_v62  ;;  %v8713_v62 = vld [vmem:[%s14213_s12 + $0x70] sm:$0xff] }
 0xdc3   : > { %11516 = vrsqrt.f32 %v8400_v28  ;;  %v8469_v58 = vadd.f32 %v14007_v45, %v8447_v63 }
 0xdc4   : > { %11518 = vrsqrt.f32 %v8399_v8 }
 0xdc5   : > { %v11509_v0 = vpop.eup %11508  ;;  %10321 = vmatprep.mubr.msk.f32.mxu1 %vm520_vm0, %v8469_v58 }
 0xdc6   : > { %v11511_v60 = vpop.eup %11510  ;;  %10322 = vmatmul.mubr.msk.f32.gmra.mrb[92].mxu1 %vm520_vm0, %v8470_v34  ;;  %v8428_v37 = vmul.f32 %v11509_v0, %v13896_v11 }
 0xdc7   : > { %v8427_v7 = vmul.f32 %v11511_v60, %v13899_v59 }
 0xdc8   : > { %v8450_v53 = vmul.f32 %v14000_v57, %v8428_v37 }
 0xdc9   : > { %v11513_v13 = vpop.eup %11512  ;;  %v8449_v23 = vmul.f32 %v14000_v57, %v8427_v7 }
 0xdca   : > { %v11515_v42 = vpop.eup %11514  ;;  %v8430_v48 = vmul.f32 %v11513_v13, %v13906_v2  ;;  %v8472_v12 = vadd.f32 %v14007_v45, %v8450_v53 }
 0xdcb   : > { %v8471_v16 = vadd.f32 %v14007_v45, %v8449_v23  ;;  %v8429_v3 = vmul.f32 %v11515_v42, %v13910_v22 }
 0xdcc   : > { %v8452_v1 = vmul.f32 %v14000_v57, %v8430_v48 }
 0xdcd   : > { %v11517_v24 = vpop.eup %11516  ;;  %10324 = vmatprep.mubr.msk.f32.mxu1 %vm520_vm0, %v8471_v16  ;;  %v8451_v11 = vmul.f32 %v14000_v57, %v8429_v3 }
 0xdce   : > { %v11519_v59 = vpop.eup %11518  ;;  %10325 = vmatmul.mubr.msk.f32.gmra.mrb[94].mxu1 %vm520_vm0, %v8472_v12  ;;  %v8432_v61 = vmul.f32 %v11517_v24, %v13918_v36  ;;  %v8474_v22 = vadd.f32 %v14007_v45, %v8452_v1 }
 0xdcf   : > { %v8473_v2 = vadd.f32 %v14007_v45, %v8451_v11  ;;  %v8431_v50 = vmul.f32 %v11519_v59, %v13922_v38 }
 0xdd0   : > { %v8454_v35 = vmul.f32 %v14000_v57, %v8432_v61 }
 0xdd1   : > { %10327 = vmatprep.mubr.msk.f32.mxu1 %vm520_vm0, %v8473_v2  ;;  %v8453_v43 = vmul.f32 %v14000_v57, %v8431_v50 }
 0xdd2   : > { %10328 = vmatmul.mubr.msk.f32.gmra.mrb[96].mxu1 %vm520_vm0, %v8474_v22  ;;  %v8476_v41 = vadd.f32 %v14007_v45, %v8454_v35 }
 0xdd3   : > { %v8475_v31 = vadd.f32 %v14007_v45, %v8453_v43 }
 0xdd5   : > { %10330 = vmatprep.mubr.msk.f32.mxu1 %vm520_vm0, %v8475_v31 }
 0xdd6   : > { %10331 = vmatmul.mubr.msk.f32.gmra.mrb[98].mxu1 %vm520_vm0, %v8476_v41 }
 0xdda   : > { %v8370_v36 = vpop.xlane.xlu0 %8369 }
 0xddb   : > { %v8386_v38 = vmul.f32 0.03125, %v8370_v36  ;;  %v8367_v17 = vpop.xlane.xlu1 %8366 }
 0xddc   : > { %v8385_v44 = vmul.f32 0.03125, %v8367_v17 }
 0xddd   : > { %v8402_v39 = vadd.f32 1e-05, %v8386_v38 }
 0xdde   : > { %v8401_v4 = vadd.f32 1e-05, %v8385_v44 }
 0xddf   : > { %11520 = vrsqrt.f32 %v8402_v39 }
 0xde0   : > { %11522 = vrsqrt.f32 %v8401_v4 }
 0xde9   : > { %v11521_v32 = vpop.eup %11520 }
 0xdea   : > { %v11523_v29 = vpop.eup %11522  ;;  %v8434_v15 = vmul.f32 %v11521_v32, %v13944_v47  ;;  %v8714_v47 = vld [vmem:[%s14213_s12 + $0x78] sm:$0xff] }
 0xdeb   : > { %v8433_v30 = vmul.f32 %v11523_v29, %v13947_v33  ;;  %v10756_v33 = vpack.c.bf16 %v8714_v47, %v8713_v62 }
 0xdec   : > { %v8456_v10 = vmul.f32 %v14000_v57, %v8434_v15 }
 0xded   : > { %v8455_v26 = vmul.f32 %v14000_v57, %v8433_v30  ;;  %10757 = vmatprep.subr.bf16.mxu0 %v10756_v33  ;;  %v9296_v57 = vld [vmem:[#allocation5] ss:$0 sm:$0xff] }
 0xdee   : > { %v8478_v25 = vadd.f32 %v14007_v45, %v8456_v10  ;;  %10759 = vmatpush3.bf16.msra.mxu0 %v10756_v33 }
 0xdef   : > { %v8477_v19 = vadd.f32 %v14007_v45, %v8455_v26 }
 0xdf1   : > { %10333 = vmatprep.mubr.msk.f32.mxu1 %vm520_vm0, %v8477_v19 }
 0xdf2   : > { %10334 = vmatmul.mubr.msk.f32.gmra.mrb[100].mxu1 %vm520_vm0, %v8478_v25 }
 0xe8d   : > { %v10314_v28 = vpop.f32.mrb[86].mxu1 }
 0xe8e   : > { %v8610_v63 = vadd.f32 %v10314_v28, %v9296_v57  ;;  %v8604_v8 = vpop.f32.mrb[87].mxu1 }
 0xe8f   : > { %v8605_v45 = vadd.f32 %v9296_v57, %v8604_v8 }
 0xe90   : > { %v8684_v0 = vmax.f32 %v8610_v63, 0.0  ;;  %v14080_v63 = vld [vmem:[%s14373_s28] ss:$0 sm:$0xff] }
 0xe91   : > { %v8683_v58 = vmax.f32 %v8605_v45, 0.0  ;;  %v10317_v34 = vpop.f32.mrb[88].mxu1 }
 0xe92   : > { %v8620_v60 = vadd.f32 %v10317_v34, %v9296_v57  ;;  %v8614_v37 = vpop.f32.mrb[89].mxu1 }
 0xe93   : > { %v8615_v7 = vadd.f32 %v9296_v57, %v8614_v37  ;;  %10368 = vmatprep.mubr.f32.mxu0 %v8683_v58 }
 0xe94   : > { %10369 = vmatmul.mubr.f32.vlgmr.msra.gmra.mrb[74].mxu0 %v8684_v0  ;;  %v8686_v23 = vmax.f32 %v8620_v60, 0.0 }
 0xe95   : > { %v8685_v53 = vmax.f32 %v8615_v7, 0.0  ;;  %v10320_v13 = vpop.f32.mrb[90].mxu1 }
 0xe96   : > { %v8630_v42 = vadd.f32 %v10320_v13, %v9296_v57  ;;  %v8624_v48 = vpop.f32.mrb[91].mxu1 }
 0xe97   : > { %v8625_v16 = vadd.f32 %v9296_v57, %v8624_v48  ;;  %10371 = vmatprep.mubr.f32.mxu0 %v8685_v53 }
 0xe98   : > { %10372 = vmatmul.mubr.f32.gmra.mrb[76].mxu0 %v8686_v23  ;;  %v8688_v1 = vmax.f32 %v8630_v42, 0.0 }
 0xe99   : > { %v8687_v3 = vmax.f32 %v8625_v16, 0.0  ;;  %v10323_v12 = vpop.f32.mrb[92].mxu1 }
 0xe9a   : > { %v8640_v24 = vadd.f32 %v10323_v12, %v9296_v57  ;;  %v8634_v11 = vpop.f32.mrb[93].mxu1 }
 0xe9b   : > { %v8635_v59 = vadd.f32 %v9296_v57, %v8634_v11  ;;  %10374 = vmatprep.mubr.f32.mxu0 %v8687_v3 }
 0xe9c   : > { %10375 = vmatmul.mubr.f32.gmra.mrb[78].mxu0 %v8688_v1  ;;  %v8690_v2 = vmax.f32 %v8640_v24, 0.0 }
 0xe9d   : > { %v8689_v61 = vmax.f32 %v8635_v59, 0.0 }
 0xe9f   : > { %10377 = vmatprep.mubr.f32.mxu0 %v8689_v61 }
 0xea0   : > { %10378 = vmatmul.mubr.f32.gmra.mrb[80].mxu0 %v8690_v2 }
 0xea1   : > { %v10326_v50 = vpop.f32.mrb[94].mxu1 }
 0xea2   : > { %v8650_v22 = vadd.f32 %v10326_v50, %v9296_v57  ;;  %v8644_v35 = vpop.f32.mrb[95].mxu1 }
 0xea3   : > { %v8645_v43 = vadd.f32 %v9296_v57, %v8644_v35 }
 0xea4   : > { %v8692_v36 = vmax.f32 %v8650_v22, 0.0 }
 0xea5   : > { %v8691_v31 = vmax.f32 %v8645_v43, 0.0  ;;  %v10329_v41 = vpop.f32.mrb[96].mxu1 }
 0xea6   : > { %v8660_v38 = vadd.f32 %v10329_v41, %v9296_v57  ;;  %v8654_v17 = vpop.f32.mrb[97].mxu1 }
 0xea7   : > { %v8655_v44 = vadd.f32 %v9296_v57, %v8654_v17  ;;  %10380 = vmatprep.mubr.f32.mxu0 %v8691_v31 }
 0xea8   : > { %10381 = vmatmul.mubr.f32.gmra.mrb[82].mxu0 %v8692_v36  ;;  %v8694_v32 = vmax.f32 %v8660_v38, 0.0 }
 0xea9   : > { %v8693_v39 = vmax.f32 %v8655_v44, 0.0  ;;  %v10332_v4 = vpop.f32.mrb[98].mxu1 }
 0xeaa   : > { %v8670_v29 = vadd.f32 %v10332_v4, %v9296_v57  ;;  %v8664_v15 = vpop.f32.mrb[99].mxu1 }
 0xeab   : > { %v8665_v30 = vadd.f32 %v9296_v57, %v8664_v15  ;;  %10383 = vmatprep.mubr.f32.mxu0 %v8693_v39 }
 0xeac   : > { %10384 = vmatmul.mubr.f32.gmra.mrb[84].mxu0 %v8694_v32  ;;  %v8696_v26 = vmax.f32 %v8670_v29, 0.0 }
 0xead   : > { %v8695_v10 = vmax.f32 %v8665_v30, 0.0 }
 0xeaf   : > { %10386 = vmatprep.mubr.f32.mxu0 %v8695_v10 }
 0xeb0   : > { %10387 = vmatmul.mubr.f32.gmra.mrb[86].mxu0 %v8696_v26 }
 0xec5   : > { %v10335_v19 = vpop.f32.mrb[100].mxu1 }
 0xec6   : > { %v8680_v25 = vadd.f32 %v10335_v19, %v9296_v57  ;;  %v8674_v62 = vpop.f32.mrb[101].mxu1 }
 0xec7   : > { %v8675_v47 = vadd.f32 %v9296_v57, %v8674_v62 }
 0xec8   : > { %v8698_v28 = vmax.f32 %v8680_v25, 0.0 }
 0xec9   : > { %v8697_v33 = vmax.f32 %v8675_v47, 0.0 }
 0xecb   : > { %10389 = vmatprep.mubr.f32.mxu0 %v8697_v33 }
 0xecc   : > { %10390 = vmatmul.mubr.f32.gmra.mrb[88].mxu0 %v8698_v28 }
 0xf67   : > { %v10370_v8 = vpop.f32.mrb[74].mxu0 }
 0xf68   : > { %v8794_v45 = vadd.f32 %v10370_v8, %v14080_v63  ;;  %v8788_v58 = vpop.f32.mrb[75].mxu0 }
 0xf69   : > { %v8789_v34 = vadd.f32 %v14080_v63, %v8788_v58 }
 0xf6a   : > { %v8868_v0 = vadd.f32 %v8794_v45, %v13754_v20 }
 0xf6b   : > { %v8867_v60 = vadd.f32 %v8789_v34, %v13757_v54  ;;  %v10373_v57 = vpop.f32.mrb[76].mxu0 }
 0xf6c   : > { %8884 = vst.msk [vmem:[%s14088_s23 + $0x8] sm:$0xff] %vm520_vm0, %v8868_v0  ;;  %v8804_v37 = vadd.f32 %v10373_v57, %v14080_v63  ;;  %v8798_v7 = vpop.f32.mrb[77].mxu0 }
 0xf6d   : > { %8883 = vst.msk [vmem:[%s14088_s23] sm:$0xff] %vm520_vm0, %v8867_v60  ;;  %v8799_v20 = vadd.f32 %v14080_v63, %v8798_v7 }
 0xf6e   : > { %v8870_v54 = vadd.f32 %v8804_v37, %v13766_v56 }
 0xf6f   : > { %v8869_v53 = vadd.f32 %v8799_v20, %v13769_v18  ;;  %v10376_v13 = vpop.f32.mrb[78].mxu0 }
 0xf70   : > { %8886 = vst.msk [vmem:[%s14088_s23 + $0x18] sm:$0xff] %vm520_vm0, %v8870_v54  ;;  %v8814_v23 = vadd.f32 %v10376_v13, %v14080_v63  ;;  %v8808_v42 = vpop.f32.mrb[79].mxu0 }
 0xf71   : > { %8885 = vst.msk [vmem:[%s14088_s23 + $0x10] sm:$0xff] %vm520_vm0, %v8869_v53  ;;  %v8809_v48 = vadd.f32 %v14080_v63, %v8808_v42 }
 0xf72   : > { %v8872_v16 = vadd.f32 %v8814_v23, %v13778_v55 }
 0xf73   : > { %v8871_v3 = vadd.f32 %v8809_v48, %v13781_v5  ;;  %v10379_v12 = vpop.f32.mrb[80].mxu0 }
 0xf74   : > { %8888 = vst.msk [vmem:[%s14088_s23 + $0x28] sm:$0xff] %vm520_vm0, %v8872_v16  ;;  %v8824_v56 = vadd.f32 %v10379_v12, %v14080_v63  ;;  %v8818_v18 = vpop.f32.mrb[81].mxu0 }
 0xf75   : > { %8887 = vst.msk [vmem:[%s14088_s23 + $0x20] sm:$0xff] %vm520_vm0, %v8871_v3  ;;  %v8819_v1 = vadd.f32 %v14080_v63, %v8818_v18 }
 0xf76   : > { %v8874_v24 = vadd.f32 %v8824_v56, %v13790_v52 }
 0xf77   : > { %v8873_v11 = vadd.f32 %v8819_v1, %v13793_v27 }
 0xf78   : > { %8890 = vst.msk [vmem:[%s14088_s23 + $0x38] sm:$0xff] %vm520_vm0, %v8874_v24 }
 0xf79   : > { %8889 = vst.msk [vmem:[%s14088_s23 + $0x30] sm:$0xff] %vm520_vm0, %v8873_v11 }
 0xf7b   : > { %v10382_v55 = vpop.f32.mrb[82].mxu0 }
 0xf7c   : > { %v8834_v5 = vadd.f32 %v10382_v55, %v14080_v63  ;;  %v8828_v59 = vpop.f32.mrb[83].mxu0 }
 0xf7d   : > { %v8829_v61 = vadd.f32 %v14080_v63, %v8828_v59 }
 0xf7e   : > { %v8876_v2 = vadd.f32 %v8834_v5, %v13802_v40 }
 0xf7f   : > { %v8875_v50 = vadd.f32 %v8829_v61, %v13805_v21  ;;  %v10385_v22 = vpop.f32.mrb[84].mxu0 }
 0xf80   : > { %8892 = vst.msk [vmem:[%s14088_s23 + $0x48] sm:$0xff] %vm520_vm0, %v8876_v2  ;;  %v8844_v52 = vadd.f32 %v10385_v22, %v14080_v63  ;;  %v8838_v27 = vpop.f32.mrb[85].mxu0 }
 0xf81   : > { %8891 = vst.msk [vmem:[%s14088_s23 + $0x40] sm:$0xff] %vm520_vm0, %v8875_v50  ;;  %v8839_v35 = vadd.f32 %v14080_v63, %v8838_v27 }
 0xf82   : > { %v8878_v43 = vadd.f32 %v8844_v52, %v13814_v14 }
 0xf83   : > { %v8877_v40 = vadd.f32 %v8839_v35, %v13817_v49  ;;  %v10388_v31 = vpop.f32.mrb[86].mxu0 }
 0xf84   : > { %8894 = vst.msk [vmem:[%s14088_s23 + $0x58] sm:$0xff] %vm520_vm0, %v8878_v43  ;;  %v8854_v21 = vadd.f32 %v10388_v31, %v14080_v63  ;;  %v8848_v41 = vpop.f32.mrb[87].mxu0 }
 0xf85   : > { %8893 = vst.msk [vmem:[%s14088_s23 + $0x50] sm:$0xff] %vm520_vm0, %v8877_v40  ;;  %v8849_v36 = vadd.f32 %v14080_v63, %v8848_v41 }
 0xf86   : > { %v8880_v38 = vadd.f32 %v8854_v21, %v13826_v46 }
 0xf87   : > { %v8879_v17 = vadd.f32 %v8849_v36, %v13829_v51 }
 0xf88   : > { %8896 = vst.msk [vmem:[%s14088_s23 + $0x68] sm:$0xff] %vm520_vm0, %v8880_v38 }
 0xf89   : > { %8895 = vst.msk [vmem:[%s14088_s23 + $0x60] sm:$0xff] %vm520_vm0, %v8879_v17 }
 0xf9f   : > { %v10391_v14 = vpop.f32.mrb[88].mxu0 }
 0xfa0   : > { %v8864_v49 = vadd.f32 %v10391_v14, %v14080_v63  ;;  %v8858_v44 = vpop.f32.mrb[89].mxu0 }
 0xfa1   : > { %v8859_v39 = vadd.f32 %v14080_v63, %v8858_v44 }
 0xfa2   : > { %v8882_v4 = vadd.f32 %v8864_v49, %v13838_v9 }
 0xfa3   : > { %v8881_v46 = vadd.f32 %v8859_v39, %v13841_v6 }
 0xfa4   : > { %8898 = vst.msk [vmem:[%s14088_s23 + $0x78] sm:$0xff] %vm520_vm0, %v8882_v4 }
 0xfa5   : > { %8897 = vst.msk [vmem:[%s14088_s23 + $0x70] sm:$0xff] %vm520_vm0, %v8881_v46 }
 0xfa6   : > { %11611 = shalt.err (!%p11608_p13)
}
 0xfa7   : > { %s11612_s29 = scalar_lea.hbm %s14150_s15, 2048  ;;  %s11616_s28 = scalar_lea.hbm %s14375_s27, 4096 }
 0xfa8   : > { %p11613_p7 = scmp.ne.s32.totalorder %s14150_s15, %s11612_s29  ;;  %p11617_p1 = scmp.lt.u32.totalorder %s14150_s15, %s14375_s27 }
 0xfa9   : > { %p11618_p11 = scmp.lt.u32.totalorder %s11616_s28, %s11612_s29  ;;  %p11620_p9 = scmp.lt.u32.totalorder %s11612_s29, %s14150_s15 }
 0xfaa   : > { %p11614_p3 = pnand %p11613_p7, %p14376_p10 }
 0xfab   : > { %p11619_p8 = por %p11618_p11, %p11617_p1 }
 0xfac   : > { %p11615_p12 = pneg %p11614_p3 }
 0xfad   : > { %p11621_p2 = por %p11620_p9, %p11619_p8 }
 0xfaf   : > { %p11622_p4 = pnand %p11621_p2, %p11615_p12 }
 0xfb1   : > { %11625 = shalt.err (!%p11622_p4)
}
 0xfb2   : > { %s11686_s22 = smov 128   ;;  %s11687_s24 = smov 8  }
 0xfb3   : > { %10818 = dma.vmem_to_hbm [thread:$0]  (%p14376_p10), %s14152_s8, 2048, %s14150_s15, %s8900_s17, %s11686_s22, %s11686_s22, %s11687_s24  }
 0xfb4 PF: > { %s14377_s20 = sld [smem:[#allocation11_spill]]  ;;  %s14378_s25 = sld [smem:[#allocation16_spill]] }
 0xfb5   : > { %p14380_p0 = scmp.ge.s32.totalorder %s11668_s16, 2 }
 0xfba   : > { %s8929_s21 = sand.u32 1, %s14377_s20   ;;  %p14379_p5 = scmp.ne.s32.totalorder %s14378_s25, 0 }
 0xfbb   : > { %s8930_s26 = scalar_lea.sflag [#allocation4], %s8929_s21 }
 0xfbc   : > { %p10829_p6 = pnand %p14380_p0, %p14379_p5 }
 0xfbe   : > { %11651 = dma.done.wait (!%p10829_p6), %s8930_s26, 2048  }
 0xfbf   : > { %11653 = vsyncadd (!%p10829_p6), %s8930_s26, 4294965248  ;;  %s14381_s16 = sld [smem:[#allocation13_spill]]  ;;  %s14382_s13 = sld [smem:[#allocation12_spill]] }
 0xfc0   : > { %s14383_s15 = sld [smem:[#allocation14_spill]]  ;;  %s14384_s29 = smov %s11660_s30 }
 0xfc5   : > { %p28_p13 = scmp.ge.s32.totalorder %s14381_s16, 4   ;;  %s14385_s30 = smov %s14382_s13 }
 0xfc7   :  { %30 = sbr.rel (!%p28_p13) target bundleno = 11 (0xb), region = 131 }
 0xfce   :  { %8935 = vsyncpa [#allocation3], 1 }
 0xfcf   :  { %8937 = vsyncpa [#allocation3 + $0x1], 1 }
 0xfd0   :  { %8938 = vsyncpa [#allocation6], 1 }
 0xfd1   :  { %8939 = vsyncpa [#allocation4], 1 }
 0xfd2   :  { %8941 = vsyncpa [#allocation4 + $0x1], 1 }

</bundles_post_ra>
